<compile_context>
chip_gen: v5e
topology: v5e:2x2
jax: 0.10.0
libtpu: 0.0.40
codegen_flags: <defaults>
</compile_context>

<pallas_src>
import jax
import jax.numpy as jnp
from jax.experimental import pallas as pl
from jax.experimental.pallas import tpu as pltpu

D_HID = 512     # matches the PyTorch module's d_hid
BATCH = 64      # small example batch (multiple of 8, whole-batch tile)


def example_code_kernel(x_ref, tgt_ref, mm1_ref, w1_ref, w2_ref, b_ref,
                        loss_ref):
    """Fused forward pass, whole batch in one invocation.

    x_ref    (B, D) f32   input rows
    tgt_ref  (B, D) f32   target rows
    mm1_ref  (D, D)       mm_param               (bf16 or f32, VMEM)
    w1_ref   (D, D)       mm_param  @ lin.W.T    (pre-folded,  VMEM)
    w2_ref   (D, D)       mm_param2 @ lin.W.T    (pre-folded,  VMEM)
    b_ref    (1, D) f32   lin.bias
    loss_ref (1, 1) f32   SMEM scalar: sum((h - target)^2)
    """
    wdt = mm1_ref.dtype
    x = x_ref[...]
    b = b_ref[...]

    # stage 0: h = x @ mm_param ; skip = h ; h = relu(h)
    h = jnp.dot(x.astype(wdt), mm1_ref[...], preferred_element_type=jnp.float32)
    skip = h
    h = jnp.maximum(h, 0.0)

    # stage 1 (folded): (h @ mm_param) @ lin.W.T + b  ==  h @ W1 + b
    h = jnp.dot(h.astype(wdt), w1_ref[...], preferred_element_type=jnp.float32) + b

    # stages 2 + 3 (folded): relu ; + skip ; (h @ mm_param2) @ lin.W.T + b ; relu
    h = jnp.maximum(h, 0.0) + skip
    h = jnp.dot(h.astype(wdt), w2_ref[...], preferred_element_type=jnp.float32) + b
    h = jnp.maximum(h, 0.0)

    diff = h - tgt_ref[...]
    loss_ref[0, 0] = jnp.sum(diff * diff)


def prepare_params(mm_param, mm_param2, lin_w, lin_b,
                   weights_dtype=jnp.bfloat16):
    """One-time parameter preparation (kept OUT of the per-step hot path).

    Folds the nn.Linear weight into the param matmuls (exact reassociation:
    (h @ A) @ W.T == h @ (A @ W.T)) and casts the three weight matrices to
    the kernel's MXU dtype.  lin_w is PyTorch-layout (out, in).
    """
    wT = lin_w.T
    w1 = jnp.dot(mm_param, wT, precision=jax.lax.Precision.HIGHEST)
    w2 = jnp.dot(mm_param2, wT, precision=jax.lax.Precision.HIGHEST)
    return dict(
        mm1=mm_param.astype(weights_dtype),
        w1=w1.astype(weights_dtype),
        w2=w2.astype(weights_dtype),
        b=lin_b.reshape(1, -1).astype(jnp.float32),
    )


@jax.jit
def example_code_forward(x, target, params):
    B, D = x.shape
    wbytes = params["mm1"].dtype.itemsize
    cost = pl.CostEstimate(
        flops=2 * 3 * B * D * D,
        transcendentals=0,
        bytes_accessed=3 * D * D * wbytes + 2 * B * D * 4 + D * 4 + 4,
    )

    loss = pl.pallas_call(
        example_code_kernel,
        out_shape=jax.ShapeDtypeStruct((1, 1), jnp.float32),
        in_specs=[
            pl.BlockSpec(memory_space=pltpu.MemorySpace.VMEM),   # x
            pl.BlockSpec(memory_space=pltpu.MemorySpace.VMEM),   # target
            pl.BlockSpec(memory_space=pltpu.MemorySpace.VMEM),   # mm_param
            pl.BlockSpec(memory_space=pltpu.MemorySpace.VMEM),   # W1 (folded)
            pl.BlockSpec(memory_space=pltpu.MemorySpace.VMEM),   # W2 (folded)
            pl.BlockSpec(memory_space=pltpu.MemorySpace.VMEM),   # bias
        ],
        out_specs=pl.BlockSpec(memory_space=pltpu.MemorySpace.SMEM),
        cost_estimate=cost,
    )(x, target, params["mm1"], params["w1"], params["w2"], params["b"])

    return {"loss": loss[0, 0]}


if __name__ == "__main__":
    key = jax.random.PRNGKey(0)
    kx, kt, k1, k2, kw, kb = jax.random.split(key, 6)

    # Deterministic "parameters" (shapes from the module's __init__).
    mm_param = jax.random.normal(k1, (D_HID, D_HID), dtype=jnp.float32)
    mm_param2 = jax.random.normal(k2, (D_HID, D_HID), dtype=jnp.float32)
    bound = 1.0 / (D_HID ** 0.5)   # nn.Linear default init range
    lin_w = jax.random.uniform(kw, (D_HID, D_HID), jnp.float32, -bound, bound)
    lin_b = jax.random.uniform(kb, (D_HID,), jnp.float32, -bound, bound)

    x = jax.random.normal(kx, (BATCH, D_HID), dtype=jnp.float32)
    target = jax.random.normal(kt, (BATCH, D_HID), dtype=jnp.float32)

    # Pure-JAX reference: the original (unfused, f32) module semantics.
    def ref(xx, tt):
        h = xx @ mm_param
        skip = h
        h = jnp.maximum(h, 0.0)
        h = h @ mm_param
        h = h @ lin_w.T + lin_b
        h = jnp.maximum(h, 0.0)
        h = h + skip
        h = h @ mm_param2
        h = h @ lin_w.T + lin_b
        h = jnp.maximum(h, 0.0)
        return jnp.sum((h - tt) ** 2)

    ref_loss = ref(x, target)

    # f32-weight kernel: tight check of the fold / fused kernel structure.
    params_f32 = prepare_params(mm_param, mm_param2, lin_w, lin_b,
                                weights_dtype=jnp.float32)
    out_f32 = example_code_forward(x, target, params_f32)
    jax.block_until_ready(out_f32["loss"])
    assert jnp.allclose(out_f32["loss"], ref_loss, rtol=1e-2), (
        float(out_f32["loss"]), float(ref_loss))

    # bf16-weight kernel (the fast path): looser tolerance because the
    # sum-reduced loss amplifies bf16 weight/activation rounding.
    params = prepare_params(mm_param, mm_param2, lin_w, lin_b)
    out = example_code_forward(x, target, params)
    jax.block_until_ready(out["loss"])
    assert jnp.allclose(out["loss"], ref_loss, rtol=5e-2), (
        float(out["loss"]), float(ref_loss))

    print("KERNEL_OK")
</pallas_src>

<mosaic_0001>
module attributes {stable_mosaic.version = 11 : i64} {
  func.func @example_code_kernel(%arg0: memref<64x512xf32, #tpu.memory_space<vmem>>, %arg1: memref<64x512xf32, #tpu.memory_space<vmem>>, %arg2: memref<512x512xf32, #tpu.memory_space<vmem>>, %arg3: memref<512x512xf32, #tpu.memory_space<vmem>>, %arg4: memref<512x512xf32, #tpu.memory_space<vmem>>, %arg5: memref<1x512xf32, #tpu.memory_space<vmem>>, %arg6: memref<1x1xf32, #tpu.memory_space<smem>>) attributes {dimension_semantics = [], scalar_prefetch = 0 : i64, scratch_operands = 0 : i64, tpu.core_type = #tpu.core_type<tc>} {
    %c0 = arith.constant 0 : index
    %c0_0 = arith.constant 0 : index
    %0 = vector.load %arg0[%c0, %c0_0] : memref<64x512xf32, #tpu.memory_space<vmem>>, vector<64x512xf32>
    %c0_1 = arith.constant 0 : index
    %c0_2 = arith.constant 0 : index
    %1 = vector.load %arg5[%c0_1, %c0_2] : memref<1x512xf32, #tpu.memory_space<vmem>>, vector<1x512xf32>
    %c0_3 = arith.constant 0 : index
    %c0_4 = arith.constant 0 : index
    %2 = vector.load %arg2[%c0_3, %c0_4] : memref<512x512xf32, #tpu.memory_space<vmem>>, vector<512x512xf32>
    %cst = arith.constant dense<0.000000e+00> : vector<64x512xf32>
    %3 = tpu.matmul %0, %2, %cst {dimension_numbers = #tpu.dot_dimension_numbers<[1], [0], [0], [1], [0, 0, 1, 1], [], []>} : vector<64x512xf32>, vector<512x512xf32>, vector<64x512xf32> -> vector<64x512xf32>
    %cst_5 = arith.constant 0.000000e+00 : f32
    %4 = vector.broadcast %cst_5 : f32 to vector<64x512xf32>
    %5 = arith.maximumf %3, %4 : vector<64x512xf32>
    %c0_6 = arith.constant 0 : index
    %c0_7 = arith.constant 0 : index
    %6 = vector.load %arg3[%c0_6, %c0_7] : memref<512x512xf32, #tpu.memory_space<vmem>>, vector<512x512xf32>
    %cst_8 = arith.constant dense<0.000000e+00> : vector<64x512xf32>
    %7 = tpu.matmul %5, %6, %cst_8 {dimension_numbers = #tpu.dot_dimension_numbers<[1], [0], [0], [1], [0, 0, 1, 1], [], []>} : vector<64x512xf32>, vector<512x512xf32>, vector<64x512xf32> -> vector<64x512xf32>
    %8 = vector.broadcast %1 : vector<1x512xf32> to vector<64x512xf32>
    %9 = arith.addf %7, %8 : vector<64x512xf32>
    %cst_9 = arith.constant 0.000000e+00 : f32
    %10 = vector.broadcast %cst_9 : f32 to vector<64x512xf32>
    %11 = arith.maximumf %9, %10 : vector<64x512xf32>
    %12 = arith.addf %11, %3 : vector<64x512xf32>
    %c0_10 = arith.constant 0 : index
    %c0_11 = arith.constant 0 : index
    %13 = vector.load %arg4[%c0_10, %c0_11] : memref<512x512xf32, #tpu.memory_space<vmem>>, vector<512x512xf32>
    %cst_12 = arith.constant dense<0.000000e+00> : vector<64x512xf32>
    %14 = tpu.matmul %12, %13, %cst_12 {dimension_numbers = #tpu.dot_dimension_numbers<[1], [0], [0], [1], [0, 0, 1, 1], [], []>} : vector<64x512xf32>, vector<512x512xf32>, vector<64x512xf32> -> vector<64x512xf32>
    %15 = vector.broadcast %1 : vector<1x512xf32> to vector<64x512xf32>
    %16 = arith.addf %14, %15 : vector<64x512xf32>
    %cst_13 = arith.constant 0.000000e+00 : f32
    %17 = vector.broadcast %cst_13 : f32 to vector<64x512xf32>
    %18 = arith.maximumf %16, %17 : vector<64x512xf32>
    %c0_14 = arith.constant 0 : index
    %c0_15 = arith.constant 0 : index
    %19 = vector.load %arg1[%c0_14, %c0_15] : memref<64x512xf32, #tpu.memory_space<vmem>>, vector<64x512xf32>
    %20 = arith.subf %18, %19 : vector<64x512xf32>
    %21 = arith.mulf %20, %20 : vector<64x512xf32>
    %22 = vector.shape_cast %21 : vector<64x512xf32> to vector<1x64x512xf32>
    %cst_16 = arith.constant dense<0.000000e+00> : vector<1xf32>
    %23 = vector.multi_reduction <add>, %22, %cst_16 [1, 2] : vector<1x64x512xf32> to vector<1xf32>
    %24 = vector.shape_cast %23 : vector<1xf32> to vector<1x1x1xf32>
    %25 = vector.extract %24[0, 0, 0] : f32 from vector<1x1x1xf32>
    %c0_17 = arith.constant 0 : index
    %c0_18 = arith.constant 0 : index
    %26 = memref.load %arg6[%c0_17, %c0_18] : memref<1x1xf32, #tpu.memory_space<smem>>
    memref.store %25, %arg6[%c0_17, %c0_18] : memref<1x1xf32, #tpu.memory_space<smem>>
    return
  }
}

</mosaic_0001>

<bundles_post_ra>
// kernel: example_code_forward.1
= control target key start
LH: loop header
LB: loop body
LE: loop exit
PB: predicated region body
PF: predicated region fallthrough
CT: control target
= control target key end

     0   :  { %11 = vsyncpa [#allocation3], 0  ;;  %s4821_s0 = inlined_call_operand.hbm [shape: f32[64,512], index: 0, kind: input, shape index: {}]   ;;  %s4822_s1 = inlined_call_operand.hbm [shape: f32[64,512], index: 1, kind: input, shape index: {}]   ;;  %s4823_s2 = inlined_call_operand.hbm [shape: f32[512,512], index: 2, kind: input, shape index: {}]   ;;  %s4824_s3 = inlined_call_operand.hbm [shape: f32[512,512], index: 3, kind: input, shape index: {}]   ;;  %s4825_s4 = inlined_call_operand.hbm [shape: f32[512,512], index: 4, kind: input, shape index: {}]   ;;  %s4826_s5 = inlined_call_operand.hbm [shape: f32[1,512], index: 5, kind: input, shape index: {}]   ;;  %s4827_s6 = inlined_call_operand.hbm [shape: f32[1,1], index: 6, kind: output, shape index: {}]  }
   0x1   :  { %12 = vsyncpa [#allocation6], 0 }
   0x2   :  { %13 = vsyncpa [#allocation9], 0 }
   0x3   :  { %14 = vsyncpa [#allocation12], 0 }
   0x4   :  { %15 = vsyncpa [#allocation4], 0  ;;  %s33_s23 = sshll.u32 %s4822_s1, 4  ;;  %s3389_s24 = smov [#allocation5]   ;;  %s34_s23 = int_to_ptr.hbm [resolvable:$true] %s33_s23 }
   0x5   :  { %s35_s25 = sshll.u32 %s3389_s24, 4  ;;  %s59_s28 = sshll.u32 %s4824_s3, 4  ;;  %s36_s25 = int_to_ptr.vmem [resolvable:$true] %s35_s25  ;;  %s60_s28 = int_to_ptr.hbm [resolvable:$true] %s59_s28 }
   0x6   :  { %s3390_s29 = smov 512   ;;  %s3391_s30 = smov 32  }
   0x7   :  { %41 = dma.hbm_to_vmem [thread:$0]  %s34_s23, 4096, %s36_s25, [#allocation6], %s3390_s29, %s3390_s29, %s3391_s30  }
   0x8   :  { %s3392_s7 = smov [#allocation8]   ;;  %s20_s1 = sshll.u32 %s4821_s0, 4  ;;  %s21_s1 = int_to_ptr.hbm [resolvable:$true] %s20_s1 }
   0x9   :  { %s61_s8 = sshll.u32 %s3392_s7, 4  ;;  %s46_s12 = sshll.u32 %s4823_s2, 4  ;;  %s62_s8 = int_to_ptr.vmem [resolvable:$true] %s61_s8  ;;  %s47_s12 = int_to_ptr.hbm [resolvable:$true] %s46_s12 }
   0xa   :  { %67 = dma.hbm_to_vmem [thread:$0]  %s60_s28, 32768, %s62_s8, [#allocation9], %s3390_s29, %s3390_s29, %s3391_s30  }
   0xb   :  { %s3393_s13 = smov [#allocation2]   ;;  %s3394_s15 = smov [#allocation7]  }
   0xc   :  { %s22_s14 = sshll.u32 %s3393_s13, 4  ;;  %s48_s0 = sshll.u32 %s3394_s15, 4  ;;  %s23_s14 = int_to_ptr.vmem [resolvable:$true] %s22_s14  ;;  %s49_s0 = int_to_ptr.vmem [resolvable:$true] %s48_s0 }
   0xd   :  { %28 = dma.hbm_to_vmem [thread:$0]  %s21_s1, 4096, %s23_s14, [#allocation3], %s3390_s29, %s3390_s29, %s3391_s30  }
   0xe   :  { %s72_s18 = sshll.u32 %s4825_s4, 4  ;;  %s86_s20 = sshll.u32 %s4826_s5, 4  ;;  %s73_s18 = int_to_ptr.hbm [resolvable:$true] %s72_s18  ;;  %s87_s20 = int_to_ptr.hbm [resolvable:$true] %s86_s20 }
   0xf   :  { %54 = dma.hbm_to_vmem [thread:$0]  %s47_s12, 32768, %s49_s0, [#allocation6], %s3390_s29, %s3390_s29, %s3391_s30  }
  0x10   :  { %s3395_s21 = smov [#allocation10]   ;;  %s3396_s23 = smov [#allocation11]  }
  0x11   :  { %s74_s22 = sshll.u32 %s3395_s21, 4  ;;  %s88_s4 = sshll.u32 %s3396_s23, 4  ;;  %s75_s22 = int_to_ptr.vmem [resolvable:$true] %s74_s22  ;;  %s89_s4 = int_to_ptr.vmem [resolvable:$true] %s88_s4 }
  0x12   :  { %80 = dma.hbm_to_vmem [thread:$0]  %s73_s18, 32768, %s75_s22, [#allocation9], %s3390_s29, %s3390_s29, %s3391_s30  }
  0x13   :  { %91 = dma.hbm_to_vmem [thread:$0]  %s87_s20, 64, %s89_s4, [#allocation12]  }
  0x14   :  { %3379 = dma.done.wait [#allocation3], 4096  }
  0x15   :  { %3380 = vsyncadd [#allocation3], 4294963200 }
  0x16   :  { %3381 = dma.done.wait [#allocation6], 36864  }
  0x17   :  { %3382 = vsyncadd [#allocation6], 4294930432 }
  0x18   :  { %3383 = dma.done.wait [#allocation9], 65536  }
  0x19   :  { %3384 = vsyncadd [#allocation9], 4294901760 }
  0x1a   :  { %3385 = dma.done.wait [#allocation12], 64  }
  0x1b   :  { %3386 = vsyncadd [#allocation12], 4294967232  ;;  %v209_v0 = vld [vmem:[#allocation7 + $0x1e0] sm:$0xff]  ;;  %s3165_s25 = sshll.u32 %s4827_s6, 4  ;;  %s3397_s27 = smov [#allocation13]   ;;  %s3166_s25 = int_to_ptr.hbm [resolvable:$true] %s3165_s25 }
  0x1c   :  { %v273_v1 = vld [vmem:[#allocation7 + $0x3e0] sm:$0xff]  ;;  %405 = vmatpush.msra.mxu0 %v209_v0  ;;  %v3468_v0 = vld [vmem:[#allocation2 + $0x8] sm:$0xff] }
  0x1d   :  { %v337_v2 = vld [vmem:[#allocation7 + $0x5e0] sm:$0xff]  ;;  %446 = vmatpush.msra.mxu1 %v273_v1  ;;  %v3470_v1 = vld [vmem:[#allocation2 + $0x10] sm:$0xff] }
  0x1e   :  { %v205_v3 = vld [vmem:[#allocation7 + $0x1c0] sm:$0xff]  ;;  %487 = vmatpush.msra.mxu2 %v337_v2 }
  0x1f   :  { %v269_v4 = vld [vmem:[#allocation7 + $0x3c0] sm:$0xff]  ;;  %406 = vmatpush.msra.mxu0 %v205_v3  ;;  %v338_v3 = vld [vmem:[#allocation7 + $0x5e8] sm:$0xff] }
  0x20   :  { %v333_v5 = vld [vmem:[#allocation7 + $0x5c0] sm:$0xff]  ;;  %447 = vmatpush.msra.mxu1 %v269_v4  ;;  %v3472_v4 = vld [vmem:[#allocation2 + $0x18] sm:$0xff] }
  0x21   :  { %v401_v6 = vld [vmem:[#allocation7 + $0x7e0] sm:$0xff]  ;;  %488 = vmatpush.msra.mxu2 %v333_v5  ;;  %v402_v5 = vld [vmem:[#allocation7 + $0x7e8] sm:$0xff] }
  0x22   :  { %v201_v7 = vld [vmem:[#allocation7 + $0x1a0] sm:$0xff]  ;;  %528 = vmatpush.msra.mxu3 %v401_v6  ;;  %v210_v6 = vld [vmem:[#allocation7 + $0x1e8] sm:$0xff] }
  0x23   :  { %v265_v8 = vld [vmem:[#allocation7 + $0x3a0] sm:$0xff]  ;;  %407 = vmatpush.msra.mxu0 %v201_v7  ;;  %v274_v7 = vld [vmem:[#allocation7 + $0x3e8] sm:$0xff] }
  0x24   :  { %v329_v9 = vld [vmem:[#allocation7 + $0x5a0] sm:$0xff]  ;;  %448 = vmatpush.msra.mxu1 %v265_v8  ;;  %v334_v8 = vld [vmem:[#allocation7 + $0x5c8] sm:$0xff] }
  0x25   :  { %v397_v10 = vld [vmem:[#allocation7 + $0x7c0] sm:$0xff]  ;;  %489 = vmatpush.msra.mxu2 %v329_v9  ;;  %v398_v9 = vld [vmem:[#allocation7 + $0x7c8] sm:$0xff] }
  0x26   :  { %v197_v11 = vld [vmem:[#allocation7 + $0x180] sm:$0xff]  ;;  %529 = vmatpush.msra.mxu3 %v397_v10  ;;  %v206_v10 = vld [vmem:[#allocation7 + $0x1c8] sm:$0xff] }
  0x27   :  { %v261_v12 = vld [vmem:[#allocation7 + $0x380] sm:$0xff]  ;;  %408 = vmatpush.msra.mxu0 %v197_v11  ;;  %v270_v11 = vld [vmem:[#allocation7 + $0x3c8] sm:$0xff] }
  0x28   :  { %v325_v13 = vld [vmem:[#allocation7 + $0x580] sm:$0xff]  ;;  %449 = vmatpush.msra.mxu1 %v261_v12  ;;  %v330_v12 = vld [vmem:[#allocation7 + $0x5a8] sm:$0xff] }
  0x29   :  { %v393_v14 = vld [vmem:[#allocation7 + $0x7a0] sm:$0xff]  ;;  %490 = vmatpush.msra.mxu2 %v325_v13  ;;  %v394_v13 = vld [vmem:[#allocation7 + $0x7a8] sm:$0xff] }
  0x2a   :  { %v193_v15 = vld [vmem:[#allocation7 + $0x160] sm:$0xff]  ;;  %530 = vmatpush.msra.mxu3 %v393_v14  ;;  %v202_v14 = vld [vmem:[#allocation7 + $0x1a8] sm:$0xff] }
  0x2b   :  { %v257_v16 = vld [vmem:[#allocation7 + $0x360] sm:$0xff]  ;;  %409 = vmatpush.msra.mxu0 %v193_v15 }
  0x2c   :  { %v321_v17 = vld [vmem:[#allocation7 + $0x560] sm:$0xff]  ;;  %450 = vmatpush.msra.mxu1 %v257_v16  ;;  %v3480_v16 = vld [vmem:[#allocation2 + $0x28] sm:$0xff] }
  0x2d   :  { %v389_v18 = vld [vmem:[#allocation7 + $0x780] sm:$0xff]  ;;  %491 = vmatpush.msra.mxu2 %v321_v17  ;;  %v3482_v17 = vld [vmem:[#allocation2 + $0x30] sm:$0xff] }
  0x2e   :  { %v189_v19 = vld [vmem:[#allocation7 + $0x140] sm:$0xff]  ;;  %531 = vmatpush.msra.mxu3 %v389_v18  ;;  %v266_v18 = vld [vmem:[#allocation7 + $0x3a8] sm:$0xff] }
  0x2f   :  { %v253_v20 = vld [vmem:[#allocation7 + $0x340] sm:$0xff]  ;;  %410 = vmatpush.msra.mxu0 %v189_v19  ;;  %v3484_v19 = vld [vmem:[#allocation2 + $0x38] sm:$0xff] }
  0x30   :  { %v317_v21 = vld [vmem:[#allocation7 + $0x540] sm:$0xff]  ;;  %451 = vmatpush.msra.mxu1 %v253_v20  ;;  %v326_v20 = vld [vmem:[#allocation7 + $0x588] sm:$0xff] }
  0x31   :  { %v385_v22 = vld [vmem:[#allocation7 + $0x760] sm:$0xff]  ;;  %492 = vmatpush.msra.mxu2 %v317_v21  ;;  %v390_v21 = vld [vmem:[#allocation7 + $0x788] sm:$0xff] }
  0x32   :  { %v185_v23 = vld [vmem:[#allocation7 + $0x120] sm:$0xff]  ;;  %532 = vmatpush.msra.mxu3 %v385_v22  ;;  %v198_v22 = vld [vmem:[#allocation7 + $0x188] sm:$0xff] }
  0x33   :  { %v249_v24 = vld [vmem:[#allocation7 + $0x320] sm:$0xff]  ;;  %411 = vmatpush.msra.mxu0 %v185_v23  ;;  %v262_v23 = vld [vmem:[#allocation7 + $0x388] sm:$0xff] }
  0x34   :  { %v313_v25 = vld [vmem:[#allocation7 + $0x520] sm:$0xff]  ;;  %452 = vmatpush.msra.mxu1 %v249_v24  ;;  %v322_v24 = vld [vmem:[#allocation7 + $0x568] sm:$0xff] }
  0x35   :  { %v381_v26 = vld [vmem:[#allocation7 + $0x740] sm:$0xff]  ;;  %493 = vmatpush.msra.mxu2 %v313_v25  ;;  %v386_v25 = vld [vmem:[#allocation7 + $0x768] sm:$0xff] }
  0x36   :  { %v181_v27 = vld [vmem:[#allocation7 + $0x100] sm:$0xff]  ;;  %533 = vmatpush.msra.mxu3 %v381_v26  ;;  %v194_v26 = vld [vmem:[#allocation7 + $0x168] sm:$0xff] }
  0x37   :  { %v245_v28 = vld [vmem:[#allocation7 + $0x300] sm:$0xff]  ;;  %412 = vmatpush.msra.mxu0 %v181_v27  ;;  %v258_v27 = vld [vmem:[#allocation7 + $0x368] sm:$0xff] }
  0x38   :  { %v309_v29 = vld [vmem:[#allocation7 + $0x500] sm:$0xff]  ;;  %453 = vmatpush.msra.mxu1 %v245_v28  ;;  %v318_v28 = vld [vmem:[#allocation7 + $0x548] sm:$0xff] }
  0x39   :  { %v377_v30 = vld [vmem:[#allocation7 + $0x720] sm:$0xff]  ;;  %494 = vmatpush.msra.mxu2 %v309_v29  ;;  %v382_v29 = vld [vmem:[#allocation7 + $0x748] sm:$0xff] }
  0x3a   :  { %v177_v31 = vld [vmem:[#allocation7 + $0xe0] sm:$0xff]  ;;  %534 = vmatpush.msra.mxu3 %v377_v30  ;;  %v190_v30 = vld [vmem:[#allocation7 + $0x148] sm:$0xff] }
  0x3b   :  { %v241_v32 = vld [vmem:[#allocation7 + $0x2e0] sm:$0xff]  ;;  %413 = vmatpush.msra.mxu0 %v177_v31 }
  0x3c   :  { %v305_v33 = vld [vmem:[#allocation7 + $0x4e0] sm:$0xff]  ;;  %454 = vmatpush.msra.mxu1 %v241_v32  ;;  %v3492_v32 = vld [vmem:[#allocation2 + $0x48] sm:$0xff] }
  0x3d   :  { %v373_v34 = vld [vmem:[#allocation7 + $0x700] sm:$0xff]  ;;  %495 = vmatpush.msra.mxu2 %v305_v33  ;;  %v3494_v33 = vld [vmem:[#allocation2 + $0x50] sm:$0xff] }
  0x3e   :  { %v173_v35 = vld [vmem:[#allocation7 + $0xc0] sm:$0xff]  ;;  %535 = vmatpush.msra.mxu3 %v373_v34  ;;  %v254_v34 = vld [vmem:[#allocation7 + $0x348] sm:$0xff] }
  0x3f   :  { %v237_v36 = vld [vmem:[#allocation7 + $0x2c0] sm:$0xff]  ;;  %414 = vmatpush.msra.mxu0 %v173_v35  ;;  %v3496_v35 = vld [vmem:[#allocation2 + $0x58] sm:$0xff] }
  0x40   :  { %v301_v37 = vld [vmem:[#allocation7 + $0x4c0] sm:$0xff]  ;;  %455 = vmatpush.msra.mxu1 %v237_v36  ;;  %v314_v36 = vld [vmem:[#allocation7 + $0x528] sm:$0xff] }
  0x41   :  { %v369_v38 = vld [vmem:[#allocation7 + $0x6e0] sm:$0xff]  ;;  %496 = vmatpush.msra.mxu2 %v301_v37  ;;  %v378_v37 = vld [vmem:[#allocation7 + $0x728] sm:$0xff] }
  0x42   :  { %v169_v39 = vld [vmem:[#allocation7 + $0xa0] sm:$0xff]  ;;  %536 = vmatpush.msra.mxu3 %v369_v38  ;;  %v186_v38 = vld [vmem:[#allocation7 + $0x128] sm:$0xff] }
  0x43   :  { %v233_v40 = vld [vmem:[#allocation7 + $0x2a0] sm:$0xff]  ;;  %415 = vmatpush.msra.mxu0 %v169_v39  ;;  %v250_v39 = vld [vmem:[#allocation7 + $0x328] sm:$0xff] }
  0x44   :  { %v297_v41 = vld [vmem:[#allocation7 + $0x4a0] sm:$0xff]  ;;  %456 = vmatpush.msra.mxu1 %v233_v40  ;;  %v310_v40 = vld [vmem:[#allocation7 + $0x508] sm:$0xff] }
  0x45   :  { %v365_v42 = vld [vmem:[#allocation7 + $0x6c0] sm:$0xff]  ;;  %497 = vmatpush.msra.mxu2 %v297_v41  ;;  %v374_v41 = vld [vmem:[#allocation7 + $0x708] sm:$0xff] }
  0x46   :  { %v165_v43 = vld [vmem:[#allocation7 + $0x80] sm:$0xff]  ;;  %537 = vmatpush.msra.mxu3 %v365_v42  ;;  %v182_v42 = vld [vmem:[#allocation7 + $0x108] sm:$0xff] }
  0x47   :  { %v229_v44 = vld [vmem:[#allocation7 + $0x280] sm:$0xff]  ;;  %416 = vmatpush.msra.mxu0 %v165_v43  ;;  %v246_v43 = vld [vmem:[#allocation7 + $0x308] sm:$0xff] }
  0x48   :  { %v293_v45 = vld [vmem:[#allocation7 + $0x480] sm:$0xff]  ;;  %457 = vmatpush.msra.mxu1 %v229_v44  ;;  %v306_v44 = vld [vmem:[#allocation7 + $0x4e8] sm:$0xff] }
  0x49   :  { %v361_v46 = vld [vmem:[#allocation7 + $0x6a0] sm:$0xff]  ;;  %498 = vmatpush.msra.mxu2 %v293_v45  ;;  %v370_v45 = vld [vmem:[#allocation7 + $0x6e8] sm:$0xff] }
  0x4a   :  { %v161_v47 = vld [vmem:[#allocation7 + $0x60] sm:$0xff]  ;;  %538 = vmatpush.msra.mxu3 %v361_v46  ;;  %v178_v46 = vld [vmem:[#allocation7 + $0xe8] sm:$0xff] }
  0x4b   :  { %v225_v48 = vld [vmem:[#allocation7 + $0x260] sm:$0xff]  ;;  %417 = vmatpush.msra.mxu0 %v161_v47 }
  0x4c   :  { %v289_v49 = vld [vmem:[#allocation7 + $0x460] sm:$0xff]  ;;  %458 = vmatpush.msra.mxu1 %v225_v48  ;;  %v3504_v48 = vld [vmem:[#allocation2 + $0x68] sm:$0xff] }
  0x4d   :  { %v357_v50 = vld [vmem:[#allocation7 + $0x680] sm:$0xff]  ;;  %499 = vmatpush.msra.mxu2 %v289_v49  ;;  %v3506_v49 = vld [vmem:[#allocation2 + $0x70] sm:$0xff] }
  0x4e   :  { %v157_v51 = vld [vmem:[#allocation7 + $0x40] sm:$0xff]  ;;  %539 = vmatpush.msra.mxu3 %v357_v50  ;;  %v242_v50 = vld [vmem:[#allocation7 + $0x2e8] sm:$0xff] }
  0x4f   :  { %v221_v52 = vld [vmem:[#allocation7 + $0x240] sm:$0xff]  ;;  %418 = vmatpush.msra.mxu0 %v157_v51  ;;  %v3508_v51 = vld [vmem:[#allocation2 + $0x78] sm:$0xff] }
  0x50   :  { %v285_v53 = vld [vmem:[#allocation7 + $0x440] sm:$0xff]  ;;  %459 = vmatpush.msra.mxu1 %v221_v52  ;;  %v302_v52 = vld [vmem:[#allocation7 + $0x4c8] sm:$0xff] }
  0x51   :  { %v353_v54 = vld [vmem:[#allocation7 + $0x660] sm:$0xff]  ;;  %500 = vmatpush.msra.mxu2 %v285_v53  ;;  %v366_v53 = vld [vmem:[#allocation7 + $0x6c8] sm:$0xff] }
  0x52   :  { %v153_v55 = vld [vmem:[#allocation7 + $0x20] sm:$0xff]  ;;  %540 = vmatpush.msra.mxu3 %v353_v54  ;;  %v174_v54 = vld [vmem:[#allocation7 + $0xc8] sm:$0xff] }
  0x53   :  { %v217_v56 = vld [vmem:[#allocation7 + $0x220] sm:$0xff]  ;;  %419 = vmatpush.msra.mxu0 %v153_v55  ;;  %v238_v55 = vld [vmem:[#allocation7 + $0x2c8] sm:$0xff] }
  0x54   :  { %v281_v57 = vld [vmem:[#allocation7 + $0x420] sm:$0xff]  ;;  %460 = vmatpush.msra.mxu1 %v217_v56  ;;  %v298_v56 = vld [vmem:[#allocation7 + $0x4a8] sm:$0xff] }
  0x55   :  { %v349_v58 = vld [vmem:[#allocation7 + $0x640] sm:$0xff]  ;;  %501 = vmatpush.msra.mxu2 %v281_v57  ;;  %v362_v57 = vld [vmem:[#allocation7 + $0x6a8] sm:$0xff] }
  0x56   :  { %v149_v59 = vld [vmem:[#allocation7] sm:$0xff]  ;;  %541 = vmatpush.msra.mxu3 %v349_v58  ;;  %v170_v58 = vld [vmem:[#allocation7 + $0xa8] sm:$0xff] }
  0x57   :  { %v213_v60 = vld [vmem:[#allocation7 + $0x200] sm:$0xff]  ;;  %420 = vmatpush.msra.mxu0 %v149_v59  ;;  %v234_v59 = vld [vmem:[#allocation7 + $0x2a8] sm:$0xff] }
  0x58   :  { %v277_v61 = vld [vmem:[#allocation7 + $0x400] sm:$0xff]  ;;  %461 = vmatpush.msra.mxu1 %v213_v60  ;;  %v294_v60 = vld [vmem:[#allocation7 + $0x488] sm:$0xff] }
  0x59   :  { %v345_v62 = vld [vmem:[#allocation7 + $0x620] sm:$0xff]  ;;  %502 = vmatpush.msra.mxu2 %v277_v61  ;;  %462 = vmatmul.f32.vlgmr.msra.gmra.mxu1 %v3468_v0  ;;  %v358_v61 = vld [vmem:[#allocation7 + $0x688] sm:$0xff] }
  0x5a   :  { %v3466_v63 = vld [vmem:[#allocation2] sm:$0xff]  ;;  %542 = vmatpush.msra.mxu3 %v345_v62  ;;  %503 = vmatmul.f32.vlgmr.msra.gmra.mxu2 %v3470_v1  ;;  %v166_v62 = vld [vmem:[#allocation7 + $0x88] sm:$0xff] }
  0x5b   :  { %v341_v2 = vld [vmem:[#allocation7 + $0x600] sm:$0xff]  ;;  %421 = vmatmul.f32.vlgmr.msra.gmra.mxu0 %v3466_v63  ;;  %651 = vmatpush.msrb.mxu2 %v338_v3  ;;  %v3516_v3 = vld [vmem:[#allocation2 + $0x88] sm:$0xff] }
  0x5c   :  { %543 = vmatpush.msra.mxu3 %v341_v2  ;;  %569 = vmatpush.msrb.mxu0 %v210_v6  ;;  %v3478_v15 = vld [vmem:[#allocation2 + $0x20] sm:$0xff]  ;;  %v230_v6 = vld [vmem:[#allocation7 + $0x288] sm:$0xff] }
  0x5d   :  { %544 = vmatmul.f32.vlgmr.msra.gmra.mxu3 %v3472_v4  ;;  %610 = vmatpush.msrb.mxu1 %v274_v7  ;;  %v3490_v31 = vld [vmem:[#allocation2 + $0x40] sm:$0xff]  ;;  %v3520_v7 = vld [vmem:[#allocation2 + $0x98] sm:$0xff] }
  0x5e   :  { %692 = vmatpush.msrb.mxu3 %v402_v5  ;;  %652 = vmatpush.msrb.mxu2 %v334_v8  ;;  %v3502_v47 = vld [vmem:[#allocation2 + $0x60] sm:$0xff]  ;;  %v3518_v5 = vld [vmem:[#allocation2 + $0x90] sm:$0xff]  ;;  %v290_v8 = vld [vmem:[#allocation7 + $0x468] sm:$0xff] }
  0x5f   :  { %570 = vmatpush.msrb.mxu0 %v206_v10  ;;  %611 = vmatpush.msrb.mxu1 %v270_v11  ;;  %v3514_v2 = vld [vmem:[#allocation2 + $0x80] sm:$0xff]  ;;  %v162_v10 = vld [vmem:[#allocation7 + $0x68] sm:$0xff] }
  0x60   :  { %693 = vmatpush.msrb.mxu3 %v398_v9  ;;  %653 = vmatpush.msrb.mxu2 %v330_v12  ;;  %v354_v9 = vld [vmem:[#allocation7 + $0x668] sm:$0xff] }
  0x61   :  { %571 = vmatpush.msrb.mxu0 %v202_v14  ;;  %465 = vmatmul.f32.gmra.mxu1 %v3480_v16  ;;  %v226_v11 = vld [vmem:[#allocation7 + $0x268] sm:$0xff] }
  0x62   :  { %694 = vmatpush.msrb.mxu3 %v394_v13  ;;  %506 = vmatmul.f32.gmra.mxu2 %v3482_v17  ;;  %v286_v12 = vld [vmem:[#allocation7 + $0x448] sm:$0xff] }
  0x63   :  { %424 = vmatmul.f32.gmra.mxu0 %v3478_v15  ;;  %612 = vmatpush.msrb.mxu1 %v266_v18  ;;  %v350_v13 = vld [vmem:[#allocation7 + $0x648] sm:$0xff] }
  0x64   :  { %654 = vmatpush.msrb.mxu2 %v326_v20  ;;  %695 = vmatpush.msrb.mxu3 %v390_v21  ;;  %v158_v14 = vld [vmem:[#allocation7 + $0x48] sm:$0xff] }
  0x65   :  { %547 = vmatmul.f32.gmra.mxu3 %v3484_v19  ;;  %572 = vmatpush.msrb.mxu0 %v198_v22  ;;  %v222_v18 = vld [vmem:[#allocation7 + $0x248] sm:$0xff] }
  0x66   :  { %613 = vmatpush.msrb.mxu1 %v262_v23  ;;  %655 = vmatpush.msrb.mxu2 %v322_v24  ;;  %v282_v20 = vld [vmem:[#allocation7 + $0x428] sm:$0xff]  ;;  %v3526_v23 = vld [vmem:[#allocation2 + $0xa0] sm:$0xff] }
  0x67   :  { %696 = vmatpush.msrb.mxu3 %v386_v25  ;;  %573 = vmatpush.msrb.mxu0 %v194_v26  ;;  %v346_v21 = vld [vmem:[#allocation7 + $0x628] sm:$0xff]  ;;  %v3530_v25 = vld [vmem:[#allocation2 + $0xb0] sm:$0xff] }
  0x68   :  { %614 = vmatpush.msrb.mxu1 %v258_v27  ;;  %656 = vmatpush.msrb.mxu2 %v318_v28  ;;  %v154_v22 = vld [vmem:[#allocation7 + $0x28] sm:$0xff]  ;;  %v3532_v27 = vld [vmem:[#allocation2 + $0xb8] sm:$0xff] }
  0x69   :  { %697 = vmatpush.msrb.mxu3 %v382_v29  ;;  %574 = vmatpush.msrb.mxu0 %v190_v30  ;;  %v3528_v24 = vld [vmem:[#allocation2 + $0xa8] sm:$0xff] }
  0x6a   :  { %468 = vmatmul.f32.gmra.mxu1 %v3492_v32  ;;  %509 = vmatmul.f32.gmra.mxu2 %v3494_v33  ;;  %v218_v26 = vld [vmem:[#allocation7 + $0x228] sm:$0xff] }
  0x6b   :  { %427 = vmatmul.f32.gmra.mxu0 %v3490_v31  ;;  %615 = vmatpush.msrb.mxu1 %v254_v34  ;;  %v278_v28 = vld [vmem:[#allocation7 + $0x408] sm:$0xff] }
  0x6c   :  { %657 = vmatpush.msrb.mxu2 %v314_v36  ;;  %698 = vmatpush.msrb.mxu3 %v378_v37  ;;  %v342_v29 = vld [vmem:[#allocation7 + $0x608] sm:$0xff]  ;;  %v339_v36 = vld [vmem:[#allocation7 + $0x5f0] sm:$0xff] }
  0x6d   :  { %550 = vmatmul.f32.gmra.mxu3 %v3496_v35  ;;  %575 = vmatpush.msrb.mxu0 %v186_v38  ;;  %v150_v30 = vld [vmem:[#allocation7 + $0x8] sm:$0xff]  ;;  %v403_v37 = vld [vmem:[#allocation7 + $0x7f0] sm:$0xff] }
  0x6e   :  { %616 = vmatpush.msrb.mxu1 %v250_v39  ;;  %658 = vmatpush.msrb.mxu2 %v310_v40  ;;  %v214_v34 = vld [vmem:[#allocation7 + $0x208] sm:$0xff]  ;;  %v211_v38 = vld [vmem:[#allocation7 + $0x1f0] sm:$0xff] }
  0x6f   :  { %699 = vmatpush.msrb.mxu3 %v374_v41  ;;  %576 = vmatpush.msrb.mxu0 %v182_v42  ;;  %v275_v39 = vld [vmem:[#allocation7 + $0x3f0] sm:$0xff] }
  0x70   :  { %617 = vmatpush.msrb.mxu1 %v246_v43  ;;  %659 = vmatpush.msrb.mxu2 %v306_v44  ;;  %v335_v40 = vld [vmem:[#allocation7 + $0x5d0] sm:$0xff]  ;;  %v3538_v43 = vld [vmem:[#allocation2 + $0xc0] sm:$0xff]  ;;  %v3540_v44 = vld [vmem:[#allocation2 + $0xc8] sm:$0xff] }
  0x71   :  { %700 = vmatpush.msrb.mxu3 %v370_v45  ;;  %577 = vmatpush.msrb.mxu0 %v178_v46  ;;  %v399_v41 = vld [vmem:[#allocation7 + $0x7d0] sm:$0xff] }
  0x72   :  { %471 = vmatmul.f32.gmra.mxu1 %v3504_v48  ;;  %512 = vmatmul.f32.gmra.mxu2 %v3506_v49  ;;  %v207_v42 = vld [vmem:[#allocation7 + $0x1d0] sm:$0xff] }
  0x73   :  { %430 = vmatmul.f32.gmra.mxu0 %v3502_v47  ;;  %618 = vmatpush.msrb.mxu1 %v242_v50  ;;  %v3542_v45 = vld [vmem:[#allocation2 + $0xd0] sm:$0xff]  ;;  %v3544_v50 = vld [vmem:[#allocation2 + $0xd8] sm:$0xff] }
  0x74   :  { %660 = vmatpush.msrb.mxu2 %v302_v52  ;;  %701 = vmatpush.msrb.mxu3 %v366_v53  ;;  %v271_v46 = vld [vmem:[#allocation7 + $0x3d0] sm:$0xff] }
  0x75   :  { %553 = vmatmul.f32.gmra.mxu3 %v3508_v51  ;;  %578 = vmatpush.msrb.mxu0 %v174_v54  ;;  %v331_v52 = vld [vmem:[#allocation7 + $0x5b0] sm:$0xff] }
  0x76   :  { %619 = vmatpush.msrb.mxu1 %v238_v55  ;;  %661 = vmatpush.msrb.mxu2 %v298_v56  ;;  %v395_v53 = vld [vmem:[#allocation7 + $0x7b0] sm:$0xff] }
  0x77   :  { %702 = vmatpush.msrb.mxu3 %v362_v57  ;;  %579 = vmatpush.msrb.mxu0 %v170_v58  ;;  %v203_v54 = vld [vmem:[#allocation7 + $0x1b0] sm:$0xff] }
  0x78   :  { %620 = vmatpush.msrb.mxu1 %v234_v59  ;;  %662 = vmatpush.msrb.mxu2 %v294_v60  ;;  %v267_v55 = vld [vmem:[#allocation7 + $0x3b0] sm:$0xff] }
  0x79   :  { %703 = vmatpush.msrb.mxu3 %v358_v61  ;;  %580 = vmatpush.msrb.mxu0 %v166_v62  ;;  %v327_v56 = vld [vmem:[#allocation7 + $0x590] sm:$0xff] }
  0x7a   :  { %474 = vmatmul.f32.gmra.mxu1 %v3516_v3  ;;  %515 = vmatmul.f32.gmra.mxu2 %v3518_v5  ;;  %v391_v57 = vld [vmem:[#allocation7 + $0x790] sm:$0xff] }
  0x7b   :  { %433 = vmatmul.f32.gmra.mxu0 %v3514_v2  ;;  %621 = vmatpush.msrb.mxu1 %v230_v6  ;;  %v199_v58 = vld [vmem:[#allocation7 + $0x190] sm:$0xff]  ;;  %v3550_v6 = vld [vmem:[#allocation2 + $0xe0] sm:$0xff] }
  0x7c   :  { %663 = vmatpush.msrb.mxu2 %v290_v8  ;;  %704 = vmatpush.msrb.mxu3 %v354_v9  ;;  %v263_v59 = vld [vmem:[#allocation7 + $0x390] sm:$0xff]  ;;  %v3552_v8 = vld [vmem:[#allocation2 + $0xe8] sm:$0xff] }
  0x7d   :  { %556 = vmatmul.f32.gmra.mxu3 %v3520_v7  ;;  %581 = vmatpush.msrb.mxu0 %v162_v10  ;;  %v323_v60 = vld [vmem:[#allocation7 + $0x570] sm:$0xff] }
  0x7e   :  { %622 = vmatpush.msrb.mxu1 %v226_v11  ;;  %664 = vmatpush.msrb.mxu2 %v286_v12  ;;  %v387_v61 = vld [vmem:[#allocation7 + $0x770] sm:$0xff]  ;;  %v3556_v11 = vld [vmem:[#allocation2 + $0xf8] sm:$0xff] }
  0x7f   :  { %705 = vmatpush.msrb.mxu3 %v350_v13  ;;  %582 = vmatpush.msrb.mxu0 %v158_v14  ;;  %v195_v62 = vld [vmem:[#allocation7 + $0x170] sm:$0xff] }
  0x80   :  { %623 = vmatpush.msrb.mxu1 %v222_v18  ;;  %665 = vmatpush.msrb.mxu2 %v282_v20  ;;  %v3554_v9 = vld [vmem:[#allocation2 + $0xf0] sm:$0xff] }
  0x81   :  { %706 = vmatpush.msrb.mxu3 %v346_v21  ;;  %583 = vmatpush.msrb.mxu0 %v154_v22  ;;  %v259_v10 = vld [vmem:[#allocation7 + $0x370] sm:$0xff] }
  0x82   :  { %477 = vmatmul.f32.gmra.mxu1 %v3528_v24  ;;  %518 = vmatmul.f32.gmra.mxu2 %v3530_v25  ;;  %v319_v12 = vld [vmem:[#allocation7 + $0x550] sm:$0xff] }
  0x83   :  { %436 = vmatmul.f32.gmra.mxu0 %v3526_v23  ;;  %624 = vmatpush.msrb.mxu1 %v218_v26  ;;  %v383_v13 = vld [vmem:[#allocation7 + $0x750] sm:$0xff] }
  0x84   :  { %666 = vmatpush.msrb.mxu2 %v278_v28  ;;  %707 = vmatpush.msrb.mxu3 %v342_v29  ;;  %v191_v14 = vld [vmem:[#allocation7 + $0x150] sm:$0xff] }
  0x85   :  { %559 = vmatmul.f32.gmra.mxu3 %v3532_v27  ;;  %584 = vmatpush.msrb.mxu0 %v150_v30  ;;  %v255_v18 = vld [vmem:[#allocation7 + $0x350] sm:$0xff] }
  0x86   :  { %625 = vmatpush.msrb.mxu1 %v214_v34  ;;  %815 = vmatpush.msra.mxu2 %v339_v36  ;;  %v315_v20 = vld [vmem:[#allocation7 + $0x530] sm:$0xff] }
  0x87   :  { %856 = vmatpush.msra.mxu3 %v403_v37  ;;  %733 = vmatpush.msra.mxu0 %v211_v38  ;;  %v379_v21 = vld [vmem:[#allocation7 + $0x730] sm:$0xff] }
  0x88   :  { %774 = vmatpush.msra.mxu1 %v275_v39  ;;  %816 = vmatpush.msra.mxu2 %v335_v40  ;;  %v187_v22 = vld [vmem:[#allocation7 + $0x130] sm:$0xff] }
  0x89   :  { %857 = vmatpush.msra.mxu3 %v399_v41  ;;  %734 = vmatpush.msra.mxu0 %v207_v42  ;;  %v251_v26 = vld [vmem:[#allocation7 + $0x330] sm:$0xff] }
  0x8a   :  { %480 = vmatmul.f32.gmra.mxu1 %v3540_v44  ;;  %521 = vmatmul.f32.gmra.mxu2 %v3542_v45  ;;  %v311_v28 = vld [vmem:[#allocation7 + $0x510] sm:$0xff] }
  0x8b   :  { %439 = vmatmul.f32.gmra.mxu0 %v3538_v43  ;;  %775 = vmatpush.msra.mxu1 %v271_v46  ;;  %v375_v29 = vld [vmem:[#allocation7 + $0x710] sm:$0xff] }
  0x8c   :  { %817 = vmatpush.msra.mxu2 %v331_v52  ;;  %858 = vmatpush.msra.mxu3 %v395_v53  ;;  %v183_v30 = vld [vmem:[#allocation7 + $0x110] sm:$0xff] }
  0x8d   :  { %562 = vmatmul.f32.gmra.mxu3 %v3544_v50  ;;  %735 = vmatpush.msra.mxu0 %v203_v54  ;;  %v247_v34 = vld [vmem:[#allocation7 + $0x310] sm:$0xff] }
  0x8e   :  { %776 = vmatpush.msra.mxu1 %v267_v55  ;;  %818 = vmatpush.msra.mxu2 %v327_v56  ;;  %v307_v36 = vld [vmem:[#allocation7 + $0x4f0] sm:$0xff] }
  0x8f   :  { %859 = vmatpush.msra.mxu3 %v391_v57  ;;  %736 = vmatpush.msra.mxu0 %v199_v58  ;;  %v371_v37 = vld [vmem:[#allocation7 + $0x6f0] sm:$0xff] }
  0x90   :  { %777 = vmatpush.msra.mxu1 %v263_v59  ;;  %819 = vmatpush.msra.mxu2 %v323_v60  ;;  %v179_v38 = vld [vmem:[#allocation7 + $0xf0] sm:$0xff] }
  0x91   :  { %860 = vmatpush.msra.mxu3 %v387_v61  ;;  %737 = vmatpush.msra.mxu0 %v195_v62  ;;  %v243_v39 = vld [vmem:[#allocation7 + $0x2f0] sm:$0xff] }
  0x92   :  { %483 = vmatmul.f32.gmra.mxu1 %v3552_v8  ;;  %524 = vmatmul.f32.gmra.mxu2 %v3554_v9  ;;  %v303_v40 = vld [vmem:[#allocation7 + $0x4d0] sm:$0xff] }
  0x93   :  { %442 = vmatmul.f32.gmra.mxu0 %v3550_v6  ;;  %778 = vmatpush.msra.mxu1 %v259_v10  ;;  %v367_v41 = vld [vmem:[#allocation7 + $0x6d0] sm:$0xff] }
  0x94   :  { %820 = vmatpush.msra.mxu2 %v319_v12  ;;  %861 = vmatpush.msra.mxu3 %v383_v13  ;;  %v175_v42 = vld [vmem:[#allocation7 + $0xd0] sm:$0xff] }
  0x95   :  { %565 = vmatmul.f32.gmra.mxu3 %v3556_v11  ;;  %738 = vmatpush.msra.mxu0 %v191_v14  ;;  %v239_v46 = vld [vmem:[#allocation7 + $0x2d0] sm:$0xff] }
  0x96   :  { %779 = vmatpush.msra.mxu1 %v255_v18  ;;  %821 = vmatpush.msra.mxu2 %v315_v20  ;;  %v299_v52 = vld [vmem:[#allocation7 + $0x4b0] sm:$0xff] }
  0x97   :  { %862 = vmatpush.msra.mxu3 %v379_v21  ;;  %739 = vmatpush.msra.mxu0 %v187_v22  ;;  %v363_v53 = vld [vmem:[#allocation7 + $0x6b0] sm:$0xff] }
  0x98   :  { %780 = vmatpush.msra.mxu1 %v251_v26  ;;  %822 = vmatpush.msra.mxu2 %v311_v28  ;;  %v171_v54 = vld [vmem:[#allocation7 + $0xb0] sm:$0xff] }
  0x99   :  { %863 = vmatpush.msra.mxu3 %v375_v29  ;;  %740 = vmatpush.msra.mxu0 %v183_v30  ;;  %v235_v55 = vld [vmem:[#allocation7 + $0x2b0] sm:$0xff] }
  0x9a   :  { %626 = vmatmul.f32.vlgmr.msrb.gmra.mxu1 %v3468_v0  ;;  %667 = vmatmul.f32.vlgmr.msrb.gmra.mxu2 %v3470_v1  ;;  %v295_v56 = vld [vmem:[#allocation7 + $0x490] sm:$0xff] }
  0x9b   :  { %585 = vmatmul.f32.vlgmr.msrb.gmra.mxu0 %v3466_v63  ;;  %781 = vmatpush.msra.mxu1 %v247_v34  ;;  %v359_v57 = vld [vmem:[#allocation7 + $0x690] sm:$0xff] }
  0x9c   :  { %823 = vmatpush.msra.mxu2 %v307_v36  ;;  %864 = vmatpush.msra.mxu3 %v371_v37  ;;  %v167_v58 = vld [vmem:[#allocation7 + $0x90] sm:$0xff]  ;;  %v340_v36 = vld [vmem:[#allocation7 + $0x5f8] sm:$0xff] }
  0x9d   :  { %708 = vmatmul.f32.vlgmr.msrb.gmra.mxu3 %v3472_v4  ;;  %741 = vmatpush.msra.mxu0 %v179_v38  ;;  %v231_v59 = vld [vmem:[#allocation7 + $0x290] sm:$0xff]  ;;  %v404_v37 = vld [vmem:[#allocation7 + $0x7f8] sm:$0xff] }
  0x9e   :  { %782 = vmatpush.msra.mxu1 %v243_v39  ;;  %824 = vmatpush.msra.mxu2 %v303_v40  ;;  %v291_v60 = vld [vmem:[#allocation7 + $0x470] sm:$0xff]  ;;  %v212_v38 = vld [vmem:[#allocation7 + $0x1f8] sm:$0xff] }
  0x9f   :  { %865 = vmatpush.msra.mxu3 %v367_v41  ;;  %742 = vmatpush.msra.mxu0 %v175_v42  ;;  %v355_v61 = vld [vmem:[#allocation7 + $0x670] sm:$0xff]  ;;  %v276_v39 = vld [vmem:[#allocation7 + $0x3f8] sm:$0xff] }
  0xa0   :  { %783 = vmatpush.msra.mxu1 %v239_v46  ;;  %825 = vmatpush.msra.mxu2 %v299_v52  ;;  %v163_v62 = vld [vmem:[#allocation7 + $0x70] sm:$0xff]  ;;  %v336_v40 = vld [vmem:[#allocation7 + $0x5d8] sm:$0xff] }
  0xa1   :  { %866 = vmatpush.msra.mxu3 %v363_v53  ;;  %743 = vmatpush.msra.mxu0 %v171_v54  ;;  %v227_v10 = vld [vmem:[#allocation7 + $0x270] sm:$0xff]  ;;  %v400_v41 = vld [vmem:[#allocation7 + $0x7d8] sm:$0xff] }
  0xa2   :  { %629 = vmatmul.f32.gmra.mxu1 %v3480_v16  ;;  %670 = vmatmul.f32.gmra.mxu2 %v3482_v17  ;;  %v287_v12 = vld [vmem:[#allocation7 + $0x450] sm:$0xff]  ;;  %v208_v42 = vld [vmem:[#allocation7 + $0x1d8] sm:$0xff] }
  0xa3   :  { %588 = vmatmul.f32.gmra.mxu0 %v3478_v15  ;;  %784 = vmatpush.msra.mxu1 %v235_v55  ;;  %v351_v13 = vld [vmem:[#allocation7 + $0x650] sm:$0xff]  ;;  %v272_v46 = vld [vmem:[#allocation7 + $0x3d8] sm:$0xff] }
  0xa4   :  { %826 = vmatpush.msra.mxu2 %v295_v56  ;;  %867 = vmatpush.msra.mxu3 %v359_v57  ;;  %v159_v14 = vld [vmem:[#allocation7 + $0x50] sm:$0xff]  ;;  %v332_v52 = vld [vmem:[#allocation7 + $0x5b8] sm:$0xff] }
  0xa5   :  { %711 = vmatmul.f32.gmra.mxu3 %v3484_v19  ;;  %744 = vmatpush.msra.mxu0 %v167_v58  ;;  %v223_v18 = vld [vmem:[#allocation7 + $0x250] sm:$0xff]  ;;  %v396_v53 = vld [vmem:[#allocation7 + $0x7b8] sm:$0xff] }
  0xa6   :  { %785 = vmatpush.msra.mxu1 %v231_v59  ;;  %827 = vmatpush.msra.mxu2 %v291_v60  ;;  %v283_v20 = vld [vmem:[#allocation7 + $0x430] sm:$0xff]  ;;  %v204_v54 = vld [vmem:[#allocation7 + $0x1b8] sm:$0xff] }
  0xa7   :  { %868 = vmatpush.msra.mxu3 %v355_v61  ;;  %745 = vmatpush.msra.mxu0 %v163_v62  ;;  %v347_v21 = vld [vmem:[#allocation7 + $0x630] sm:$0xff]  ;;  %v268_v55 = vld [vmem:[#allocation7 + $0x3b8] sm:$0xff] }
  0xa8   :  { %786 = vmatpush.msra.mxu1 %v227_v10  ;;  %828 = vmatpush.msra.mxu2 %v287_v12  ;;  %v155_v22 = vld [vmem:[#allocation7 + $0x30] sm:$0xff]  ;;  %v328_v56 = vld [vmem:[#allocation7 + $0x598] sm:$0xff] }
  0xa9   :  { %869 = vmatpush.msra.mxu3 %v351_v13  ;;  %746 = vmatpush.msra.mxu0 %v159_v14  ;;  %v219_v26 = vld [vmem:[#allocation7 + $0x230] sm:$0xff]  ;;  %v392_v57 = vld [vmem:[#allocation7 + $0x798] sm:$0xff] }
  0xaa   :  { %632 = vmatmul.f32.gmra.mxu1 %v3492_v32  ;;  %673 = vmatmul.f32.gmra.mxu2 %v3494_v33  ;;  %v279_v28 = vld [vmem:[#allocation7 + $0x410] sm:$0xff]  ;;  %v200_v58 = vld [vmem:[#allocation7 + $0x198] sm:$0xff] }
  0xab   :  { %591 = vmatmul.f32.gmra.mxu0 %v3490_v31  ;;  %787 = vmatpush.msra.mxu1 %v223_v18  ;;  %v343_v29 = vld [vmem:[#allocation7 + $0x610] sm:$0xff]  ;;  %v264_v59 = vld [vmem:[#allocation7 + $0x398] sm:$0xff] }
  0xac   :  { %829 = vmatpush.msra.mxu2 %v283_v20  ;;  %870 = vmatpush.msra.mxu3 %v347_v21  ;;  %v151_v30 = vld [vmem:[#allocation7 + $0x10] sm:$0xff]  ;;  %v324_v60 = vld [vmem:[#allocation7 + $0x578] sm:$0xff] }
  0xad   :  { %714 = vmatmul.f32.gmra.mxu3 %v3496_v35  ;;  %747 = vmatpush.msra.mxu0 %v155_v22  ;;  %v215_v34 = vld [vmem:[#allocation7 + $0x210] sm:$0xff]  ;;  %v388_v61 = vld [vmem:[#allocation7 + $0x778] sm:$0xff] }
  0xae   :  { %788 = vmatpush.msra.mxu1 %v219_v26  ;;  %830 = vmatpush.msra.mxu2 %v279_v28  ;;  %v196_v62 = vld [vmem:[#allocation7 + $0x178] sm:$0xff] }
  0xaf   :  { %871 = vmatpush.msra.mxu3 %v343_v29  ;;  %748 = vmatpush.msra.mxu0 %v151_v30  ;;  %v260_v10 = vld [vmem:[#allocation7 + $0x378] sm:$0xff] }
  0xb0   :  { %789 = vmatpush.msra.mxu1 %v215_v34  ;;  %979 = vmatpush.msrb.mxu2 %v340_v36  ;;  %v320_v12 = vld [vmem:[#allocation7 + $0x558] sm:$0xff] }
  0xb1   :  { %1020 = vmatpush.msrb.mxu3 %v404_v37  ;;  %897 = vmatpush.msrb.mxu0 %v212_v38  ;;  %v384_v13 = vld [vmem:[#allocation7 + $0x758] sm:$0xff] }
  0xb2   :  { %635 = vmatmul.f32.gmra.mxu1 %v3504_v48  ;;  %676 = vmatmul.f32.gmra.mxu2 %v3506_v49  ;;  %v192_v14 = vld [vmem:[#allocation7 + $0x158] sm:$0xff] }
  0xb3   :  { %594 = vmatmul.f32.gmra.mxu0 %v3502_v47  ;;  %938 = vmatpush.msrb.mxu1 %v276_v39  ;;  %v256_v18 = vld [vmem:[#allocation7 + $0x358] sm:$0xff] }
  0xb4   :  { %980 = vmatpush.msrb.mxu2 %v336_v40  ;;  %898 = vmatpush.msrb.mxu0 %v208_v42  ;;  %v316_v20 = vld [vmem:[#allocation7 + $0x538] sm:$0xff] }
  0xb5   :  { %717 = vmatmul.f32.gmra.mxu3 %v3508_v51  ;;  %939 = vmatpush.msrb.mxu1 %v272_v46  ;;  %v380_v21 = vld [vmem:[#allocation7 + $0x738] sm:$0xff] }
  0xb6   :  { %1021 = vmatpush.msrb.mxu3 %v400_v41  ;;  %981 = vmatpush.msrb.mxu2 %v332_v52  ;;  %v188_v28 = vld [vmem:[#allocation7 + $0x138] sm:$0xff] }
  0xb7   :  { %899 = vmatpush.msrb.mxu0 %v204_v54  ;;  %940 = vmatpush.msrb.mxu1 %v268_v55  ;;  %v252_v29 = vld [vmem:[#allocation7 + $0x338] sm:$0xff] }
  0xb8   :  { %1022 = vmatpush.msrb.mxu3 %v396_v53  ;;  %982 = vmatpush.msrb.mxu2 %v328_v56  ;;  %v312_v30 = vld [vmem:[#allocation7 + $0x518] sm:$0xff] }
  0xb9   :  { %900 = vmatpush.msrb.mxu0 %v200_v58  ;;  %941 = vmatpush.msrb.mxu1 %v264_v59  ;;  %v376_v36 = vld [vmem:[#allocation7 + $0x718] sm:$0xff] }
  0xba   :  { %638 = vmatmul.f32.gmra.mxu1 %v3516_v3  ;;  %679 = vmatmul.f32.gmra.mxu2 %v3518_v5  ;;  %v184_v37 = vld [vmem:[#allocation7 + $0x118] sm:$0xff] }
  0xbb   :  { %597 = vmatmul.f32.gmra.mxu0 %v3514_v2  ;;  %1023 = vmatpush.msrb.mxu3 %v392_v57  ;;  %v248_v38 = vld [vmem:[#allocation7 + $0x318] sm:$0xff] }
  0xbc   :  { %983 = vmatpush.msrb.mxu2 %v324_v60  ;;  %901 = vmatpush.msrb.mxu0 %v196_v62  ;;  %v308_v39 = vld [vmem:[#allocation7 + $0x4f8] sm:$0xff] }
  0xbd   :  { %720 = vmatmul.f32.gmra.mxu3 %v3520_v7  ;;  %942 = vmatpush.msrb.mxu1 %v260_v10  ;;  %v372_v40 = vld [vmem:[#allocation7 + $0x6f8] sm:$0xff] }
  0xbe   :  { %1024 = vmatpush.msrb.mxu3 %v388_v61  ;;  %984 = vmatpush.msrb.mxu2 %v320_v12  ;;  %v244_v52 = vld [vmem:[#allocation7 + $0x2f8] sm:$0xff] }
  0xbf   :  { %902 = vmatpush.msrb.mxu0 %v192_v14  ;;  %943 = vmatpush.msrb.mxu1 %v256_v18  ;;  %v304_v53 = vld [vmem:[#allocation7 + $0x4d8] sm:$0xff] }
  0xc0   :  { %1025 = vmatpush.msrb.mxu3 %v384_v13  ;;  %985 = vmatpush.msrb.mxu2 %v316_v20  ;;  %v368_v55 = vld [vmem:[#allocation7 + $0x6d8] sm:$0xff] }
  0xc1   :  { %903 = vmatpush.msrb.mxu0 %v188_v28  ;;  %944 = vmatpush.msrb.mxu1 %v252_v29  ;;  %v176_v56 = vld [vmem:[#allocation7 + $0xd8] sm:$0xff] }
  0xc2   :  { %641 = vmatmul.f32.gmra.mxu1 %v3528_v24  ;;  %682 = vmatmul.f32.gmra.mxu2 %v3530_v25  ;;  %v240_v57 = vld [vmem:[#allocation7 + $0x2d8] sm:$0xff] }
  0xc3   :  { %600 = vmatmul.f32.gmra.mxu0 %v3526_v23  ;;  %1026 = vmatpush.msrb.mxu3 %v380_v21  ;;  %v300_v58 = vld [vmem:[#allocation7 + $0x4b8] sm:$0xff] }
  0xc4   :  { %986 = vmatpush.msrb.mxu2 %v312_v30  ;;  %904 = vmatpush.msrb.mxu0 %v184_v37  ;;  %v364_v59 = vld [vmem:[#allocation7 + $0x6b8] sm:$0xff] }
  0xc5   :  { %723 = vmatmul.f32.gmra.mxu3 %v3532_v27  ;;  %945 = vmatpush.msrb.mxu1 %v248_v38  ;;  %v236_v10 = vld [vmem:[#allocation7 + $0x2b8] sm:$0xff] }
  0xc6   :  { %1027 = vmatpush.msrb.mxu3 %v376_v36  ;;  %987 = vmatpush.msrb.mxu2 %v308_v39  ;;  %v296_v12 = vld [vmem:[#allocation7 + $0x498] sm:$0xff] }
  0xc7   :  { %946 = vmatpush.msrb.mxu1 %v244_v52  ;;  %v360_v14 = vld [vmem:[#allocation7 + $0x698] sm:$0xff] }
  0xc8   :  { %1028 = vmatpush.msrb.mxu3 %v372_v40  ;;  %988 = vmatpush.msrb.mxu2 %v304_v53  ;;  %v168_v18 = vld [vmem:[#allocation7 + $0x98] sm:$0xff] }
  0xc9   :  { %947 = vmatpush.msrb.mxu1 %v240_v57  ;;  %v232_v20 = vld [vmem:[#allocation7 + $0x298] sm:$0xff] }
  0xca   :  { %644 = vmatmul.f32.gmra.mxu1 %v3540_v44  ;;  %685 = vmatmul.f32.gmra.mxu2 %v3542_v45  ;;  %v292_v21 = vld [vmem:[#allocation7 + $0x478] sm:$0xff] }
  0xcb   :  { %603 = vmatmul.f32.gmra.mxu0 %v3538_v43  ;;  %1029 = vmatpush.msrb.mxu3 %v368_v55  ;;  %v228_v30 = vld [vmem:[#allocation7 + $0x278] sm:$0xff] }
  0xcc   :  { %989 = vmatpush.msrb.mxu2 %v300_v58  ;;  %948 = vmatpush.msrb.mxu1 %v236_v10  ;;  %v352_v37 = vld [vmem:[#allocation7 + $0x658] sm:$0xff] }
  0xcd   :  { %726 = vmatmul.f32.gmra.mxu3 %v3544_v50  ;;  %v160_v38 = vld [vmem:[#allocation7 + $0x58] sm:$0xff] }
  0xce   :  { %1030 = vmatpush.msrb.mxu3 %v364_v59  ;;  %990 = vmatpush.msrb.mxu2 %v296_v12  ;;  %v224_v39 = vld [vmem:[#allocation7 + $0x258] sm:$0xff] }
  0xcf   :  { %949 = vmatpush.msrb.mxu1 %v232_v20  ;;  %v284_v40 = vld [vmem:[#allocation7 + $0x438] sm:$0xff]  ;;  %v3190_v20 = vld [vmem:[#allocation2] sm:$0xff] }
  0xd0   :  { %1031 = vmatpush.msrb.mxu3 %v360_v14  ;;  %991 = vmatpush.msrb.mxu2 %v292_v21  ;;  %v280_v52 = vld [vmem:[#allocation7 + $0x418] sm:$0xff]  ;;  %v3191_v21 = vld [vmem:[#allocation2 + $0x8] sm:$0xff] }
  0xd1   :  { %950 = vmatpush.msrb.mxu1 %v228_v30  ;;  %v344_v55 = vld [vmem:[#allocation7 + $0x618] sm:$0xff]  ;;  %v1209_v30 = vld [vmem:[#allocation8 + $0x3a0] sm:$0xff] }
  0xd2   :  { %647 = vmatmul.f32.gmra.mxu1 %v3552_v8  ;;  %688 = vmatmul.f32.gmra.mxu2 %v3554_v9 }
  0xd3   :  { %606 = vmatmul.f32.gmra.mxu0 %v3550_v6  ;;  %951 = vmatpush.msrb.mxu1 %v224_v39  ;;  %v3196_v39 = vld [vmem:[#allocation2 + $0x30] sm:$0xff] }
  0xd5   :  { %729 = vmatmul.f32.gmra.mxu3 %v3556_v11 }
  0xd6   :  { %v463_v26 = vpop.f32.mrf.mxu1 }
  0xd8   :  { %v422_v22 = vpop.f32.mrf.mxu0 }
  0xd9   :  { %v464_v34 = vadd.f32 %v463_v26, %v422_v22  ;;  %v356_v22 = vld [vmem:[#allocation7 + $0x678] sm:$0xff] }
  0xda   :  { %790 = vmatmul.f32.vlgmr.msra.gmra.mxu1 %v3468_v0  ;;  %831 = vmatmul.f32.vlgmr.msra.gmra.mxu2 %v3470_v1  ;;  %v180_v0 = vld [vmem:[#allocation7 + $0xf8] sm:$0xff] }
  0xdb   :  { %749 = vmatmul.f32.vlgmr.msra.gmra.mxu0 %v3466_v63  ;;  %1032 = vmatpush.msrb.mxu3 %v356_v22  ;;  %v1217_v22 = vld [vmem:[#allocation8 + $0x3e0] sm:$0xff] }
  0xdc   :  { %905 = vmatpush.msrb.mxu0 %v180_v0  ;;  %v220_v0 = vld [vmem:[#allocation7 + $0x238] sm:$0xff] }
  0xdd   :  { %872 = vmatmul.f32.vlgmr.msra.gmra.mxu3 %v3472_v4  ;;  %v504_v41 = vpop.f32.mrf.mxu2  ;;  %952 = vmatpush.msrb.mxu1 %v220_v0 }
  0xde   :  { %v505_v42 = vadd.f32 %v504_v41, %v464_v34  ;;  %v466_v63 = vpop.f32.mrf.mxu1  ;;  %906 = vmatpush.msrb.mxu0 %v176_v56  ;;  %v288_v34 = vld [vmem:[#allocation7 + $0x458] sm:$0xff]  ;;  %1033 = vmatpush.msrb.mxu3 %v352_v37  ;;  %v3194_v37 = vld [vmem:[#allocation2 + $0x20] sm:$0xff] }
  0xdf   :  { %992 = vmatpush.msrb.mxu2 %v288_v34  ;;  %v348_v41 = vld [vmem:[#allocation7 + $0x638] sm:$0xff] }
  0xe0   :  { %v425_v46 = vpop.f32.mrf.mxu0  ;;  %v545_v1 = vpop.f32.mrf.mxu3  ;;  %1034 = vmatpush.msrb.mxu3 %v348_v41  ;;  %v1201_v41 = vld [vmem:[#allocation8 + $0x360] sm:$0xff] }
  0xe1   :  { %v3598_v54 = vadd.f32 %v545_v1, %v505_v42  ;;  %v467_v4 = vadd.f32 %v466_v63, %v425_v46  ;;  %993 = vmatpush.msrb.mxu2 %v284_v40  ;;  %v216_v1 = vld [vmem:[#allocation7 + $0x218] sm:$0xff]  ;;  %v1137_v40 = vld [vmem:[#allocation8 + $0x160] sm:$0xff] }
  0xe2   :  { %793 = vmatmul.f32.gmra.mxu1 %v3480_v16  ;;  %834 = vmatmul.f32.gmra.mxu2 %v3482_v17  ;;  %v172_v16 = vld [vmem:[#allocation7 + $0xb8] sm:$0xff] }
  0xe3   :  { %752 = vmatmul.f32.gmra.mxu0 %v3478_v15  ;;  %994 = vmatpush.msrb.mxu2 %v280_v52 }
  0xe4   :  { %907 = vmatpush.msrb.mxu0 %v172_v16  ;;  %953 = vmatpush.msrb.mxu1 %v216_v1 }
  0xe5   :  { %875 = vmatmul.f32.gmra.mxu3 %v3484_v19  ;;  %v507_v60 = vpop.f32.mrf.mxu2 }
  0xe6   :  { %v508_v61 = vadd.f32 %v507_v60, %v467_v4  ;;  %908 = vmatpush.msrb.mxu0 %v168_v18  ;;  %1035 = vmatpush.msrb.mxu3 %v344_v55  ;;  %v1125_v55 = vld [vmem:[#allocation8 + $0x100] sm:$0xff] }
  0xe7   :  { %v469_v15 = vpop.f32.mrf.mxu1  ;;  %1399 = vmatpush.msra.mxu1 %v1217_v22  ;;  %v1257_v22 = vld [vmem:[#allocation8 + $0x520] sm:$0xff] }
  0xe8   :  { %v428_v62 = vpop.f32.mrf.mxu0  ;;  %v548_v17 = vpop.f32.mrf.mxu3 }
  0xe9   :  { %v3604_v13 = vadd.f32 %v548_v17, %v508_v61  ;;  %v470_v19 = vadd.f32 %v469_v15, %v428_v62 }
  0xea   :  { %796 = vmatmul.f32.gmra.mxu1 %v3492_v32  ;;  %837 = vmatmul.f32.gmra.mxu2 %v3494_v33  ;;  %v164_v32 = vld [vmem:[#allocation7 + $0x78] sm:$0xff] }
  0xeb   :  { %755 = vmatmul.f32.gmra.mxu0 %v3490_v31 }
  0xec   :  { %909 = vmatpush.msrb.mxu0 %v164_v32  ;;  %v1145_v32 = vld [vmem:[#allocation8 + $0x1a0] sm:$0xff] }
  0xed   :  { %878 = vmatmul.f32.gmra.mxu3 %v3496_v35  ;;  %v510_v26 = vpop.f32.mrf.mxu2 }
  0xee   :  { %v511_v28 = vadd.f32 %v510_v26, %v470_v19  ;;  %910 = vmatpush.msrb.mxu0 %v160_v38  ;;  %v1213_v26 = vld [vmem:[#allocation8 + $0x3c0] sm:$0xff]  ;;  %v3195_v38 = vld [vmem:[#allocation2 + $0x28] sm:$0xff] }
  0xef   :  { %v472_v31 = vpop.f32.mrf.mxu1  ;;  %1400 = vmatpush.msra.mxu1 %v1213_v26 }
  0xf0   :  { %v431_v29 = vpop.f32.mrf.mxu0  ;;  %v551_v33 = vpop.f32.mrf.mxu3 }
  0xf1   :  { %v3610_v36 = vadd.f32 %v551_v33, %v511_v28  ;;  %v473_v35 = vadd.f32 %v472_v31, %v431_v29  ;;  %1401 = vmatpush.msra.mxu1 %v1209_v30  ;;  %v1141_v33 = vld [vmem:[#allocation8 + $0x180] sm:$0xff] }
  0xf2   :  { %799 = vmatmul.f32.gmra.mxu1 %v3504_v48  ;;  %840 = vmatmul.f32.gmra.mxu2 %v3506_v49  ;;  %v156_v48 = vld [vmem:[#allocation7 + $0x38] sm:$0xff]  ;;  %v1101_v30 = vld [vmem:[#allocation8 + $0x40] sm:$0xff] }
  0xf3   :  { %758 = vmatmul.f32.gmra.mxu0 %v3502_v47 }
  0xf4   :  { %911 = vmatpush.msrb.mxu0 %v156_v48 }
  0xf5   :  { %881 = vmatmul.f32.gmra.mxu3 %v3508_v51  ;;  %v513_v42 = vpop.f32.mrf.mxu2  ;;  %v152_v51 = vld [vmem:[#allocation7 + $0x18] sm:$0xff] }
  0xf6   :  { %v514_v46 = vadd.f32 %v513_v42, %v473_v35  ;;  %912 = vmatpush.msrb.mxu0 %v152_v51  ;;  %v1205_v35 = vld [vmem:[#allocation8 + $0x380] sm:$0xff]  ;;  %v3197_v42 = vld [vmem:[#allocation2 + $0x38] sm:$0xff] }
  0xf7   :  { %v475_v47 = vpop.f32.mrf.mxu1  ;;  %1402 = vmatpush.msra.mxu1 %v1205_v35  ;;  %v1277_v51 = vld [vmem:[#allocation8 + $0x5c0] sm:$0xff] }
  0xf8   :  { %v434_v63 = vpop.f32.mrf.mxu0  ;;  %v554_v49 = vpop.f32.mrf.mxu3 }
  0xf9   :  { %v3616_v53 = vadd.f32 %v554_v49, %v514_v46  ;;  %v476_v4 = vadd.f32 %v475_v47, %v434_v63  ;;  %v1133_v46 = vld [vmem:[#allocation8 + $0x140] sm:$0xff]  ;;  %1403 = vmatpush.msra.mxu1 %v1201_v41  ;;  %v3207_v41 = vld [vmem:[#allocation2 + $0x88] sm:$0xff] }
  0xfa   :  { %802 = vmatmul.f32.gmra.mxu1 %v3516_v3  ;;  %843 = vmatmul.f32.gmra.mxu2 %v3518_v5  ;;  %v1197_v63 = vld [vmem:[#allocation8 + $0x340] sm:$0xff] }
  0xfb   :  { %761 = vmatmul.f32.gmra.mxu0 %v3514_v2  ;;  %v1281_v47 = vld [vmem:[#allocation8 + $0x5e0] sm:$0xff]  ;;  %1404 = vmatpush.msra.mxu1 %v1197_v63  ;;  %v3208_v63 = vld [vmem:[#allocation2 + $0x90] sm:$0xff] }
  0xfc   :  { %1440 = vmatpush.msra.mxu2 %v1281_v47  ;;  %v1129_v49 = vld [vmem:[#allocation8 + $0x120] sm:$0xff] }
  0xfd   :  { %884 = vmatmul.f32.gmra.mxu3 %v3520_v7  ;;  %v516_v56 = vpop.f32.mrf.mxu2  ;;  %v1245_v47 = vld [vmem:[#allocation8 + $0x4c0] sm:$0xff] }
  0xfe   :  { %v517_v57 = vadd.f32 %v516_v56, %v476_v4  ;;  %v1193_v4 = vld [vmem:[#allocation8 + $0x320] sm:$0xff]  ;;  %1441 = vmatpush.msra.mxu2 %v1277_v51 }
  0xff   :  { %v478_v59 = vpop.f32.mrf.mxu1  ;;  %v3198_v56 = vld [vmem:[#allocation2 + $0x40] sm:$0xff]  ;;  %1405 = vmatpush.msra.mxu1 %v1193_v4 }
 0x100   :  { %v437_v58 = vpop.f32.mrf.mxu0  ;;  %v557_v60 = vpop.f32.mrf.mxu3  ;;  %v1093_v51 = vld [vmem:[#allocation8] sm:$0xff] }
 0x101   :  { %v3622_v61 = vadd.f32 %v557_v60, %v517_v57  ;;  %v479_v2 = vadd.f32 %v478_v59, %v437_v58  ;;  %v3199_v57 = vld [vmem:[#allocation2 + $0x48] sm:$0xff]  ;;  %v1189_v58 = vld [vmem:[#allocation8 + $0x300] sm:$0xff]  ;;  %v3200_v60 = vld [vmem:[#allocation2 + $0x50] sm:$0xff] }
 0x102   :  { %805 = vmatmul.f32.gmra.mxu1 %v3528_v24  ;;  %846 = vmatmul.f32.gmra.mxu2 %v3530_v25  ;;  %v1273_v59 = vld [vmem:[#allocation8 + $0x5a0] sm:$0xff] }
 0x103   :  { %4857 = vst [vmem:[#allocation19_spill] sm:$0xff] %v3622_v61  ;;  %764 = vmatmul.f32.gmra.mxu0 %v3526_v23  ;;  %1406 = vmatpush.msra.mxu1 %v1189_v58  ;;  %v1157_v4 = vld [vmem:[#allocation8 + $0x200] sm:$0xff] }
 0x104   :  { %1442 = vmatpush.msra.mxu2 %v1273_v59 }
 0x105   :  { %887 = vmatmul.f32.gmra.mxu3 %v3532_v27  ;;  %v519_v3 = vpop.f32.mrf.mxu2 }
 0x106   :  { %v520_v5 = vadd.f32 %v519_v3, %v479_v2  ;;  %v1121_v2 = vld [vmem:[#allocation8 + $0xe0] sm:$0xff]  ;;  %v3201_v3 = vld [vmem:[#allocation2 + $0x58] sm:$0xff] }
 0x107   :  { %v481_v62 = vpop.f32.mrf.mxu1 }
 0x108   :  { %v440_v7 = vpop.f32.mrf.mxu0  ;;  %v560_v15 = vpop.f32.mrf.mxu3 }
 0x109   :  { %v3628_v16 = vadd.f32 %v560_v15, %v520_v5  ;;  %v482_v10 = vadd.f32 %v481_v62, %v440_v7  ;;  %v1185_v5 = vld [vmem:[#allocation8 + $0x2e0] sm:$0xff] }
 0x10a   :  { %808 = vmatmul.f32.gmra.mxu1 %v3540_v44  ;;  %849 = vmatmul.f32.gmra.mxu2 %v3542_v45  ;;  %v1269_v7 = vld [vmem:[#allocation8 + $0x580] sm:$0xff] }
 0x10b   :  { %4858 = vst [vmem:[#allocation20_spill] sm:$0xff] %v3628_v16  ;;  %767 = vmatmul.f32.gmra.mxu0 %v3538_v43  ;;  %v1117_v62 = vld [vmem:[#allocation8 + $0xc0] sm:$0xff]  ;;  %1407 = vmatpush.msra.mxu1 %v1185_v5  ;;  %v3212_v5 = vld [vmem:[#allocation2 + $0xb0] sm:$0xff] }
 0x10c   :  { %1443 = vmatpush.msra.mxu2 %v1269_v7  ;;  %v1233_v7 = vld [vmem:[#allocation8 + $0x460] sm:$0xff] }
 0x10d   :  { %890 = vmatmul.f32.gmra.mxu3 %v3544_v50  ;;  %v522_v23 = vpop.f32.mrf.mxu2 }
 0x10e   :  { %v523_v24 = vadd.f32 %v522_v23, %v482_v10  ;;  %v1181_v10 = vld [vmem:[#allocation8 + $0x2c0] sm:$0xff] }
 0x10f   :  { %v484_v27 = vpop.f32.mrf.mxu1  ;;  %v1265_v23 = vld [vmem:[#allocation8 + $0x560] sm:$0xff]  ;;  %1408 = vmatpush.msra.mxu1 %v1181_v10 }
 0x110   :  { %v443_v25 = vpop.f32.mrf.mxu0  ;;  %v563_v12 = vpop.f32.mrf.mxu3  ;;  %1444 = vmatpush.msra.mxu2 %v1265_v23  ;;  %v1229_v10 = vld [vmem:[#allocation8 + $0x440] sm:$0xff] }
 0x111   :  { %v3634_v17 = vadd.f32 %v563_v12, %v523_v24  ;;  %v485_v19 = vadd.f32 %v484_v27, %v443_v25  ;;  %v1113_v12 = vld [vmem:[#allocation8 + $0xa0] sm:$0xff] }
 0x112   :  { %811 = vmatmul.f32.gmra.mxu1 %v3552_v8  ;;  %852 = vmatmul.f32.gmra.mxu2 %v3554_v9  ;;  %v1153_v8 = vld [vmem:[#allocation8 + $0x1e0] sm:$0xff]  ;;  %v3193_v9 = vld [vmem:[#allocation2 + $0x18] sm:$0xff] }
 0x113   :  { %4859 = vst [vmem:[#allocation21_spill] sm:$0xff] %v3634_v17  ;;  %770 = vmatmul.f32.gmra.mxu0 %v3550_v6  ;;  %v3192_v6 = vld [vmem:[#allocation2 + $0x10] sm:$0xff]  ;;  %v1345_v23 = vld [vmem:[#allocation8 + $0x7e0] sm:$0xff] }
 0x114   :  { %1358 = vmatpush.msra.mxu0 %v1153_v8  ;;  %v3205_v8 = vld [vmem:[#allocation2 + $0x78] sm:$0xff]  ;;  %1481 = vmatpush.msra.mxu3 %v1345_v23  ;;  %v1150_v23 = vld [vmem:[#allocation8 + $0x1c8] sm:$0xff] }
 0x115   :  { %893 = vmatmul.f32.gmra.mxu3 %v3556_v11  ;;  %v525_v43 = vpop.f32.mrf.mxu2  ;;  %v1149_v11 = vld [vmem:[#allocation8 + $0x1c0] sm:$0xff] }
 0x116   :  { %v526_v44 = vadd.f32 %v525_v43, %v485_v19  ;;  %1359 = vmatpush.msra.mxu0 %v1149_v11  ;;  %v1177_v19 = vld [vmem:[#allocation8 + $0x2a0] sm:$0xff] }
 0x117   :  { %v3642_v50 = vpop.f32.mrf.mxu1  ;;  %v3202_v43 = vld [vmem:[#allocation2 + $0x60] sm:$0xff]  ;;  %1409 = vmatpush.msra.mxu1 %v1177_v19 }
 0x118   :  { %v3640_v45 = vpop.f32.mrf.mxu0  ;;  %v566_v14 = vpop.f32.mrf.mxu3  ;;  %1360 = vmatpush.msra.mxu0 %v1145_v32  ;;  %v1169_v11 = vld [vmem:[#allocation8 + $0x260] sm:$0xff] }
 0x119   :  { %v3644_v18 = vadd.f32 %v566_v14, %v526_v44  ;;  %v3203_v44 = vld [vmem:[#allocation2 + $0x68] sm:$0xff]  ;;  %v1261_v14 = vld [vmem:[#allocation8 + $0x540] sm:$0xff] }
 0x11a   :  { %954 = vmatmul.f32.vlgmr.msrb.gmra.mxu1 %v3191_v21  ;;  %995 = vmatmul.f32.vlgmr.msrb.gmra.mxu2 %v3192_v6  ;;  %v3204_v21 = vld [vmem:[#allocation2 + $0x70] sm:$0xff]  ;;  %v1173_v6 = vld [vmem:[#allocation8 + $0x280] sm:$0xff] }
 0x11b   :  { %4860 = vst [vmem:[#allocation22_spill] sm:$0xff] %v3644_v18  ;;  %913 = vmatmul.f32.vlgmr.msrb.gmra.mxu0 %v3190_v20  ;;  %v1109_v20 = vld [vmem:[#allocation8 + $0x80] sm:$0xff]  ;;  %1445 = vmatpush.msra.mxu2 %v1261_v14 }
 0x11c   :  { %1361 = vmatpush.msra.mxu0 %v1141_v33  ;;  %1410 = vmatpush.msra.mxu1 %v1173_v6  ;;  %v1253_v32 = vld [vmem:[#allocation8 + $0x500] sm:$0xff]  ;;  %v3216_v6 = vld [vmem:[#allocation2 + $0xd0] sm:$0xff] }
 0x11d   :  { %1036 = vmatmul.f32.vlgmr.msrb.gmra.mxu3 %v3193_v9  ;;  %v3646_v28 = vpop.f32.mrf.mxu2  ;;  %v1105_v9 = vld [vmem:[#allocation8 + $0x60] sm:$0xff]  ;;  %1446 = vmatpush.msra.mxu2 %v1257_v22 }
 0x11e   :  { %1362 = vmatpush.msra.mxu0 %v1137_v40  ;;  %1411 = vmatpush.msra.mxu1 %v1169_v11  ;;  %v3206_v40 = vld [vmem:[#allocation2 + $0x80] sm:$0xff]  ;;  %v3217_v11 = vld [vmem:[#allocation2 + $0xd8] sm:$0xff] }
 0x11f   :  { %v3650_v31 = vpop.f32.mrf.mxu1  ;;  %1447 = vmatpush.msra.mxu2 %v1253_v32  ;;  %v1225_v14 = vld [vmem:[#allocation8 + $0x420] sm:$0xff] }
 0x120   :  { %v3648_v29 = vpop.f32.mrf.mxu0  ;;  %v3652_v34 = vpop.f32.mrf.mxu3  ;;  %1363 = vmatpush.msra.mxu0 %v1133_v46  ;;  %v1161_v46 = vld [vmem:[#allocation8 + $0x220] sm:$0xff] }
 0x121   :  { %v1341_v22 = vld [vmem:[#allocation8 + $0x7c0] sm:$0xff] }
 0x122   :  { %957 = vmatmul.f32.gmra.mxu1 %v3195_v38  ;;  %998 = vmatmul.f32.gmra.mxu2 %v3196_v39  ;;  %v1165_v38 = vld [vmem:[#allocation8 + $0x240] sm:$0xff] }
 0x123   :  { %916 = vmatmul.f32.gmra.mxu0 %v3194_v37  ;;  %v1249_v39 = vld [vmem:[#allocation8 + $0x4e0] sm:$0xff]  ;;  %1412 = vmatpush.msra.mxu1 %v1165_v38 }
 0x124   :  { %1364 = vmatpush.msra.mxu0 %v1129_v49  ;;  %v3209_v49 = vld [vmem:[#allocation2 + $0x98] sm:$0xff]  ;;  %1448 = vmatpush.msra.mxu2 %v1249_v39  ;;  %v1337_v32 = vld [vmem:[#allocation8 + $0x7a0] sm:$0xff] }
 0x125   :  { %1039 = vmatmul.f32.gmra.mxu3 %v3197_v42  ;;  %v3654_v48 = vpop.f32.mrf.mxu2  ;;  %v1097_v42 = vld [vmem:[#allocation8 + $0x20] sm:$0xff]  ;;  %1413 = vmatpush.msra.mxu1 %v1161_v46 }
 0x126   :  { %1365 = vmatpush.msra.mxu0 %v1125_v55  ;;  %v1241_v55 = vld [vmem:[#allocation8 + $0x4a0] sm:$0xff]  ;;  %1449 = vmatpush.msra.mxu2 %v1245_v47 }
 0x127   :  { %v3658_v52 = vpop.f32.mrf.mxu1  ;;  %1414 = vmatpush.msra.mxu1 %v1157_v4  ;;  %1482 = vmatpush.msra.mxu3 %v1341_v22  ;;  %v1333_v46 = vld [vmem:[#allocation8 + $0x780] sm:$0xff]  ;;  %v1146_v22 = vld [vmem:[#allocation8 + $0x1a8] sm:$0xff] }
 0x128   :  { %v3656_v0 = vpop.f32.mrf.mxu0  ;;  %v3660_v1 = vpop.f32.mrf.mxu3  ;;  %1366 = vmatpush.msra.mxu0 %v1121_v2  ;;  %1450 = vmatpush.msra.mxu2 %v1241_v55  ;;  %v3210_v2 = vld [vmem:[#allocation2 + $0xa0] sm:$0xff] }
 0x129   :  { %1483 = vmatpush.msra.mxu3 %v1337_v32 }
 0x12a   :  { %960 = vmatmul.f32.gmra.mxu1 %v3199_v57  ;;  %1001 = vmatmul.f32.gmra.mxu2 %v3200_v60  ;;  %v1237_v60 = vld [vmem:[#allocation8 + $0x480] sm:$0xff] }
 0x12b   :  { %919 = vmatmul.f32.gmra.mxu0 %v3198_v56  ;;  %1451 = vmatpush.msra.mxu2 %v1237_v60  ;;  %v3713_v60 = vmax.f32 %v3598_v54, 0.0 }
 0x12c   :  { %1367 = vmatpush.msra.mxu0 %v1117_v62  ;;  %v3213_v62 = vld [vmem:[#allocation2 + $0xb8] sm:$0xff]  ;;  %1484 = vmatpush.msra.mxu3 %v1333_v46  ;;  %v1317_v46 = vld [vmem:[#allocation8 + $0x700] sm:$0xff] }
 0x12d   :  { %1042 = vmatmul.f32.gmra.mxu3 %v3201_v3  ;;  %v3662_v15 = vpop.f32.mrf.mxu2  ;;  %v3211_v3 = vld [vmem:[#allocation2 + $0xa8] sm:$0xff]  ;;  %1452 = vmatpush.msra.mxu2 %v1233_v7 }
 0x12e   :  { %1368 = vmatpush.msra.mxu0 %v1113_v12  ;;  %v1218_v7 = vld [vmem:[#allocation8 + $0x3e8] sm:$0xff] }
 0x12f   :  { %v3666_v25 = vpop.f32.mrf.mxu1  ;;  %1453 = vmatpush.msra.mxu2 %v1229_v10  ;;  %1563 = vmatpush.msrb.mxu1 %v1218_v7 }
 0x130   :  { %v3664_v24 = vpop.f32.mrf.mxu0  ;;  %v3668_v27 = vpop.f32.mrf.mxu3  ;;  %1369 = vmatpush.msra.mxu0 %v1109_v20  ;;  %v3214_v20 = vld [vmem:[#allocation2 + $0xc0] sm:$0xff] }
 0x131   :  { %1454 = vmatpush.msra.mxu2 %v1225_v14  ;;  %v1214_v14 = vld [vmem:[#allocation8 + $0x3c8] sm:$0xff] }
 0x132   :  { %963 = vmatmul.f32.gmra.mxu1 %v3203_v44  ;;  %1004 = vmatmul.f32.gmra.mxu2 %v3204_v21  ;;  %v3215_v21 = vld [vmem:[#allocation2 + $0xc8] sm:$0xff] }
 0x133   :  { %922 = vmatmul.f32.gmra.mxu0 %v3202_v43  ;;  %1564 = vmatpush.msrb.mxu1 %v1214_v14 }
 0x134   :  { %1370 = vmatpush.msra.mxu0 %v1105_v9  ;;  %v628_v9 = vadd.f32 %v3642_v50, %v3640_v45  ;;  %v3219_v45 = vld [vmem:[#allocation2 + $0xe8] sm:$0xff]  ;;  %v3220_v50 = vld [vmem:[#allocation2 + $0xf0] sm:$0xff] }
 0x135   :  { %1045 = vmatmul.f32.gmra.mxu3 %v3205_v8  ;;  %v3670_v26 = vpop.f32.mrf.mxu2  ;;  %v1221_v8 = vld [vmem:[#allocation8 + $0x400] sm:$0xff] }
 0x136   :  { %1371 = vmatpush.msra.mxu0 %v1101_v30  ;;  %1455 = vmatpush.msra.mxu2 %v1221_v8 }
 0x137   :  { %v3674_v35 = vpop.f32.mrf.mxu1 }
 0x138   :  { %v3672_v33 = vpop.f32.mrf.mxu0  ;;  %v3676_v37 = vpop.f32.mrf.mxu3  ;;  %1372 = vmatpush.msra.mxu0 %v1097_v42  ;;  %v3218_v42 = vld [vmem:[#allocation2 + $0xe0] sm:$0xff] }
 0x13a   :  { %966 = vmatmul.f32.gmra.mxu1 %v3207_v41  ;;  %1007 = vmatmul.f32.gmra.mxu2 %v3208_v63  ;;  %v631_v63 = vadd.f32 %v3650_v31, %v3648_v29 }
 0x13b   :  { %925 = vmatmul.f32.gmra.mxu0 %v3206_v40  ;;  %v669_v40 = vadd.f32 %v3646_v28, %v628_v9  ;;  %v1210_v9 = vld [vmem:[#allocation8 + $0x3a8] sm:$0xff] }
 0x13c   :  { %1373 = vmatpush.msra.mxu0 %v1093_v51  ;;  %v1329_v51 = vld [vmem:[#allocation8 + $0x760] sm:$0xff]  ;;  %v672_v29 = vadd.f32 %v3654_v48, %v631_v63  ;;  %1565 = vmatpush.msrb.mxu1 %v1210_v9  ;;  %v1138_v63 = vld [vmem:[#allocation8 + $0x168] sm:$0xff] }
 0x13d   :  { %1048 = vmatmul.f32.gmra.mxu3 %v3209_v49  ;;  %v3678_v56 = vpop.f32.mrf.mxu2  ;;  %v3708_v47 = vadd.f32 %v3652_v34, %v669_v40  ;;  %v3221_v49 = vld [vmem:[#allocation2 + $0xf8] sm:$0xff]  ;;  %v1321_v48 = vld [vmem:[#allocation8 + $0x720] sm:$0xff]  ;;  %v1142_v40 = vld [vmem:[#allocation8 + $0x188] sm:$0xff] }
 0x13e   :  { %1485 = vmatpush.msra.mxu3 %v1329_v51  ;;  %v3726_v10 = vadd.f32 %v3660_v1, %v672_v29  ;;  %v1198_v29 = vld [vmem:[#allocation8 + $0x348] sm:$0xff] }
 0x13f   :  { %v3682_v58 = vpop.f32.mrf.mxu1 }
 0x140   :  { %v3680_v57 = vpop.f32.mrf.mxu0  ;;  %v3684_v59 = vpop.f32.mrf.mxu3  ;;  %4861 = vst [vmem:[#allocation23_spill] sm:$0xff] %v3726_v10 }
 0x142   :  { %969 = vmatmul.f32.gmra.mxu1 %v3211_v3  ;;  %1010 = vmatmul.f32.gmra.mxu2 %v3212_v5  ;;  %v1325_v3 = vld [vmem:[#allocation8 + $0x740] sm:$0xff]  ;;  %v1154_v5 = vld [vmem:[#allocation8 + $0x1e8] sm:$0xff] }
 0x143   :  { %928 = vmatmul.f32.gmra.mxu0 %v3210_v2  ;;  %v3716_v2 = vmax.f32 %v3708_v47, 0.0  ;;  %1486 = vmatpush.msra.mxu3 %v1325_v3  ;;  %v1282_v3 = vld [vmem:[#allocation8 + $0x5e8] sm:$0xff] }
 0x144   :  { %1522 = vmatpush.msrb.mxu0 %v1154_v5  ;;  %1604 = vmatpush.msrb.mxu2 %v1282_v3 }
 0x145   :  { %1051 = vmatmul.f32.gmra.mxu3 %v3213_v62  ;;  %v3686_v12 = vpop.f32.mrf.mxu2  ;;  %v634_v62 = vadd.f32 %v3658_v52, %v3656_v0  ;;  %v3729_v0 = vmax.f32 %v3604_v13, 0.0  ;;  %v3732_v52 = vmax.f32 %v3726_v10, 0.0 }
 0x146   :  { %1487 = vmatpush.msra.mxu3 %v1321_v48  ;;  %1523 = vmatpush.msrb.mxu0 %v1150_v23 }
 0x147   :  { %v3690_v43 = vpop.f32.mrf.mxu1  ;;  %v675_v1 = vadd.f32 %v3662_v15, %v634_v62  ;;  %v1202_v15 = vld [vmem:[#allocation8 + $0x368] sm:$0xff] }
 0x148   :  { %v3688_v19 = vpop.f32.mrf.mxu0  ;;  %v3692_v44 = vpop.f32.mrf.mxu3  ;;  %1524 = vmatpush.msrb.mxu0 %v1146_v22  ;;  %1488 = vmatpush.msra.mxu3 %v1317_v46  ;;  %v1190_v22 = vld [vmem:[#allocation8 + $0x308] sm:$0xff] }
 0x149   :  { %v3745_v51 = vadd.f32 %v3668_v27, %v675_v1  ;;  %v3749_v27 = vmax.f32 %v3610_v36, 0.0  ;;  %v1270_v46 = vld [vmem:[#allocation8 + $0x588] sm:$0xff] }
 0x14a   :  { %972 = vmatmul.f32.gmra.mxu1 %v3215_v21  ;;  %1013 = vmatmul.f32.gmra.mxu2 %v3216_v6 }
 0x14b   :  { %931 = vmatmul.f32.gmra.mxu0 %v3214_v20  ;;  %4863 = vst [vmem:[#allocation25_spill] sm:$0xff] %v3745_v51  ;;  %v3752_v48 = vmax.f32 %v3745_v51, 0.0 }
 0x14c   :  { %1525 = vmatpush.msrb.mxu0 %v1142_v40  ;;  %v640_v40 = vadd.f32 %v3674_v35, %v3672_v33  ;;  %v3769_v35 = vmax.f32 %v3616_v53, 0.0 }
 0x14d   :  { %1054 = vmatmul.f32.gmra.mxu3 %v3217_v11  ;;  %v3696_v30 = vpop.f32.mrf.mxu2 }
 0x14e   :  { %1526 = vmatpush.msrb.mxu0 %v1138_v63  ;;  %v1305_v63 = vld [vmem:[#allocation8 + $0x6a0] sm:$0xff]  ;;  %v681_v3 = vadd.f32 %v3678_v56, %v640_v40  ;;  %v1254_v40 = vld [vmem:[#allocation8 + $0x508] sm:$0xff] }
 0x14f   :  { %v3700_v39 = vpop.f32.mrf.mxu1  ;;  %v1301_v56 = vld [vmem:[#allocation8 + $0x680] sm:$0xff] }
 0x150   :  { %v3698_v38 = vpop.f32.mrf.mxu0  ;;  %v3703_v41 = vpop.f32.mrf.mxu3 }
 0x152   :  { %975 = vmatmul.f32.gmra.mxu1 %v3219_v45  ;;  %1016 = vmatmul.f32.gmra.mxu2 %v3220_v50 }
 0x153   :  { %934 = vmatmul.f32.gmra.mxu0 %v3218_v42  ;;  %v1206_v42 = vld [vmem:[#allocation8 + $0x388] sm:$0xff] }
 0x154   :  { %1566 = vmatpush.msrb.mxu1 %v1206_v42 }
 0x155   :  { %1057 = vmatmul.f32.gmra.mxu3 %v3221_v49  ;;  %v3710_v28 = vpop.f32.mrf.mxu2  ;;  %v637_v49 = vadd.f32 %v3666_v25, %v3664_v24  ;;  %v1130_v24 = vld [vmem:[#allocation8 + $0x128] sm:$0xff] }
 0x156   :  { %1567 = vmatpush.msrb.mxu1 %v1202_v15  ;;  %v1278_v25 = vld [vmem:[#allocation8 + $0x5c8] sm:$0xff] }
 0x157   :  { %v791_v55 = vpop.f32.mrf.mxu1  ;;  %v678_v23 = vadd.f32 %v3670_v26, %v637_v49  ;;  %1605 = vmatpush.msrb.mxu2 %v1278_v25  ;;  %v1309_v26 = vld [vmem:[#allocation8 + $0x6c0] sm:$0xff]  ;;  %v1118_v15 = vld [vmem:[#allocation8 + $0xc8] sm:$0xff] }
 0x158   :  { %v750_v4 = vpop.f32.mrf.mxu0  ;;  %v3719_v31 = vpop.f32.mrf.mxu3  ;;  %1568 = vmatpush.msrb.mxu1 %v1198_v29  ;;  %v1262_v25 = vld [vmem:[#allocation8 + $0x548] sm:$0xff] }
 0x159   :  { %v792_v34 = vadd.f32 %v791_v55, %v750_v4  ;;  %v1313_v4 = vld [vmem:[#allocation8 + $0x6e0] sm:$0xff]  ;;  %v1134_v55 = vld [vmem:[#allocation8 + $0x148] sm:$0xff]  ;;  %v3765_v42 = vadd.f32 %v3676_v37, %v678_v23 }
 0x15a   :  { %1415 = vmatmul.f32.vlgmr.msra.gmra.mxu1 %v3716_v2  ;;  %1489 = vmatpush.msra.mxu3 %v1313_v4  ;;  %v1182_v4 = vld [vmem:[#allocation8 + $0x2c8] sm:$0xff] }
 0x15b   :  { %1374 = vmatmul.f32.vlgmr.msra.gmra.mxu0 %v3713_v60  ;;  %4865 = vst [vmem:[#allocation27_spill] sm:$0xff] %v3765_v42  ;;  %v3772_v37 = vmax.f32 %v3765_v42, 0.0  ;;  %v1110_v23 = vld [vmem:[#allocation8 + $0x88] sm:$0xff] }
 0x15c   :  { %1527 = vmatpush.msrb.mxu0 %v1134_v55  ;;  %1490 = vmatpush.msra.mxu3 %v1309_v26  ;;  %v1266_v55 = vld [vmem:[#allocation8 + $0x568] sm:$0xff] }
 0x15d   :  { %v832_v20 = vpop.f32.mrf.mxu2  ;;  %v1106_v26 = vld [vmem:[#allocation8 + $0x68] sm:$0xff] }
 0x15e   :  { %v833_v21 = vadd.f32 %v832_v20, %v792_v34  ;;  %v1194_v20 = vld [vmem:[#allocation8 + $0x328] sm:$0xff]  ;;  %1528 = vmatpush.msrb.mxu0 %v1130_v24  ;;  %1491 = vmatpush.msra.mxu3 %v1305_v63 }
 0x15f   :  { %v794_v8 = vpop.f32.mrf.mxu1  ;;  %1569 = vmatpush.msrb.mxu1 %v1194_v20  ;;  %v1102_v63 = vld [vmem:[#allocation8 + $0x48] sm:$0xff] }
 0x160   :  { %v753_v6 = vpop.f32.mrf.mxu0  ;;  %v873_v11 = vpop.f32.mrf.mxu3  ;;  %1492 = vmatpush.msra.mxu3 %v1301_v56 }
 0x161   :  { %v3735_v32 = vadd.f32 %v873_v11, %v833_v21  ;;  %v795_v45 = vadd.f32 %v794_v8, %v753_v6  ;;  %v1126_v6 = vld [vmem:[#allocation8 + $0x108] sm:$0xff]  ;;  %1570 = vmatpush.msrb.mxu1 %v1190_v22  ;;  %v643_v22 = vadd.f32 %v3682_v58, %v3680_v57  ;;  %v3789_v57 = vmax.f32 %v3622_v61, 0.0 }
 0x162   :  { %1418 = vmatmul.f32.gmra.mxu1 %v3732_v52  ;;  %v1274_v8 = vld [vmem:[#allocation8 + $0x5a8] sm:$0xff]  ;;  %1529 = vmatpush.msrb.mxu0 %v1126_v6 }
 0x163   :  { %4862 = vst [vmem:[#allocation24_spill] sm:$0xff] %v3735_v32  ;;  %1377 = vmatmul.f32.gmra.mxu0 %v3729_v0  ;;  %v3740_v50 = vmax.f32 %v3735_v32, 0.0  ;;  %v1122_v11 = vld [vmem:[#allocation8 + $0xe8] sm:$0xff]  ;;  %1606 = vmatpush.msrb.mxu2 %v1274_v8  ;;  %v1196_v32 = vld [vmem:[#allocation8 + $0x338] sm:$0xff] }
 0x164   :  { %1530 = vmatpush.msrb.mxu0 %v1122_v11  ;;  %v1174_v6 = vld [vmem:[#allocation8 + $0x288] sm:$0xff] }
 0x165   :  { %1456 = vmatmul.f32.vlgmr.msra.gmra.mxu2 %v3740_v50  ;;  %v835_v34 = vpop.f32.mrf.mxu2  ;;  %v1258_v8 = vld [vmem:[#allocation8 + $0x528] sm:$0xff] }
 0x166   :  { %v836_v5 = vadd.f32 %v835_v34, %v795_v45  ;;  %v1186_v45 = vld [vmem:[#allocation8 + $0x2e8] sm:$0xff]  ;;  %1607 = vmatpush.msrb.mxu2 %v1270_v46  ;;  %1531 = vmatpush.msrb.mxu0 %v1118_v15 }
 0x167   :  { %v797_v62 = vpop.f32.mrf.mxu1  ;;  %1571 = vmatpush.msrb.mxu1 %v1186_v45  ;;  %v1170_v11 = vld [vmem:[#allocation8 + $0x268] sm:$0xff]  ;;  %v1297_v45 = vld [vmem:[#allocation8 + $0x660] sm:$0xff] }
 0x168   :  { %v756_v7 = vpop.f32.mrf.mxu0  ;;  %v876_v14 = vpop.f32.mrf.mxu3  ;;  %1608 = vmatpush.msrb.mxu2 %v1266_v55  ;;  %1493 = vmatpush.msra.mxu3 %v1297_v45 }
 0x169   :  { %v3755_v21 = vadd.f32 %v876_v14, %v836_v5  ;;  %v798_v9 = vadd.f32 %v797_v62, %v756_v7  ;;  %v1114_v7 = vld [vmem:[#allocation8 + $0xa8] sm:$0xff]  ;;  %1572 = vmatpush.msrb.mxu1 %v1182_v4 }
 0x16a   :  { %1421 = vmatmul.f32.gmra.mxu1 %v3752_v48  ;;  %v1178_v62 = vld [vmem:[#allocation8 + $0x2a8] sm:$0xff]  ;;  %1532 = vmatpush.msrb.mxu0 %v1114_v7 }
 0x16b   :  { %4864 = vst [vmem:[#allocation26_spill] sm:$0xff] %v3755_v21  ;;  %1380 = vmatmul.f32.gmra.mxu0 %v3749_v27  ;;  %v3760_v1 = vmax.f32 %v3755_v21, 0.0  ;;  %1573 = vmatpush.msrb.mxu1 %v1178_v62 }
 0x16c   :  { %1609 = vmatpush.msrb.mxu2 %v1262_v25  ;;  %1533 = vmatpush.msrb.mxu0 %v1110_v23  ;;  %v1293_v25 = vld [vmem:[#allocation8 + $0x640] sm:$0xff]  ;;  %v1094_v23 = vld [vmem:[#allocation8 + $0x8] sm:$0xff] }
 0x16d   :  { %1459 = vmatmul.f32.gmra.mxu2 %v3760_v1  ;;  %v838_v49 = vpop.f32.mrf.mxu2  ;;  %1574 = vmatpush.msrb.mxu1 %v1174_v6  ;;  %v1158_v6 = vld [vmem:[#allocation8 + $0x208] sm:$0xff] }
 0x16e   :  { %v839_v29 = vadd.f32 %v838_v49, %v798_v9  ;;  %v3785_v9 = vadd.f32 %v3684_v59, %v681_v3  ;;  %1610 = vmatpush.msrb.mxu2 %v1258_v8  ;;  %1534 = vmatpush.msrb.mxu0 %v1106_v26  ;;  %v684_v59 = vadd.f32 %v3686_v12, %v643_v22  ;;  %v1098_v3 = vld [vmem:[#allocation8 + $0x28] sm:$0xff]  ;;  %v1289_v22 = vld [vmem:[#allocation8 + $0x620] sm:$0xff] }
 0x16f   :  { %v800_v33 = vpop.f32.mrf.mxu1  ;;  %1575 = vmatpush.msrb.mxu1 %v1170_v11  ;;  %v1246_v12 = vld [vmem:[#allocation8 + $0x4c8] sm:$0xff]  ;;  %1494 = vmatpush.msra.mxu3 %v1293_v25 }
 0x170   :  { %v759_v34 = vpop.f32.mrf.mxu0  ;;  %v879_v5 = vpop.f32.mrf.mxu3  ;;  %4867 = vst [vmem:[#allocation29_spill] sm:$0xff] %v3785_v9  ;;  %v3792_v58 = vmax.f32 %v3785_v9, 0.0  ;;  %1611 = vmatpush.msrb.mxu2 %v1254_v40  ;;  %1535 = vmatpush.msrb.mxu0 %v1102_v63  ;;  %v3805_v56 = vadd.f32 %v3692_v44, %v684_v59  ;;  %v1242_v8 = vld [vmem:[#allocation8 + $0x4a8] sm:$0xff]  ;;  %v1180_v9 = vld [vmem:[#allocation8 + $0x2b8] sm:$0xff] }
 0x171   :  { %v3775_v24 = vadd.f32 %v879_v5, %v839_v29  ;;  %v801_v14 = vadd.f32 %v800_v33, %v759_v34  ;;  %v1166_v29 = vld [vmem:[#allocation8 + $0x248] sm:$0xff]  ;;  %1495 = vmatpush.msra.mxu3 %v1289_v22 }
 0x172   :  { %1424 = vmatmul.f32.gmra.mxu1 %v3772_v37  ;;  %v1250_v34 = vld [vmem:[#allocation8 + $0x4e8] sm:$0xff]  ;;  %4869 = vst [vmem:[#allocation31_spill] sm:$0xff] %v3805_v56  ;;  %1536 = vmatpush.msrb.mxu0 %v1098_v3 }
 0x173   :  { %4866 = vst [vmem:[#allocation28_spill] sm:$0xff] %v3775_v24  ;;  %1383 = vmatmul.f32.gmra.mxu0 %v3769_v35  ;;  %v3780_v20 = vmax.f32 %v3775_v24, 0.0  ;;  %v1162_v5 = vld [vmem:[#allocation8 + $0x228] sm:$0xff]  ;;  %1576 = vmatpush.msrb.mxu1 %v1166_v29  ;;  %v649_v29 = vadd.f32 %v3700_v39, %v3698_v38 }
 0x174   :  { %1612 = vmatpush.msrb.mxu2 %v1250_v34  ;;  %1537 = vmatpush.msrb.mxu0 %v1094_v23  ;;  %v1238_v63 = vld [vmem:[#allocation8 + $0x488] sm:$0xff]  ;;  %v3829_v23 = vmax.f32 %v3634_v17, 0.0 }
 0x175   :  { %1462 = vmatmul.f32.gmra.mxu2 %v3780_v20  ;;  %v841_v46 = vpop.f32.mrf.mxu2  ;;  %1577 = vmatpush.msrb.mxu1 %v1162_v5  ;;  %v1234_v59 = vld [vmem:[#allocation8 + $0x468] sm:$0xff]  ;;  %v690_v38 = vadd.f32 %v3710_v28, %v649_v29 }
 0x176   :  { %v842_v15 = vadd.f32 %v841_v46, %v801_v14  ;;  %v646_v14 = vadd.f32 %v3690_v43, %v3688_v19  ;;  %1613 = vmatpush.msrb.mxu2 %v1246_v12  ;;  %v3809_v19 = vmax.f32 %v3628_v16, 0.0  ;;  %v3812_v43 = vmax.f32 %v3805_v56, 0.0  ;;  %v1230_v34 = vld [vmem:[#allocation8 + $0x448] sm:$0xff]  ;;  %v1168_v16 = vld [vmem:[#allocation8 + $0x258] sm:$0xff] }
 0x177   :  { %v803_v4 = vpop.f32.mrf.mxu1  ;;  %1578 = vmatpush.msrb.mxu1 %v1158_v6  ;;  %v1346_v3 = vld [vmem:[#allocation8 + $0x7e8] sm:$0xff] }
 0x178   :  { %v762_v49 = vpop.f32.mrf.mxu0  ;;  %v882_v55 = vpop.f32.mrf.mxu3  ;;  %v687_v44 = vadd.f32 %v3696_v30, %v646_v14  ;;  %1614 = vmatpush.msrb.mxu2 %v1242_v8  ;;  %v1338_v28 = vld [vmem:[#allocation8 + $0x7a8] sm:$0xff] }
 0x179   :  { %v3795_v33 = vadd.f32 %v882_v55, %v842_v15  ;;  %v804_v7 = vadd.f32 %v803_v4, %v762_v49  ;;  %v1285_v55 = vld [vmem:[#allocation8 + $0x600] sm:$0xff] }
 0x17a   :  { %1427 = vmatmul.f32.gmra.mxu1 %v3792_v58  ;;  %1615 = vmatpush.msrb.mxu2 %v1238_v63  ;;  %v3825_v30 = vadd.f32 %v3703_v41, %v687_v44  ;;  %v1226_v41 = vld [vmem:[#allocation8 + $0x428] sm:$0xff] }
 0x17b   :  { %4868 = vst [vmem:[#allocation30_spill] sm:$0xff] %v3795_v33  ;;  %1386 = vmatmul.f32.gmra.mxu0 %v3789_v57  ;;  %v3800_v62 = vmax.f32 %v3795_v33, 0.0  ;;  %1496 = vmatpush.msra.mxu3 %v1285_v55  ;;  %v1239_v33 = vld [vmem:[#allocation8 + $0x490] sm:$0xff] }
 0x17c   :  { %4871 = vst [vmem:[#allocation33_spill] sm:$0xff] %v3825_v30  ;;  %1616 = vmatpush.msrb.mxu2 %v1234_v59  ;;  %v3832_v14 = vmax.f32 %v3825_v30, 0.0  ;;  %v1192_v30 = vld [vmem:[#allocation8 + $0x318] sm:$0xff] }
 0x17d   :  { %1465 = vmatmul.f32.gmra.mxu2 %v3800_v62  ;;  %v844_v26 = vpop.f32.mrf.mxu2  ;;  %1645 = vmatpush.msrb.mxu3 %v1346_v3  ;;  %v1334_v3 = vld [vmem:[#allocation8 + $0x788] sm:$0xff] }
 0x17e   :  { %v845_v11 = vadd.f32 %v844_v26, %v804_v7  ;;  %1617 = vmatpush.msrb.mxu2 %v1230_v34  ;;  %v1222_v26 = vld [vmem:[#allocation8 + $0x408] sm:$0xff] }
 0x17f   :  { %v806_v45 = vpop.f32.mrf.mxu1 }
 0x180   :  { %v765_v40 = vpop.f32.mrf.mxu0  ;;  %v885_v46 = vpop.f32.mrf.mxu3  ;;  %1618 = vmatpush.msrb.mxu2 %v1226_v41 }
 0x181   :  { %v3815_v15 = vadd.f32 %v885_v46, %v845_v11  ;;  %v807_v49 = vadd.f32 %v806_v45, %v765_v40  ;;  %v1342_v11 = vld [vmem:[#allocation8 + $0x7c8] sm:$0xff]  ;;  %v3843_v40 = vadd.f32 %v3719_v31, %v690_v38 }
 0x182   :  { %1430 = vmatmul.f32.gmra.mxu1 %v3812_v43  ;;  %1646 = vmatpush.msrb.mxu3 %v1342_v11  ;;  %v1326_v11 = vld [vmem:[#allocation8 + $0x748] sm:$0xff] }
 0x183   :  { %4870 = vst [vmem:[#allocation32_spill] sm:$0xff] %v3815_v15  ;;  %1389 = vmatmul.f32.gmra.mxu0 %v3809_v19  ;;  %v3820_v4 = vmax.f32 %v3815_v15, 0.0  ;;  %1619 = vmatpush.msrb.mxu2 %v1222_v26  ;;  %v3850_v59 = vmax.f32 %v3843_v40, 0.0  ;;  %v1251_v15 = vld [vmem:[#allocation8 + $0x4f0] sm:$0xff] }
 0x184   :  { %4873 = vst [vmem:[#allocation35_spill] sm:$0xff] %v3843_v40  ;;  %1647 = vmatpush.msrb.mxu3 %v1338_v28  ;;  %v1155_v28 = vld [vmem:[#allocation8 + $0x1f0] sm:$0xff]  ;;  %v1276_v40 = vld [vmem:[#allocation8 + $0x5b8] sm:$0xff] }
 0x185   :  { %1468 = vmatmul.f32.gmra.mxu2 %v3820_v4  ;;  %v847_v5 = vpop.f32.mrf.mxu2  ;;  %1686 = vmatpush.msra.mxu0 %v1155_v28 }
 0x186   :  { %v848_v7 = vadd.f32 %v847_v5, %v807_v49  ;;  %v3847_v49 = vmax.f32 %v3644_v18, 0.0  ;;  %1648 = vmatpush.msrb.mxu3 %v1334_v3  ;;  %v1330_v5 = vld [vmem:[#allocation8 + $0x768] sm:$0xff] }
 0x187   :  { %v809_v25 = vpop.f32.mrf.mxu1 }
 0x188   :  { %v768_v12 = vpop.f32.mrf.mxu0  ;;  %v888_v39 = vpop.f32.mrf.mxu3  ;;  %1649 = vmatpush.msrb.mxu3 %v1330_v5 }
 0x189   :  { %v3835_v6 = vadd.f32 %v888_v39, %v848_v7  ;;  %v810_v8 = vadd.f32 %v809_v25, %v768_v12 }
 0x18a   :  { %1433 = vmatmul.f32.gmra.mxu1 %v3832_v14  ;;  %1650 = vmatpush.msrb.mxu3 %v1326_v11  ;;  %v1207_v11 = vld [vmem:[#allocation8 + $0x390] sm:$0xff] }
 0x18b   :  { %4872 = vst [vmem:[#allocation34_spill] sm:$0xff] %v3835_v6  ;;  %1392 = vmatmul.f32.gmra.mxu0 %v3829_v23  ;;  %v3840_v22 = vmax.f32 %v3835_v6, 0.0  ;;  %v1263_v6 = vld [vmem:[#allocation8 + $0x550] sm:$0xff] }
 0x18d   :  { %1471 = vmatmul.f32.gmra.mxu2 %v3840_v22  ;;  %v850_v45 = vpop.f32.mrf.mxu2 }
 0x18e   :  { %v851_v44 = vadd.f32 %v850_v45, %v810_v8  ;;  %v1219_v45 = vld [vmem:[#allocation8 + $0x3f0] sm:$0xff] }
 0x18f   :  { %v812_v63 = vpop.f32.mrf.mxu1  ;;  %1727 = vmatpush.msra.mxu1 %v1219_v45 }
 0x190   :  { %v771_v46 = vpop.f32.mrf.mxu0  ;;  %v891_v55 = vpop.f32.mrf.mxu3 }
 0x191   :  { %v3852_v29 = vadd.f32 %v891_v55, %v851_v44  ;;  %v813_v31 = vadd.f32 %v812_v63, %v771_v46  ;;  %v1322_v44 = vld [vmem:[#allocation8 + $0x728] sm:$0xff]  ;;  %v1151_v46 = vld [vmem:[#allocation8 + $0x1d0] sm:$0xff] }
 0x192   :  { %1436 = vmatmul.f32.gmra.mxu1 %v3850_v59  ;;  %v1215_v63 = vld [vmem:[#allocation8 + $0x3d0] sm:$0xff]  ;;  %1651 = vmatpush.msrb.mxu3 %v1322_v44 }
 0x193   :  { %4874 = vst [vmem:[#allocation36_spill] sm:$0xff] %v3852_v29  ;;  %1395 = vmatmul.f32.gmra.mxu0 %v3847_v49  ;;  %v3857_v34 = vmax.f32 %v3852_v29, 0.0  ;;  %1728 = vmatpush.msra.mxu1 %v1215_v63  ;;  %v1139_v44 = vld [vmem:[#allocation8 + $0x170] sm:$0xff]  ;;  %v1314_v63 = vld [vmem:[#allocation8 + $0x6e8] sm:$0xff] }
 0x194   :  { %1687 = vmatpush.msra.mxu0 %v1151_v46  ;;  %v1203_v46 = vld [vmem:[#allocation8 + $0x370] sm:$0xff] }
 0x195   :  { %1474 = vmatmul.f32.gmra.mxu2 %v3857_v34  ;;  %v853_v7 = vpop.f32.mrf.mxu2  ;;  %v1275_v29 = vld [vmem:[#allocation8 + $0x5b0] sm:$0xff] }
 0x196   :  { %v854_v12 = vadd.f32 %v853_v7, %v813_v31  ;;  %v1147_v7 = vld [vmem:[#allocation8 + $0x1b0] sm:$0xff] }
 0x197   :  { %v955_v38 = vpop.f32.mrf.mxu1  ;;  %1688 = vmatpush.msra.mxu0 %v1147_v7 }
 0x198   :  { %v914_v25 = vpop.f32.mrf.mxu0  ;;  %v894_v39 = vpop.f32.mrf.mxu3 }
 0x199   :  { %v3860_v41 = vadd.f32 %v894_v39, %v854_v12  ;;  %v956_v26 = vadd.f32 %v955_v38, %v914_v25  ;;  %v1211_v12 = vld [vmem:[#allocation8 + $0x3b0] sm:$0xff] }
 0x19a   :  { %1579 = vmatmul.f32.vlgmr.msrb.gmra.mxu1 %v3716_v2  ;;  %v1143_v39 = vld [vmem:[#allocation8 + $0x190] sm:$0xff] }
 0x19b   :  { %4875 = vst [vmem:[#allocation37_spill] sm:$0xff] %v3860_v41  ;;  %1538 = vmatmul.f32.vlgmr.msrb.gmra.mxu0 %v3713_v60  ;;  %v3865_v8 = vmax.f32 %v3860_v41, 0.0  ;;  %1729 = vmatpush.msra.mxu1 %v1211_v12 }
 0x19c   :  { %1689 = vmatpush.msra.mxu0 %v1143_v39  ;;  %v1279_v39 = vld [vmem:[#allocation8 + $0x5d0] sm:$0xff] }
 0x19d   :  { %1477 = vmatmul.f32.gmra.mxu2 %v3865_v8  ;;  %v996_v55 = vpop.f32.mrf.mxu2  ;;  %1730 = vmatpush.msra.mxu1 %v1207_v11 }
 0x19e   :  { %v997_v31 = vadd.f32 %v996_v55, %v956_v26  ;;  %v1318_v26 = vld [vmem:[#allocation8 + $0x708] sm:$0xff]  ;;  %v1135_v55 = vld [vmem:[#allocation8 + $0x150] sm:$0xff]  ;;  %1690 = vmatpush.msra.mxu0 %v1139_v44 }
 0x19f   :  { %v958_v5 = vpop.f32.mrf.mxu1  ;;  %1652 = vmatpush.msrb.mxu3 %v1318_v26  ;;  %1731 = vmatpush.msra.mxu1 %v1203_v46  ;;  %v1131_v26 = vld [vmem:[#allocation8 + $0x130] sm:$0xff]  ;;  %v1310_v46 = vld [vmem:[#allocation8 + $0x6c8] sm:$0xff] }
 0x1a0   :  { %v917_v3 = vpop.f32.mrf.mxu0  ;;  %v1037_v25 = vpop.f32.mrf.mxu3  ;;  %1691 = vmatpush.msra.mxu0 %v1135_v55  ;;  %v1191_v55 = vld [vmem:[#allocation8 + $0x310] sm:$0xff] }
 0x1a1   :  { %v3868_v38 = vadd.f32 %v1037_v25, %v997_v31  ;;  %v959_v28 = vadd.f32 %v958_v5, %v917_v3  ;;  %v1199_v31 = vld [vmem:[#allocation8 + $0x350] sm:$0xff]  ;;  %1653 = vmatpush.msrb.mxu3 %v1314_v63 }
 0x1a2   :  { %1582 = vmatmul.f32.gmra.mxu1 %v3732_v52  ;;  %v1283_v3 = vld [vmem:[#allocation8 + $0x5f0] sm:$0xff]  ;;  %1692 = vmatpush.msra.mxu0 %v1131_v26 }
 0x1a3   :  { %4876 = vst [vmem:[#allocation38_spill] sm:$0xff] %v3868_v38  ;;  %1541 = vmatmul.f32.gmra.mxu0 %v3729_v0  ;;  %v3873_v45 = vmax.f32 %v3868_v38, 0.0  ;;  %1768 = vmatpush.msra.mxu2 %v1283_v3  ;;  %v1195_v38 = vld [vmem:[#allocation8 + $0x330] sm:$0xff] }
 0x1a4   :  { %1732 = vmatpush.msra.mxu1 %v1199_v31  ;;  %v1127_v63 = vld [vmem:[#allocation8 + $0x110] sm:$0xff]  ;;  %1654 = vmatpush.msrb.mxu3 %v1310_v46 }
 0x1a5   :  { %1497 = vmatmul.f32.vlgmr.msra.gmra.mxu3 %v3873_v45  ;;  %1620 = vmatmul.f32.vlgmr.msrb.gmra.mxu2 %v3740_v50  ;;  %v999_v7 = vpop.f32.mrf.mxu2  ;;  %v1271_v31 = vld [vmem:[#allocation8 + $0x590] sm:$0xff] }
 0x1a6   :  { %v1000_v5 = vadd.f32 %v999_v7, %v959_v28  ;;  %1769 = vmatpush.msra.mxu2 %v1279_v39  ;;  %1733 = vmatpush.msra.mxu1 %v1195_v38  ;;  %v1123_v7 = vld [vmem:[#allocation8 + $0xf0] sm:$0xff] }
 0x1a7   :  { %v961_v25 = vpop.f32.mrf.mxu1  ;;  %v1187_v3 = vld [vmem:[#allocation8 + $0x2f0] sm:$0xff]  ;;  %1693 = vmatpush.msra.mxu0 %v1127_v63 }
 0x1a8   :  { %v920_v12 = vpop.f32.mrf.mxu0  ;;  %v1040_v11 = vpop.f32.mrf.mxu3  ;;  %1770 = vmatpush.msra.mxu2 %v1275_v29  ;;  %1734 = vmatpush.msra.mxu1 %v1191_v55  ;;  %v1119_v29 = vld [vmem:[#allocation8 + $0xd0] sm:$0xff] }
 0x1a9   :  { %v3877_v41 = vadd.f32 %v1040_v11, %v1000_v5  ;;  %v962_v44 = vadd.f32 %v961_v25, %v920_v12  ;;  %v1306_v5 = vld [vmem:[#allocation8 + $0x6a8] sm:$0xff]  ;;  %v1267_v12 = vld [vmem:[#allocation8 + $0x570] sm:$0xff]  ;;  %1694 = vmatpush.msra.mxu0 %v1123_v7 }
 0x1aa   :  { %1585 = vmatmul.f32.gmra.mxu1 %v3752_v48  ;;  %1771 = vmatpush.msra.mxu2 %v1271_v31  ;;  %v1183_v46 = vld [vmem:[#allocation8 + $0x2d0] sm:$0xff]  ;;  %v1302_v7 = vld [vmem:[#allocation8 + $0x688] sm:$0xff] }
 0x1ab   :  { %4877 = vst [vmem:[#allocation39_spill] sm:$0xff] %v3877_v41  ;;  %1544 = vmatmul.f32.gmra.mxu0 %v3749_v27  ;;  %v3882_v28 = vmax.f32 %v3877_v41, 0.0  ;;  %1655 = vmatpush.msrb.mxu3 %v1306_v5  ;;  %v1115_v55 = vld [vmem:[#allocation8 + $0xb0] sm:$0xff] }
 0x1ac   :  { %1735 = vmatpush.msra.mxu1 %v1187_v3  ;;  %1772 = vmatpush.msra.mxu2 %v1267_v12  ;;  %v1179_v31 = vld [vmem:[#allocation8 + $0x2b0] sm:$0xff]  ;;  %v1298_v12 = vld [vmem:[#allocation8 + $0x668] sm:$0xff] }
 0x1ad   :  { %1500 = vmatmul.f32.gmra.mxu3 %v3882_v28  ;;  %1623 = vmatmul.f32.gmra.mxu2 %v3760_v1  ;;  %v1002_v39 = vpop.f32.mrf.mxu2  ;;  %v1259_v3 = vld [vmem:[#allocation8 + $0x530] sm:$0xff] }
 0x1ae   :  { %v1003_v25 = vadd.f32 %v1002_v39, %v962_v44  ;;  %1695 = vmatpush.msra.mxu0 %v1119_v29  ;;  %1736 = vmatpush.msra.mxu1 %v1183_v46  ;;  %v1111_v5 = vld [vmem:[#allocation8 + $0x90] sm:$0xff] }
 0x1af   :  { %v964_v38 = vpop.f32.mrf.mxu1  ;;  %1773 = vmatpush.msra.mxu2 %v1263_v6  ;;  %1656 = vmatpush.msrb.mxu3 %v1302_v7  ;;  %v1175_v39 = vld [vmem:[#allocation8 + $0x290] sm:$0xff] }
 0x1b0   :  { %v923_v11 = vpop.f32.mrf.mxu0  ;;  %v1043_v26 = vpop.f32.mrf.mxu3  ;;  %1696 = vmatpush.msra.mxu0 %v1115_v55  ;;  %1737 = vmatpush.msra.mxu1 %v1179_v31  ;;  %v1107_v6 = vld [vmem:[#allocation8 + $0x70] sm:$0xff] }
 0x1b1   :  { %v3886_v41 = vadd.f32 %v1043_v26, %v1003_v25  ;;  %v965_v63 = vadd.f32 %v964_v38, %v923_v11  ;;  %v1255_v11 = vld [vmem:[#allocation8 + $0x510] sm:$0xff]  ;;  %1774 = vmatpush.msra.mxu2 %v1259_v3  ;;  %1657 = vmatpush.msrb.mxu3 %v1298_v12 }
 0x1b2   :  { %1588 = vmatmul.f32.gmra.mxu1 %v3772_v37  ;;  %1697 = vmatpush.msra.mxu0 %v1111_v5  ;;  %v1171_v7 = vld [vmem:[#allocation8 + $0x270] sm:$0xff]  ;;  %v1294_v5 = vld [vmem:[#allocation8 + $0x648] sm:$0xff] }
 0x1b3   :  { %4878 = vst [vmem:[#allocation40_spill] sm:$0xff] %v3886_v41  ;;  %1547 = vmatmul.f32.gmra.mxu0 %v3769_v35  ;;  %v3891_v44 = vmax.f32 %v3886_v41, 0.0  ;;  %1738 = vmatpush.msra.mxu1 %v1175_v39  ;;  %v1103_v31 = vld [vmem:[#allocation8 + $0x50] sm:$0xff] }
 0x1b4   :  { %1775 = vmatpush.msra.mxu2 %v1255_v11  ;;  %1698 = vmatpush.msra.mxu0 %v1107_v6  ;;  %v1167_v3 = vld [vmem:[#allocation8 + $0x250] sm:$0xff]  ;;  %v1290_v11 = vld [vmem:[#allocation8 + $0x628] sm:$0xff] }
 0x1b5   :  { %1503 = vmatmul.f32.gmra.mxu3 %v3891_v44  ;;  %1626 = vmatmul.f32.gmra.mxu2 %v3780_v20  ;;  %v1005_v25 = vpop.f32.mrf.mxu2  ;;  %v1247_v39 = vld [vmem:[#allocation8 + $0x4d0] sm:$0xff] }
 0x1b6   :  { %v1006_v38 = vadd.f32 %v1005_v25, %v965_v63  ;;  %1739 = vmatpush.msra.mxu1 %v1171_v7  ;;  %1776 = vmatpush.msra.mxu2 %v1251_v15  ;;  %v1099_v12 = vld [vmem:[#allocation8 + $0x30] sm:$0xff] }
 0x1b7   :  { %v967_v29 = vpop.f32.mrf.mxu1  ;;  %1658 = vmatpush.msrb.mxu3 %v1294_v5  ;;  %v1163_v25 = vld [vmem:[#allocation8 + $0x230] sm:$0xff]  ;;  %1699 = vmatpush.msra.mxu0 %v1103_v31  ;;  %v1286_v31 = vld [vmem:[#allocation8 + $0x608] sm:$0xff] }
 0x1b8   :  { %v926_v26 = vpop.f32.mrf.mxu0  ;;  %v1046_v46 = vpop.f32.mrf.mxu3  ;;  %1740 = vmatpush.msra.mxu1 %v1167_v3  ;;  %1777 = vmatpush.msra.mxu2 %v1247_v39  ;;  %v1095_v15 = vld [vmem:[#allocation8 + $0x10] sm:$0xff] }
 0x1b9   :  { %v3895_v41 = vadd.f32 %v1046_v46, %v1006_v38  ;;  %v968_v55 = vadd.f32 %v967_v29, %v926_v26  ;;  %v1243_v26 = vld [vmem:[#allocation8 + $0x4b0] sm:$0xff]  ;;  %1659 = vmatpush.msrb.mxu3 %v1290_v11  ;;  %1700 = vmatpush.msra.mxu0 %v1099_v12 }
 0x1ba   :  { %1591 = vmatmul.f32.gmra.mxu1 %v3792_v58  ;;  %v1159_v5 = vld [vmem:[#allocation8 + $0x210] sm:$0xff]  ;;  %1778 = vmatpush.msra.mxu2 %v1243_v26 }
 0x1bb   :  { %4879 = vst [vmem:[#allocation41_spill] sm:$0xff] %v3895_v41  ;;  %1550 = vmatmul.f32.gmra.mxu0 %v3789_v57  ;;  %v3900_v63 = vmax.f32 %v3895_v41, 0.0  ;;  %1741 = vmatpush.msra.mxu1 %v1163_v25  ;;  %v1235_v39 = vld [vmem:[#allocation8 + $0x470] sm:$0xff] }
 0x1bc   :  { %1701 = vmatpush.msra.mxu0 %v1095_v15  ;;  %1779 = vmatpush.msra.mxu2 %v1239_v33  ;;  %v1231_v12 = vld [vmem:[#allocation8 + $0x450] sm:$0xff] }
 0x1bd   :  { %1506 = vmatmul.f32.gmra.mxu3 %v3900_v63  ;;  %1629 = vmatmul.f32.gmra.mxu2 %v3800_v62  ;;  %v1008_v38 = vpop.f32.mrf.mxu2  ;;  %v1347_v25 = vld [vmem:[#allocation8 + $0x7f0] sm:$0xff] }
 0x1be   :  { %v1009_v29 = vadd.f32 %v1008_v38, %v968_v55  ;;  %1742 = vmatpush.msra.mxu1 %v1159_v5  ;;  %1660 = vmatpush.msrb.mxu3 %v1286_v31  ;;  %v1343_v33 = vld [vmem:[#allocation8 + $0x7d0] sm:$0xff] }
 0x1bf   :  { %v970_v6 = vpop.f32.mrf.mxu1  ;;  %1780 = vmatpush.msra.mxu2 %v1235_v39  ;;  %v1223_v31 = vld [vmem:[#allocation8 + $0x410] sm:$0xff] }
 0x1c0   :  { %v929_v46 = vpop.f32.mrf.mxu0  ;;  %v1049_v7 = vpop.f32.mrf.mxu3  ;;  %1809 = vmatpush.msra.mxu3 %v1347_v25 }
 0x1c1   :  { %v3904_v41 = vadd.f32 %v1049_v7, %v1009_v29  ;;  %v971_v3 = vadd.f32 %v970_v6, %v929_v46  ;;  %1781 = vmatpush.msra.mxu2 %v1231_v12  ;;  %v1227_v6 = vld [vmem:[#allocation8 + $0x430] sm:$0xff] }
 0x1c2   :  { %1594 = vmatmul.f32.gmra.mxu1 %v3812_v43  ;;  %1810 = vmatpush.msra.mxu3 %v1343_v33  ;;  %v1331_v33 = vld [vmem:[#allocation8 + $0x770] sm:$0xff] }
 0x1c3   :  { %4880 = vst [vmem:[#allocation42_spill] sm:$0xff] %v3904_v41  ;;  %1553 = vmatmul.f32.gmra.mxu0 %v3809_v19  ;;  %v3909_v55 = vmax.f32 %v3904_v41, 0.0  ;;  %1782 = vmatpush.msra.mxu2 %v1227_v6  ;;  %v1136_v41 = vld [vmem:[#allocation8 + $0x158] sm:$0xff] }
 0x1c5   :  { %1509 = vmatmul.f32.gmra.mxu3 %v3909_v55  ;;  %1632 = vmatmul.f32.gmra.mxu2 %v3820_v4  ;;  %v1011_v11 = vpop.f32.mrf.mxu2 }
 0x1c6   :  { %v1012_v38 = vadd.f32 %v1011_v11, %v971_v3  ;;  %v1339_v3 = vld [vmem:[#allocation8 + $0x7b0] sm:$0xff]  ;;  %1783 = vmatpush.msra.mxu2 %v1223_v31 }
 0x1c7   :  { %v973_v29 = vpop.f32.mrf.mxu1  ;;  %1811 = vmatpush.msra.mxu3 %v1339_v3 }
 0x1c8   :  { %v932_v26 = vpop.f32.mrf.mxu0  ;;  %v1052_v46 = vpop.f32.mrf.mxu3 }
 0x1c9   :  { %v3913_v7 = vadd.f32 %v1052_v46, %v1012_v38  ;;  %v974_v15 = vadd.f32 %v973_v29, %v932_v26  ;;  %v1335_v26 = vld [vmem:[#allocation8 + $0x790] sm:$0xff] }
 0x1ca   :  { %1597 = vmatmul.f32.gmra.mxu1 %v3832_v14  ;;  %1812 = vmatpush.msra.mxu3 %v1335_v26  ;;  %v1220_v26 = vld [vmem:[#allocation8 + $0x3f8] sm:$0xff] }
 0x1cb   :  { %4881 = vst [vmem:[#allocation43_spill] sm:$0xff] %v3913_v7  ;;  %1556 = vmatmul.f32.gmra.mxu0 %v3829_v23  ;;  %v3918_v5 = vmax.f32 %v3913_v7, 0.0  ;;  %1891 = vmatpush.msrb.mxu1 %v1220_v26  ;;  %v1148_v7 = vld [vmem:[#allocation8 + $0x1b8] sm:$0xff]  ;;  %v1319_v26 = vld [vmem:[#allocation8 + $0x710] sm:$0xff] }
 0x1cc   :  { %1813 = vmatpush.msra.mxu3 %v1331_v33  ;;  %v1152_v33 = vld [vmem:[#allocation8 + $0x1d8] sm:$0xff] }
 0x1cd   :  { %1512 = vmatmul.f32.gmra.mxu3 %v3918_v5  ;;  %1635 = vmatmul.f32.gmra.mxu2 %v3840_v22  ;;  %v1014_v39 = vpop.f32.mrf.mxu2 }
 0x1ce   :  { %v1015_v12 = vadd.f32 %v1014_v39, %v974_v15 }
 0x1cf   :  { %v976_v11 = vpop.f32.mrf.mxu1 }
 0x1d0   :  { %v935_v25 = vpop.f32.mrf.mxu0  ;;  %v1055_v38 = vpop.f32.mrf.mxu3 }
 0x1d1   :  { %v3922_v46 = vadd.f32 %v1055_v38, %v1015_v12  ;;  %v977_v29 = vadd.f32 %v976_v11, %v935_v25  ;;  %v1327_v25 = vld [vmem:[#allocation8 + $0x750] sm:$0xff]  ;;  %v1156_v11 = vld [vmem:[#allocation8 + $0x1f8] sm:$0xff] }
 0x1d2   :  { %1600 = vmatmul.f32.gmra.mxu1 %v3850_v59  ;;  %1814 = vmatpush.msra.mxu3 %v1327_v25  ;;  %v1144_v25 = vld [vmem:[#allocation8 + $0x198] sm:$0xff] }
 0x1d3   :  { %4882 = vst [vmem:[#allocation44_spill] sm:$0xff] %v3922_v46  ;;  %1559 = vmatmul.f32.gmra.mxu0 %v3847_v49  ;;  %v3927_v6 = vmax.f32 %v3922_v46, 0.0 }
 0x1d4   :  { %1850 = vmatpush.msrb.mxu0 %v1156_v11  ;;  %v1208_v11 = vld [vmem:[#allocation8 + $0x398] sm:$0xff] }
 0x1d5   :  { %1515 = vmatmul.f32.gmra.mxu3 %v3927_v6  ;;  %1638 = vmatmul.f32.gmra.mxu2 %v3857_v34  ;;  %v1017_v15 = vpop.f32.mrf.mxu2 }
 0x1d6   :  { %v1018_v31 = vadd.f32 %v1017_v15, %v977_v29  ;;  %v1323_v29 = vld [vmem:[#allocation8 + $0x730] sm:$0xff]  ;;  %v1216_v15 = vld [vmem:[#allocation8 + $0x3d8] sm:$0xff]  ;;  %1851 = vmatpush.msrb.mxu0 %v1152_v33 }
 0x1d7   :  { %v3933_v39 = vpop.f32.mrf.mxu1  ;;  %1815 = vmatpush.msra.mxu3 %v1323_v29  ;;  %1892 = vmatpush.msrb.mxu1 %v1216_v15  ;;  %v1140_v29 = vld [vmem:[#allocation8 + $0x178] sm:$0xff]  ;;  %v1315_v15 = vld [vmem:[#allocation8 + $0x6f0] sm:$0xff] }
 0x1d8   :  { %v3931_v3 = vpop.f32.mrf.mxu0  ;;  %v1058_v12 = vpop.f32.mrf.mxu3  ;;  %1852 = vmatpush.msrb.mxu0 %v1148_v7  ;;  %v1204_v33 = vld [vmem:[#allocation8 + $0x378] sm:$0xff] }
 0x1d9   :  { %v3935_v38 = vadd.f32 %v1058_v12, %v1018_v31  ;;  %1816 = vmatpush.msra.mxu3 %v1319_v26  ;;  %v1200_v7 = vld [vmem:[#allocation8 + $0x358] sm:$0xff] }
 0x1da   :  { %1743 = vmatmul.f32.vlgmr.msra.gmra.mxu1 %v3716_v2  ;;  %1853 = vmatpush.msrb.mxu0 %v1144_v25  ;;  %v1280_v25 = vld [vmem:[#allocation8 + $0x5d8] sm:$0xff] }
 0x1db   :  { %4883 = vst [vmem:[#allocation45_spill] sm:$0xff] %v3935_v38  ;;  %1702 = vmatmul.f32.vlgmr.msra.gmra.mxu0 %v3713_v60  ;;  %v3940_v46 = vmax.f32 %v3935_v38, 0.0  ;;  %v1212_v38 = vld [vmem:[#allocation8 + $0x3b8] sm:$0xff]  ;;  %1817 = vmatpush.msra.mxu3 %v1315_v15 }
 0x1dc   :  { %1893 = vmatpush.msrb.mxu1 %v1212_v38  ;;  %1854 = vmatpush.msrb.mxu0 %v1140_v29  ;;  %v1284_v38 = vld [vmem:[#allocation8 + $0x5f8] sm:$0xff]  ;;  %v1311_v29 = vld [vmem:[#allocation8 + $0x6d0] sm:$0xff] }
 0x1dd   :  { %1518 = vmatmul.f32.gmra.mxu3 %v3940_v46  ;;  %1641 = vmatmul.f32.gmra.mxu2 %v3865_v8  ;;  %v1272_v15 = vld [vmem:[#allocation8 + $0x598] sm:$0xff] }
 0x1de   :  { %1894 = vmatpush.msrb.mxu1 %v1208_v11  ;;  %1932 = vmatpush.msrb.mxu2 %v1284_v38  ;;  %v1132_v11 = vld [vmem:[#allocation8 + $0x138] sm:$0xff]  ;;  %v1307_v38 = vld [vmem:[#allocation8 + $0x6b0] sm:$0xff] }
 0x1df   :  { %v3946_v12 = vpop.f32.mrf.mxu1  ;;  %1855 = vmatpush.msrb.mxu0 %v1136_v41  ;;  %1818 = vmatpush.msra.mxu3 %v1311_v29  ;;  %v1124_v41 = vld [vmem:[#allocation8 + $0xf8] sm:$0xff] }
 0x1e0   :  { %v3944_v31 = vpop.f32.mrf.mxu0  ;;  %1895 = vmatpush.msrb.mxu1 %v1204_v33  ;;  %1933 = vmatpush.msrb.mxu2 %v1280_v25  ;;  %v1128_v33 = vld [vmem:[#allocation8 + $0x118] sm:$0xff] }
 0x1e1   :  { %1856 = vmatpush.msrb.mxu0 %v1132_v11  ;;  %v1268_v25 = vld [vmem:[#allocation8 + $0x578] sm:$0xff]  ;;  %1819 = vmatpush.msra.mxu3 %v1307_v38  ;;  %v1299_v38 = vld [vmem:[#allocation8 + $0x670] sm:$0xff] }
 0x1e2   :  { %1746 = vmatmul.f32.gmra.mxu1 %v3732_v52  ;;  %1934 = vmatpush.msrb.mxu2 %v1276_v40  ;;  %v1120_v40 = vld [vmem:[#allocation8 + $0xd8] sm:$0xff] }
 0x1e3   :  { %1705 = vmatmul.f32.gmra.mxu0 %v3729_v0  ;;  %1896 = vmatpush.msrb.mxu1 %v1200_v7  ;;  %v1188_v7 = vld [vmem:[#allocation8 + $0x2f8] sm:$0xff] }
 0x1e4   :  { %1857 = vmatpush.msrb.mxu0 %v1128_v33  ;;  %1935 = vmatpush.msrb.mxu2 %v1272_v15  ;;  %v1184_v11 = vld [vmem:[#allocation8 + $0x2d8] sm:$0xff] }
 0x1e5   :  { %1661 = vmatmul.f32.vlgmr.msrb.gmra.mxu3 %v3873_v45  ;;  %1784 = vmatmul.f32.vlgmr.msra.gmra.mxu2 %v3740_v50  ;;  %v1264_v29 = vld [vmem:[#allocation8 + $0x558] sm:$0xff] }
 0x1e6   :  { %1897 = vmatpush.msrb.mxu1 %v1196_v32  ;;  %1858 = vmatpush.msrb.mxu0 %v1124_v41  ;;  %v1116_v33 = vld [vmem:[#allocation8 + $0xb8] sm:$0xff] }
 0x1e7   :  { %v3954_v21 = vpop.f32.mrf.mxu1  ;;  %1936 = vmatpush.msrb.mxu2 %v1268_v25  ;;  %v1260_v15 = vld [vmem:[#allocation8 + $0x538] sm:$0xff] }
 0x1e8   :  { %v3952_v24 = vpop.f32.mrf.mxu0  ;;  %v3956_v26 = vpop.f32.mrf.mxu2  ;;  %1898 = vmatpush.msrb.mxu1 %v1192_v30  ;;  %v1303_v30 = vld [vmem:[#allocation8 + $0x690] sm:$0xff]  ;;  %1859 = vmatpush.msrb.mxu0 %v1120_v40  ;;  %v1112_v41 = vld [vmem:[#allocation8 + $0x98] sm:$0xff] }
 0x1e9   :  { %1937 = vmatpush.msrb.mxu2 %v1264_v29  ;;  %1820 = vmatpush.msra.mxu3 %v1303_v30  ;;  %v1256_v25 = vld [vmem:[#allocation8 + $0x518] sm:$0xff] }
 0x1ea   :  { %1749 = vmatmul.f32.gmra.mxu1 %v3752_v48  ;;  %1860 = vmatpush.msrb.mxu0 %v1116_v33  ;;  %v1108_v40 = vld [vmem:[#allocation8 + $0x78] sm:$0xff] }
 0x1eb   :  { %1708 = vmatmul.f32.gmra.mxu0 %v3749_v27  ;;  %1899 = vmatpush.msrb.mxu1 %v1188_v7  ;;  %v1176_v7 = vld [vmem:[#allocation8 + $0x298] sm:$0xff] }
 0x1ec   :  { %1938 = vmatpush.msrb.mxu2 %v1260_v15  ;;  %1821 = vmatpush.msra.mxu3 %v1299_v38  ;;  %v1252_v29 = vld [vmem:[#allocation8 + $0x4f8] sm:$0xff]  ;;  %v1291_v38 = vld [vmem:[#allocation8 + $0x630] sm:$0xff] }
 0x1ed   :  { %1664 = vmatmul.f32.gmra.mxu3 %v3882_v28  ;;  %1787 = vmatmul.f32.gmra.mxu2 %v3760_v1  ;;  %v1104_v33 = vld [vmem:[#allocation8 + $0x58] sm:$0xff] }
 0x1ee   :  { %1900 = vmatpush.msrb.mxu1 %v1184_v11  ;;  %1861 = vmatpush.msrb.mxu0 %v1112_v41  ;;  %v1172_v11 = vld [vmem:[#allocation8 + $0x278] sm:$0xff] }
 0x1ef   :  { %v3964_v18 = vpop.f32.mrf.mxu1  ;;  %1939 = vmatpush.msrb.mxu2 %v1256_v25  ;;  %v1248_v15 = vld [vmem:[#allocation8 + $0x4d8] sm:$0xff] }
 0x1f0   :  { %v3962_v56 = vpop.f32.mrf.mxu0  ;;  %v3966_v32 = vpop.f32.mrf.mxu2  ;;  %1901 = vmatpush.msrb.mxu1 %v1180_v9  ;;  %v1295_v9 = vld [vmem:[#allocation8 + $0x650] sm:$0xff]  ;;  %1862 = vmatpush.msrb.mxu0 %v1108_v40  ;;  %v1100_v41 = vld [vmem:[#allocation8 + $0x38] sm:$0xff] }
 0x1f1   :  { %1940 = vmatpush.msrb.mxu2 %v1252_v29  ;;  %1822 = vmatpush.msra.mxu3 %v1295_v9  ;;  %v1244_v25 = vld [vmem:[#allocation8 + $0x4b8] sm:$0xff]  ;;  %v1287_v9 = vld [vmem:[#allocation8 + $0x610] sm:$0xff] }
 0x1f2   :  { %1752 = vmatmul.f32.gmra.mxu1 %v3772_v37  ;;  %1863 = vmatpush.msrb.mxu0 %v1104_v33  ;;  %v1096_v40 = vld [vmem:[#allocation8 + $0x18] sm:$0xff] }
 0x1f3   :  { %1711 = vmatmul.f32.gmra.mxu0 %v3769_v35  ;;  %1902 = vmatpush.msrb.mxu1 %v1176_v7  ;;  %v1164_v7 = vld [vmem:[#allocation8 + $0x238] sm:$0xff] }
 0x1f4   :  { %1941 = vmatpush.msrb.mxu2 %v1248_v15  ;;  %1823 = vmatpush.msra.mxu3 %v1291_v38  ;;  %v1240_v29 = vld [vmem:[#allocation8 + $0x498] sm:$0xff] }
 0x1f5   :  { %1667 = vmatmul.f32.gmra.mxu3 %v3891_v44  ;;  %1790 = vmatmul.f32.gmra.mxu2 %v3780_v20  ;;  %v1232_v15 = vld [vmem:[#allocation8 + $0x458] sm:$0xff] }
 0x1f6   :  { %1903 = vmatpush.msrb.mxu1 %v1172_v11  ;;  %1864 = vmatpush.msrb.mxu0 %v1100_v41  ;;  %v1160_v11 = vld [vmem:[#allocation8 + $0x218] sm:$0xff] }
 0x1f7   :  { %v3974_v42 = vpop.f32.mrf.mxu1  ;;  %1942 = vmatpush.msrb.mxu2 %v1244_v25  ;;  %1824 = vmatpush.msra.mxu3 %v1287_v9  ;;  %v1348_v41 = vld [vmem:[#allocation8 + $0x7f8] sm:$0xff] }
 0x1f8   :  { %v3972_v17 = vpop.f32.mrf.mxu0  ;;  %v3976_v30 = vpop.f32.mrf.mxu2  ;;  %1904 = vmatpush.msrb.mxu1 %v1168_v16  ;;  %1865 = vmatpush.msrb.mxu0 %v1096_v40  ;;  %v1236_v16 = vld [vmem:[#allocation8 + $0x478] sm:$0xff] }
 0x1f9   :  { %1943 = vmatpush.msrb.mxu2 %v1240_v29  ;;  %1973 = vmatpush.msrb.mxu3 %v1348_v41  ;;  %v1228_v25 = vld [vmem:[#allocation8 + $0x438] sm:$0xff] }
 0x1fa   :  { %1755 = vmatmul.f32.gmra.mxu1 %v3792_v58  ;;  %v1224_v40 = vld [vmem:[#allocation8 + $0x418] sm:$0xff] }
 0x1fb   :  { %1714 = vmatmul.f32.gmra.mxu0 %v3789_v57  ;;  %1905 = vmatpush.msrb.mxu1 %v1164_v7  ;;  %v1340_v29 = vld [vmem:[#allocation8 + $0x7b8] sm:$0xff] }
 0x1fc   :  { %1944 = vmatpush.msrb.mxu2 %v1236_v16  ;;  %v1336_v41 = vld [vmem:[#allocation8 + $0x798] sm:$0xff] }
 0x1fd   :  { %1670 = vmatmul.f32.gmra.mxu3 %v3900_v63  ;;  %1793 = vmatmul.f32.gmra.mxu2 %v3800_v62 }
 0x1fe   :  { %1906 = vmatpush.msrb.mxu1 %v1160_v11  ;;  %1945 = vmatpush.msrb.mxu2 %v1232_v15  ;;  %v1344_v11 = vld [vmem:[#allocation8 + $0x7d8] sm:$0xff] }
 0x1ff   :  { %v3984_v61 = vpop.f32.mrf.mxu1  ;;  %1974 = vmatpush.msrb.mxu3 %v1344_v11 }
 0x200   :  { %v3982_v51 = vpop.f32.mrf.mxu0  ;;  %v3988_v33 = vpop.f32.mrf.mxu2  ;;  %1946 = vmatpush.msrb.mxu2 %v1228_v25  ;;  %v1332_v25 = vld [vmem:[#allocation8 + $0x778] sm:$0xff] }
 0x201   :  { %1975 = vmatpush.msrb.mxu3 %v1340_v29  ;;  %v2138_v29 = vld [vmem:[#allocation10 + $0x1e0] sm:$0xff] }
 0x202   :  { %1758 = vmatmul.f32.gmra.mxu1 %v3812_v43  ;;  %1947 = vmatpush.msrb.mxu2 %v1224_v40 }
 0x203   :  { %1717 = vmatmul.f32.gmra.mxu0 %v3809_v19  ;;  %1976 = vmatpush.msrb.mxu3 %v1336_v41  ;;  %v2134_v41 = vld [vmem:[#allocation10 + $0x1c0] sm:$0xff] }
 0x204   :  { %2334 = vmatpush.msra.mxu0 %v2138_v29  ;;  %v2122_v29 = vld [vmem:[#allocation10 + $0x160] sm:$0xff] }
 0x205   :  { %1673 = vmatmul.f32.gmra.mxu3 %v3909_v55  ;;  %1796 = vmatmul.f32.gmra.mxu2 %v3820_v4 }
 0x206   :  { %1977 = vmatpush.msrb.mxu3 %v1332_v25  ;;  %2335 = vmatpush.msra.mxu0 %v2134_v41  ;;  %v2130_v25 = vld [vmem:[#allocation10 + $0x1a0] sm:$0xff]  ;;  %v1316_v41 = vld [vmem:[#allocation8 + $0x6f8] sm:$0xff] }
 0x207   :  { %v3994_v38 = vpop.f32.mrf.mxu1 }
 0x208   :  { %v3992_v7 = vpop.f32.mrf.mxu0  ;;  %4885 = vst [vmem:[#allocation47_spill] sm:$0xff] %v3994_v38  ;;  %v4000_v9 = vpop.f32.mrf.mxu2  ;;  %2336 = vmatpush.msra.mxu0 %v2130_v25 }
 0x209   :  { %4884 = vst [vmem:[#allocation46_spill] sm:$0xff] %v3992_v7 }
 0x20a   :  { %1761 = vmatmul.f32.gmra.mxu1 %v3832_v14 }
 0x20b   :  { %1720 = vmatmul.f32.gmra.mxu0 %v3829_v23 }
 0x20d   :  { %1676 = vmatmul.f32.gmra.mxu3 %v3918_v5  ;;  %1799 = vmatmul.f32.gmra.mxu2 %v3840_v22 }
 0x20f   :  { %v4004_v15 = vpop.f32.mrf.mxu1 }
 0x210   :  { %v4002_v16 = vpop.f32.mrf.mxu0  ;;  %4887 = vst [vmem:[#allocation49_spill] sm:$0xff] %v4004_v15  ;;  %v4014_v11 = vpop.f32.mrf.mxu2  ;;  %v1328_v15 = vld [vmem:[#allocation8 + $0x758] sm:$0xff] }
 0x211   :  { %4886 = vst [vmem:[#allocation48_spill] sm:$0xff] %v4002_v16  ;;  %v1324_v16 = vld [vmem:[#allocation8 + $0x738] sm:$0xff]  ;;  %1978 = vmatpush.msrb.mxu3 %v1328_v15 }
 0x212   :  { %1764 = vmatmul.f32.gmra.mxu1 %v3850_v59  ;;  %4888 = vst [vmem:[#allocation50_spill] sm:$0xff] %v4014_v11  ;;  %v1320_v15 = vld [vmem:[#allocation8 + $0x718] sm:$0xff]  ;;  %v2118_v11 = vld [vmem:[#allocation10 + $0x140] sm:$0xff] }
 0x213   :  { %1723 = vmatmul.f32.gmra.mxu0 %v3847_v49  ;;  %1979 = vmatpush.msrb.mxu3 %v1324_v16 }
 0x215   :  { %1679 = vmatmul.f32.gmra.mxu3 %v3927_v6  ;;  %1802 = vmatmul.f32.gmra.mxu2 %v3857_v34 }
 0x216   :  { %1980 = vmatpush.msrb.mxu3 %v1320_v15  ;;  %v1308_v15 = vld [vmem:[#allocation8 + $0x6b8] sm:$0xff] }
 0x217   :  { %v4012_v40 = vpop.f32.mrf.mxu1 }
 0x218   :  { %v4010_v38 = vpop.f32.mrf.mxu0  ;;  %1981 = vmatpush.msrb.mxu3 %v1316_v41 }
 0x21a   :  { %1907 = vmatmul.f32.vlgmr.msrb.gmra.mxu1 %v3716_v2  ;;  %v4024_v2 = vpop.f32.mrf.mxu2 }
 0x21b   :  { %1866 = vmatmul.f32.vlgmr.msrb.gmra.mxu0 %v3713_v60  ;;  %v2126_v60 = vld [vmem:[#allocation10 + $0x180] sm:$0xff]  ;;  %4889 = vst [vmem:[#allocation51_spill] sm:$0xff] %v4024_v2 }
 0x21c   :  { %2337 = vmatpush.msra.mxu0 %v2126_v60  ;;  %v1312_v60 = vld [vmem:[#allocation8 + $0x6d8] sm:$0xff] }
 0x21d   :  { %1682 = vmatmul.f32.gmra.mxu3 %v3940_v46  ;;  %1805 = vmatmul.f32.gmra.mxu2 %v3865_v8 }
 0x21e   :  { %2338 = vmatpush.msra.mxu0 %v2122_v29  ;;  %v2106_v29 = vld [vmem:[#allocation10 + $0xe0] sm:$0xff]  ;;  %1982 = vmatpush.msrb.mxu3 %v1312_v60  ;;  %v1304_v60 = vld [vmem:[#allocation8 + $0x698] sm:$0xff] }
 0x21f   :  { %v4022_v10 = vpop.f32.mrf.mxu1 }
 0x220   :  { %v4020_v7 = vpop.f32.mrf.mxu0  ;;  %2339 = vmatpush.msra.mxu0 %v2118_v11  ;;  %1983 = vmatpush.msrb.mxu3 %v1308_v15  ;;  %v2190_v15 = vld [vmem:[#allocation10 + $0x380] sm:$0xff] }
 0x222   :  { %1910 = vmatmul.f32.gmra.mxu1 %v3732_v52  ;;  %v2110_v52 = vld [vmem:[#allocation10 + $0x100] sm:$0xff]  ;;  %1984 = vmatpush.msrb.mxu3 %v1304_v60  ;;  %v1296_v60 = vld [vmem:[#allocation8 + $0x658] sm:$0xff] }
 0x223   :  { %1869 = vmatmul.f32.gmra.mxu0 %v3729_v0  ;;  %v2114_v0 = vld [vmem:[#allocation10 + $0x120] sm:$0xff] }
 0x224   :  { %2340 = vmatpush.msra.mxu0 %v2114_v0  ;;  %v2198_v0 = vld [vmem:[#allocation10 + $0x3c0] sm:$0xff] }
 0x225   :  { %1825 = vmatmul.f32.vlgmr.msra.gmra.mxu3 %v3873_v45  ;;  %1948 = vmatmul.f32.vlgmr.msrb.gmra.mxu2 %v3740_v50  ;;  %v4038_v50 = vpop.f32.mrf.mxu2 }
 0x226   :  { %4891 = vst [vmem:[#allocation53_spill] sm:$0xff] %v4038_v50  ;;  %2341 = vmatpush.msra.mxu0 %v2110_v52  ;;  %v2194_v52 = vld [vmem:[#allocation10 + $0x3a0] sm:$0xff] }
 0x227   :  { %v4032_v25 = vpop.f32.mrf.mxu1  ;;  %v2094_v50 = vld [vmem:[#allocation10 + $0x80] sm:$0xff] }
 0x228   :  { %v4030_v16 = vpop.f32.mrf.mxu0  ;;  %4890 = vst [vmem:[#allocation52_spill] sm:$0xff] %v4032_v25  ;;  %v4034_v2 = vpop.f32.mrf.mxu3  ;;  %2342 = vmatpush.msra.mxu0 %v2106_v29 }
 0x22a   :  { %1913 = vmatmul.f32.gmra.mxu1 %v3752_v48  ;;  %v2102_v48 = vld [vmem:[#allocation10 + $0xc0] sm:$0xff] }
 0x22b   :  { %1872 = vmatmul.f32.gmra.mxu0 %v3749_v27  ;;  %v2202_v27 = vld [vmem:[#allocation10 + $0x3e0] sm:$0xff] }
 0x22c   :  { %2375 = vmatpush.msra.mxu1 %v2202_v27  ;;  %2343 = vmatpush.msra.mxu0 %v2102_v48  ;;  %v2090_v48 = vld [vmem:[#allocation10 + $0x60] sm:$0xff] }
 0x22d   :  { %1828 = vmatmul.f32.gmra.mxu3 %v3882_v28  ;;  %1951 = vmatmul.f32.gmra.mxu2 %v3760_v1  ;;  %v2098_v1 = vld [vmem:[#allocation10 + $0xa0] sm:$0xff]  ;;  %v4052_v29 = vpop.f32.mrf.mxu2 }
 0x22e   :  { %2376 = vmatpush.msra.mxu1 %v2198_v0  ;;  %2344 = vmatpush.msra.mxu0 %v2098_v1  ;;  %v2186_v0 = vld [vmem:[#allocation10 + $0x360] sm:$0xff] }
 0x22f   :  { %v4044_v11 = vpop.f32.mrf.mxu1  ;;  %v2182_v1 = vld [vmem:[#allocation10 + $0x340] sm:$0xff] }
 0x230   :  { %v4042_v41 = vpop.f32.mrf.mxu0  ;;  %4892 = vst [vmem:[#allocation54_spill] sm:$0xff] %v4044_v11  ;;  %v4046_v25 = vpop.f32.mrf.mxu3  ;;  %v1300_v11 = vld [vmem:[#allocation8 + $0x678] sm:$0xff]  ;;  %2377 = vmatpush.msra.mxu1 %v2194_v52  ;;  %2345 = vmatpush.msra.mxu0 %v2094_v50  ;;  %v2082_v52 = vld [vmem:[#allocation10 + $0x20] sm:$0xff] }
 0x231   :  { %1985 = vmatpush.msrb.mxu3 %v1300_v11  ;;  %v2178_v50 = vld [vmem:[#allocation10 + $0x320] sm:$0xff] }
 0x232   :  { %1916 = vmatmul.f32.gmra.mxu1 %v3772_v37  ;;  %2346 = vmatpush.msra.mxu0 %v2090_v48  ;;  %v2078_v48 = vld [vmem:[#allocation10] sm:$0xff] }
 0x233   :  { %1875 = vmatmul.f32.gmra.mxu0 %v3769_v35  ;;  %2378 = vmatpush.msra.mxu1 %v2190_v15 }
 0x234   :  { %1986 = vmatpush.msrb.mxu3 %v1296_v60  ;;  %v1288_v60 = vld [vmem:[#allocation8 + $0x618] sm:$0xff] }
 0x235   :  { %1831 = vmatmul.f32.gmra.mxu3 %v3891_v44  ;;  %1954 = vmatmul.f32.gmra.mxu2 %v3780_v20  ;;  %v2086_v20 = vld [vmem:[#allocation10 + $0x40] sm:$0xff] }
 0x236   :  { %2379 = vmatpush.msra.mxu1 %v2186_v0  ;;  %2347 = vmatpush.msra.mxu0 %v2086_v20  ;;  %v2174_v0 = vld [vmem:[#allocation10 + $0x300] sm:$0xff] }
 0x237   :  { %v4056_v35 = vpop.f32.mrf.mxu1  ;;  %v2170_v20 = vld [vmem:[#allocation10 + $0x2e0] sm:$0xff] }
 0x238   :  { %v4054_v27 = vpop.f32.mrf.mxu0  ;;  %4893 = vst [vmem:[#allocation55_spill] sm:$0xff] %v4056_v35  ;;  %v4058_v37 = vpop.f32.mrf.mxu3  ;;  %v1292_v35 = vld [vmem:[#allocation8 + $0x638] sm:$0xff]  ;;  %2380 = vmatpush.msra.mxu1 %v2182_v1  ;;  %2348 = vmatpush.msra.mxu0 %v2082_v52 }
 0x239   :  { %1987 = vmatpush.msrb.mxu3 %v1292_v35  ;;  %v2166_v35 = vld [vmem:[#allocation10 + $0x2c0] sm:$0xff] }
 0x23a   :  { %1919 = vmatmul.f32.gmra.mxu1 %v3792_v58  ;;  %2349 = vmatpush.msra.mxu0 %v2078_v48  ;;  %v2162_v48 = vld [vmem:[#allocation10 + $0x2a0] sm:$0xff] }
 0x23b   :  { %1878 = vmatmul.f32.gmra.mxu0 %v3789_v57  ;;  %v4068_v57 = vpop.f32.mrf.mxu2  ;;  %2381 = vmatpush.msra.mxu1 %v2178_v50 }
 0x23c   :  { %1988 = vmatpush.msrb.mxu3 %v1288_v60  ;;  %v2154_v60 = vld [vmem:[#allocation10 + $0x260] sm:$0xff] }
 0x23d   :  { %1834 = vmatmul.f32.gmra.mxu3 %v3900_v63  ;;  %1957 = vmatmul.f32.gmra.mxu2 %v3800_v62  ;;  %v4072_v62 = vld [vmem:[#allocation11] sm:$0xf] }
 0x23e   :  { %2382 = vmatpush.msra.mxu1 %v2174_v0  ;;  %v4077_v1 = vperm.slane %v4072_v62, 0 }
 0x23f   :  { %v4066_v15 = vpop.f32.mrf.mxu1 }
 0x240   :  { %v4064_v11 = vpop.f32.mrf.mxu0  ;;  %v4070_v58 = vpop.f32.mrf.mxu3  ;;  %2383 = vmatpush.msra.mxu1 %v2170_v20 }
 0x242   :  { %1922 = vmatmul.f32.gmra.mxu1 %v3812_v43 }
 0x243   :  { %1881 = vmatmul.f32.gmra.mxu0 %v3809_v19  ;;  %v1376_v19 = vadd.f32 %v3931_v3, %v4077_v1  ;;  %2384 = vmatpush.msra.mxu1 %v2166_v35  ;;  %v4089_v0 = vpop.f32.mrf.mxu2 }
 0x245   :  { %1837 = vmatmul.f32.gmra.mxu3 %v3909_v55  ;;  %1960 = vmatmul.f32.gmra.mxu2 %v3820_v4  ;;  %v2158_v4 = vld [vmem:[#allocation10 + $0x280] sm:$0xff]  ;;  %v1417_v20 = vadd.f32 %v3933_v39, %v1376_v19 }
 0x246   :  { %2385 = vmatpush.msra.mxu1 %v2162_v48  ;;  %v2150_v39 = vld [vmem:[#allocation10 + $0x240] sm:$0xff] }
 0x247   :  { %v4083_v50 = vpop.f32.mrf.mxu1  ;;  %v1458_v3 = vadd.f32 %v3956_v26, %v1417_v20 }
 0x248   :  { %v4081_v52 = vpop.f32.mrf.mxu0  ;;  %4894 = vst [vmem:[#allocation56_spill] sm:$0xff] %v4083_v50  ;;  %v4087_v43 = vpop.f32.mrf.mxu3  ;;  %2386 = vmatpush.msra.mxu1 %v2158_v4 }
 0x24a   :  { %1925 = vmatmul.f32.gmra.mxu1 %v3832_v14  ;;  %v1499_v14 = vadd.f32 %v4034_v2, %v1458_v3 }
 0x24b   :  { %1884 = vmatmul.f32.gmra.mxu0 %v3829_v23  ;;  %v1379_v23 = vadd.f32 %v3944_v31, %v4077_v1  ;;  %2387 = vmatpush.msra.mxu1 %v2154_v60  ;;  %v4109_v4 = vpop.f32.mrf.mxu2  ;;  %v2142_v31 = vld [vmem:[#allocation10 + $0x200] sm:$0xff] }
 0x24c   :  { %v2014_v19 = vmax.f32 %v1499_v14, 0.0  ;;  %v4129_v14 = vperm.slane %v4072_v62, 1 }
 0x24d   :  { %1840 = vmatmul.f32.gmra.mxu3 %v3918_v5  ;;  %1963 = vmatmul.f32.gmra.mxu2 %v3840_v22  ;;  %v2146_v22 = vld [vmem:[#allocation10 + $0x220] sm:$0xff]  ;;  %v1420_v26 = vadd.f32 %v3946_v12, %v1379_v23 }
 0x24e   :  { %2388 = vmatpush.msra.mxu1 %v2150_v39  ;;  %v4121_v12 = vadd.f32 %v2014_v19, %v3598_v54  ;;  %v2135_v54 = vld [vmem:[#allocation10 + $0x1c8] sm:$0xff] }
 0x24f   :  { %v4099_v50 = vpop.f32.mrf.mxu1  ;;  %v1461_v2 = vadd.f32 %v3966_v32, %v1420_v26  ;;  %v1385_v26 = vadd.f32 %v3962_v56, %v4077_v1 }
 0x250   :  { %v4097_v35 = vpop.f32.mrf.mxu0  ;;  %v4104_v48 = vpop.f32.mrf.mxu3  ;;  %2389 = vmatpush.msra.mxu1 %v2146_v22 }
 0x251   :  { %v1502_v60 = vadd.f32 %v4046_v25, %v1461_v2  ;;  %v2127_v2 = vld [vmem:[#allocation10 + $0x188] sm:$0xff] }
 0x252   :  { %1928 = vmatmul.f32.gmra.mxu1 %v3850_v59  ;;  %v1382_v59 = vadd.f32 %v3952_v24, %v4077_v1 }
 0x253   :  { %1887 = vmatmul.f32.gmra.mxu0 %v3847_v49  ;;  %2390 = vmatpush.msra.mxu1 %v2142_v31  ;;  %v2018_v23 = vmax.f32 %v1502_v60, 0.0  ;;  %v4134_v25 = vpop.f32.mrf.mxu2  ;;  %v1426_v60 = vadd.f32 %v3964_v18, %v1385_v26  ;;  %v1388_v18 = vadd.f32 %v3972_v17, %v4077_v1  ;;  %v2111_v26 = vld [vmem:[#allocation10 + $0x108] sm:$0xff] }
 0x254   :  { %v1423_v32 = vadd.f32 %v3954_v21, %v1382_v59  ;;  %v2131_v21 = vld [vmem:[#allocation10 + $0x1a8] sm:$0xff] }
 0x255   :  { %1843 = vmatmul.f32.gmra.mxu3 %v3927_v6  ;;  %1966 = vmatmul.f32.gmra.mxu2 %v3857_v34  ;;  %v2139_v34 = vld [vmem:[#allocation10 + $0x1e8] sm:$0xff]  ;;  %v4143_v19 = vadd.f32 %v2018_v23, %v3604_v13  ;;  %v1429_v17 = vadd.f32 %v3974_v42, %v1388_v18  ;;  %v2266_v42 = vld [vmem:[#allocation10 + $0x5e0] sm:$0xff] }
 0x256   :  { %2498 = vmatpush.msrb.mxu0 %v2139_v34  ;;  %v1464_v24 = vadd.f32 %v3976_v30, %v1423_v32  ;;  %v1540_v30 = vadd.f32 %v4010_v38, %v4129_v14  ;;  %v2123_v59 = vld [vmem:[#allocation10 + $0x168] sm:$0xff]  ;;  %2416 = vmatpush.msra.mxu2 %v2266_v42 }
 0x257   :  { %v4116_v49 = vpop.f32.mrf.mxu1  ;;  %v2119_v13 = vld [vmem:[#allocation10 + $0x148] sm:$0xff] }
 0x258   :  { %v4114_v20 = vpop.f32.mrf.mxu0  ;;  %v4124_v3 = vpop.f32.mrf.mxu3  ;;  %2499 = vmatpush.msrb.mxu0 %v2135_v54  ;;  %v1505_v31 = vadd.f32 %v4058_v37, %v1464_v24  ;;  %v1581_v56 = vadd.f32 %v4012_v40, %v1540_v30  ;;  %v1467_v37 = vadd.f32 %v3988_v33, %v1426_v60  ;;  %v2115_v54 = vld [vmem:[#allocation10 + $0x128] sm:$0xff]  ;;  %v1543_v33 = vadd.f32 %v4020_v7, %v4129_v14 }
 0x259   :  { %v2107_v30 = vld [vmem:[#allocation10 + $0xe8] sm:$0xff] }
 0x25a   :  { %2500 = vmatpush.msrb.mxu0 %v2131_v21  ;;  %v2022_v34 = vmax.f32 %v1505_v31, 0.0  ;;  %v1622_v32 = vadd.f32 %v4052_v29, %v1581_v56  ;;  %v2103_v7 = vld [vmem:[#allocation10 + $0xc8] sm:$0xff] }
 0x25b   :  { %2350 = vmatmul.f32.vlgmr.msra.gmra.mxu0 %v4121_v12  ;;  %v4166_v40 = vpop.f32.mrf.mxu2  ;;  %v2095_v18 = vld [vmem:[#allocation10 + $0x88] sm:$0xff] }
 0x25c   :  { %2501 = vmatpush.msrb.mxu0 %v2127_v2  ;;  %v4163_v24 = vadd.f32 %v2022_v34, %v3610_v36  ;;  %v1584_v2 = vadd.f32 %v4022_v10, %v1543_v33  ;;  %v2099_v10 = vld [vmem:[#allocation10 + $0xa8] sm:$0xff] }
 0x25d   :  { %1846 = vmatmul.f32.gmra.mxu3 %v3940_v46  ;;  %1969 = vmatmul.f32.gmra.mxu2 %v3865_v8  ;;  %v2195_v33 = vld [vmem:[#allocation10 + $0x3a8] sm:$0xff] }
 0x25e   :  { %2502 = vmatpush.msrb.mxu0 %v2123_v59  ;;  %v1470_v59 = vadd.f32 %v4000_v9, %v1429_v17  ;;  %v1625_v60 = vadd.f32 %v4068_v57, %v1584_v2  ;;  %v1546_v57 = vadd.f32 %v4030_v16, %v4129_v14  ;;  %v4895_v16 = vld [vmem:[#allocation52_spill] sm:$0xff] }
 0x25f   :  { %v4138_v22 = vpop.f32.mrf.mxu1  ;;  %v2087_v2 = vld [vmem:[#allocation10 + $0x48] sm:$0xff] }
 0x260   :  { %v4136_v39 = vpop.f32.mrf.mxu0  ;;  %v4146_v8 = vpop.f32.mrf.mxu3  ;;  %2503 = vmatpush.msrb.mxu0 %v2119_v13  ;;  %v2203_v13 = vld [vmem:[#allocation10 + $0x3e8] sm:$0xff]  ;;  %v1511_v9 = vadd.f32 %v4087_v43, %v1470_v59  ;;  %v4897_v59 = vld [vmem:[#allocation50_spill] sm:$0xff] }
 0x261   :  { %2539 = vmatpush.msrb.mxu1 %v2203_v13  ;;  %v2091_v43 = vld [vmem:[#allocation10 + $0x68] sm:$0xff]  ;;  %v2250_v13 = vld [vmem:[#allocation10 + $0x560] sm:$0xff] }
 0x262   :  { %2504 = vmatpush.msrb.mxu0 %v2115_v54  ;;  %v2262_v54 = vld [vmem:[#allocation10 + $0x5c0] sm:$0xff] }
 0x263   :  { %2353 = vmatmul.f32.gmra.mxu0 %v4143_v19  ;;  %2417 = vmatpush.msra.mxu2 %v2262_v54 }
 0x264   :  { %2505 = vmatpush.msrb.mxu0 %v2111_v26  ;;  %v2030_v26 = vmax.f32 %v1511_v9, 0.0  ;;  %v4898_v9 = vld [vmem:[#allocation46_spill] sm:$0xff] }
 0x265   :  { %1989 = vmatmul.f32.vlgmr.msrb.gmra.mxu3 %v3873_v45  ;;  %v1508_v45 = vadd.f32 %v4070_v58, %v1467_v37 }
 0x266   :  { %2506 = vmatpush.msrb.mxu0 %v2107_v30  ;;  %v4896_v30 = vld [vmem:[#allocation23_spill] sm:$0xff] }
 0x267   :  { %v4158_v38 = vpop.f32.mrf.mxu1  ;;  %v2026_v36 = vmax.f32 %v1508_v45, 0.0  ;;  %v2199_v45 = vld [vmem:[#allocation10 + $0x3c8] sm:$0xff] }
 0x268   :  { %v4156_v23 = vpop.f32.mrf.mxu0  ;;  %v1662_v21 = vpop.f32.mrf.mxu3  ;;  %2507 = vmatpush.msrb.mxu0 %v2103_v7  ;;  %2540 = vmatpush.msrb.mxu1 %v2199_v45  ;;  %v2191_v7 = vld [vmem:[#allocation10 + $0x388] sm:$0xff] }
 0x269   :  { %v1663_v29 = vadd.f32 %v1662_v21, %v1622_v32  ;;  %v4192_v21 = vpop.f32.mrf.mxu2 }
 0x26a   :  { %2508 = vmatpush.msrb.mxu0 %v2099_v10  ;;  %2541 = vmatpush.msrb.mxu1 %v2195_v33 }
 0x26b   :  { %2356 = vmatmul.f32.gmra.mxu0 %v4163_v24  ;;  %v2015_v31 = vmax.f32 %v1663_v29, 0.0 }
 0x26c   :  { %2509 = vmatpush.msrb.mxu0 %v2095_v18  ;;  %2542 = vmatpush.msrb.mxu1 %v2191_v7 }
 0x26d   :  { %v4174_v58 = vadd.f32 %v2015_v31, %v3708_v47  ;;  %1992 = vmatmul.f32.gmra.mxu3 %v3882_v28  ;;  %v1391_v47 = vadd.f32 %v3982_v51, %v4077_v1  ;;  %v4187_v28 = vadd.f32 %v2026_v36, %v3616_v53  ;;  %v2258_v51 = vld [vmem:[#allocation10 + $0x5a0] sm:$0xff]  ;;  %v1587_v31 = vadd.f32 %v4895_v16, %v1546_v57 }
 0x26e   :  { %2418 = vmatpush.msra.mxu2 %v2258_v51  ;;  %2510 = vmatpush.msrb.mxu0 %v2091_v43  ;;  %v2254_v36 = vld [vmem:[#allocation10 + $0x580] sm:$0xff]  ;;  %v2079_v51 = vld [vmem:[#allocation10 + $0x8] sm:$0xff] }
 0x26f   :  { %2391 = vmatmul.f32.vlgmr.msra.gmra.mxu1 %v4174_v58  ;;  %v4182_v56 = vpop.f32.mrf.mxu1  ;;  %v1432_v29 = vadd.f32 %v3984_v61, %v1391_v47  ;;  %v1628_v42 = vadd.f32 %v4089_v0, %v1587_v31  ;;  %v2083_v47 = vld [vmem:[#allocation10 + $0x28] sm:$0xff]  ;;  %v1549_v0 = vadd.f32 %v4042_v41, %v4129_v14  ;;  %v4901_v41 = vld [vmem:[#allocation54_spill] sm:$0xff] }
 0x270   :  { %v4180_v34 = vpop.f32.mrf.mxu0  ;;  %v1665_v37 = vpop.f32.mrf.mxu3  ;;  %2419 = vmatpush.msra.mxu2 %v2254_v36  ;;  %2511 = vmatpush.msrb.mxu0 %v2087_v2  ;;  %v4899_v57 = vld [vmem:[#allocation19_spill] sm:$0xff]  ;;  %v4902_v2 = vld [vmem:[#allocation25_spill] sm:$0xff] }
 0x271   :  { %v1666_v32 = vadd.f32 %v1665_v37, %v1625_v60  ;;  %v1473_v60 = vadd.f32 %v4897_v59, %v1432_v29  ;;  %v1394_v37 = vadd.f32 %v4898_v9, %v4077_v1  ;;  %v2183_v43 = vld [vmem:[#allocation10 + $0x348] sm:$0xff]  ;;  %v2242_v29 = vld [vmem:[#allocation10 + $0x520] sm:$0xff]  ;;  %v1590_v36 = vadd.f32 %v4901_v41, %v1549_v0 }
 0x272   :  { %2420 = vmatpush.msra.mxu2 %v2250_v13  ;;  %2512 = vmatpush.msrb.mxu0 %v2083_v47  ;;  %v2238_v59 = vld [vmem:[#allocation10 + $0x500] sm:$0xff] }
 0x273   :  { %2359 = vmatmul.f32.gmra.mxu0 %v4187_v28  ;;  %v2019_v53 = vmax.f32 %v1666_v32, 0.0  ;;  %v4211_v32 = vadd.f32 %v2030_v26, %v4899_v57  ;;  %v1514_v54 = vadd.f32 %v4104_v48, %v1473_v60  ;;  %v2179_v26 = vld [vmem:[#allocation10 + $0x328] sm:$0xff]  ;;  %v1631_v47 = vadd.f32 %v4109_v4, %v1590_v36  ;;  %v2234_v9 = vld [vmem:[#allocation10 + $0x4e0] sm:$0xff] }
 0x274   :  { %2513 = vmatpush.msrb.mxu0 %v2079_v51  ;;  %v4900_v48 = vld [vmem:[#allocation47_spill] sm:$0xff]  ;;  %v4904_v57 = vld [vmem:[#allocation48_spill] sm:$0xff]  ;;  %v1552_v4 = vadd.f32 %v4054_v27, %v4129_v14 }
 0x275   :  { %v4198_v17 = vadd.f32 %v2019_v53, %v4896_v30  ;;  %1995 = vmatmul.f32.gmra.mxu3 %v3891_v44  ;;  %v2187_v44 = vld [vmem:[#allocation10 + $0x368] sm:$0xff]  ;;  %v2246_v53 = vld [vmem:[#allocation10 + $0x540] sm:$0xff]  ;;  %v1435_v16 = vadd.f32 %v4900_v48, %v1394_v37  ;;  %v2034_v31 = vmax.f32 %v1514_v54, 0.0  ;;  %v4218_v30 = vpop.f32.mrf.mxu2  ;;  %v1397_v54 = vadd.f32 %v4904_v57, %v4077_v1 }
 0x276   :  { %2543 = vmatpush.msrb.mxu1 %v2187_v44  ;;  %2421 = vmatpush.msra.mxu2 %v2246_v53  ;;  %v2175_v60 = vld [vmem:[#allocation10 + $0x308] sm:$0xff]  ;;  %v2222_v27 = vld [vmem:[#allocation10 + $0x480] sm:$0xff] }
 0x277   :  { %2394 = vmatmul.f32.gmra.mxu1 %v4198_v17  ;;  %v4206_v10 = vpop.f32.mrf.mxu1  ;;  %v2171_v37 = vld [vmem:[#allocation10 + $0x2e8] sm:$0xff]  ;;  %v2218_v57 = vld [vmem:[#allocation10 + $0x460] sm:$0xff] }
 0x278   :  { %v4204_v61 = vpop.f32.mrf.mxu0  ;;  %v1668_v18 = vpop.f32.mrf.mxu3  ;;  %2544 = vmatpush.msrb.mxu1 %v2183_v43  ;;  %2422 = vmatpush.msra.mxu2 %v2242_v29  ;;  %v2230_v43 = vld [vmem:[#allocation10 + $0x4c0] sm:$0xff]  ;;  %v2163_v48 = vld [vmem:[#allocation10 + $0x2a8] sm:$0xff] }
 0x279   :  { %v1669_v45 = vadd.f32 %v1668_v18, %v1628_v42  ;;  %v4903_v42 = vld [vmem:[#allocation51_spill] sm:$0xff]  ;;  %v4905_v18 = vld [vmem:[#allocation20_spill] sm:$0xff] }
 0x27a   :  { %v1476_v13 = vadd.f32 %v4903_v42, %v1435_v16  ;;  %2545 = vmatpush.msrb.mxu1 %v2179_v26  ;;  %2423 = vmatpush.msra.mxu2 %v2238_v59  ;;  %v2226_v26 = vld [vmem:[#allocation10 + $0x4a0] sm:$0xff]  ;;  %v4906_v16 = vld [vmem:[#allocation49_spill] sm:$0xff] }
 0x27b   :  { %2362 = vmatmul.f32.gmra.mxu0 %v4211_v32  ;;  %v2023_v33 = vmax.f32 %v1669_v45, 0.0  ;;  %v4907_v41 = vld [vmem:[#allocation55_spill] sm:$0xff]  ;;  %v4909_v42 = vld [vmem:[#allocation53_spill] sm:$0xff] }
 0x27c   :  { %v1517_v0 = vadd.f32 %v4124_v3, %v1476_v13  ;;  %2546 = vmatpush.msrb.mxu1 %v2175_v60  ;;  %2424 = vmatpush.msra.mxu2 %v2234_v9  ;;  %v1438_v3 = vadd.f32 %v4906_v16, %v1397_v54  ;;  %v1593_v36 = vadd.f32 %v4907_v41, %v1552_v4  ;;  %v2159_v60 = vld [vmem:[#allocation10 + $0x288] sm:$0xff] }
 0x27d   :  { %v4222_v7 = vadd.f32 %v2023_v33, %v4902_v2  ;;  %1998 = vmatmul.f32.gmra.mxu3 %v3900_v63  ;;  %v4233_v63 = vadd.f32 %v2034_v31, %v4905_v18  ;;  %v2167_v33 = vld [vmem:[#allocation10 + $0x2c8] sm:$0xff]  ;;  %v4910_v18 = vld [vmem:[#allocation21_spill] sm:$0xff]  ;;  %v1555_v4 = vadd.f32 %v4064_v11, %v4129_v14  ;;  %v2206_v11 = vld [vmem:[#allocation10 + $0x400] sm:$0xff] }
 0x27e   :  { %2547 = vmatpush.msrb.mxu1 %v2171_v37  ;;  %2425 = vmatpush.msra.mxu2 %v2230_v43  ;;  %v2038_v31 = vmax.f32 %v1517_v0, 0.0  ;;  %v4908_v2 = vld [vmem:[#allocation27_spill] sm:$0xff]  ;;  %v1479_v13 = vadd.f32 %v4909_v42, %v1438_v3  ;;  %v1634_v9 = vadd.f32 %v4134_v25, %v1593_v36  ;;  %v4911_v3 = vld [vmem:[#allocation29_spill] sm:$0xff] }
 0x27f   :  { %2397 = vmatmul.f32.gmra.mxu1 %v4222_v7  ;;  %v4236_v53 = vpop.f32.mrf.mxu1  ;;  %v2155_v54 = vld [vmem:[#allocation10 + $0x268] sm:$0xff]  ;;  %v2214_v25 = vld [vmem:[#allocation10 + $0x440] sm:$0xff] }
 0x280   :  { %v4228_v44 = vpop.f32.mrf.mxu0  ;;  %v1671_v45 = vpop.f32.mrf.mxu3  ;;  %2548 = vmatpush.msrb.mxu1 %v2167_v33  ;;  %2426 = vmatpush.msra.mxu2 %v2226_v26  ;;  %v4255_v0 = vadd.f32 %v2038_v31, %v4910_v18  ;;  %v2151_v43 = vld [vmem:[#allocation10 + $0x248] sm:$0xff]  ;;  %v2210_v26 = vld [vmem:[#allocation10 + $0x420] sm:$0xff] }
 0x281   :  { %v1672_v51 = vadd.f32 %v1671_v45, %v1631_v47  ;;  %v4248_v47 = vpop.f32.mrf.mxu2  ;;  %v2143_v41 = vld [vmem:[#allocation10 + $0x208] sm:$0xff] }
 0x282   :  { %2549 = vmatpush.msrb.mxu1 %v2163_v48  ;;  %2427 = vmatpush.msra.mxu2 %v2222_v27  ;;  %v2147_v48 = vld [vmem:[#allocation10 + $0x228] sm:$0xff]  ;;  %v2330_v27 = vld [vmem:[#allocation10 + $0x7e0] sm:$0xff] }
 0x283   :  { %2365 = vmatmul.f32.gmra.mxu0 %v4233_v63  ;;  %v2027_v29 = vmax.f32 %v1672_v51, 0.0  ;;  %2457 = vmatpush.msra.mxu3 %v2330_v27 }
 0x284   :  { %2550 = vmatpush.msrb.mxu1 %v2159_v60  ;;  %2428 = vmatpush.msra.mxu2 %v2218_v57  ;;  %v4912_v60 = vld [vmem:[#allocation22_spill] sm:$0xff] }
 0x285   :  { %v4244_v59 = vadd.f32 %v2027_v29, %v4908_v2  ;;  %2001 = vmatmul.f32.gmra.mxu3 %v3909_v55  ;;  %v1520_v55 = vadd.f32 %v4146_v8, %v1479_v13  ;;  %v1596_v8 = vadd.f32 %v4066_v15, %v1555_v4  ;;  %v2326_v4 = vld [vmem:[#allocation10 + $0x7c0] sm:$0xff] }
 0x286   :  { %2551 = vmatpush.msrb.mxu1 %v2155_v54  ;;  %2429 = vmatpush.msra.mxu2 %v2214_v25  ;;  %v4913_v54 = vld [vmem:[#allocation56_spill] sm:$0xff]  ;;  %v2322_v25 = vld [vmem:[#allocation10 + $0x7a0] sm:$0xff] }
 0x287   :  { %2400 = vmatmul.f32.gmra.mxu1 %v4244_v59  ;;  %v4260_v33 = vpop.f32.mrf.mxu1  ;;  %v2042_v16 = vmax.f32 %v1520_v55, 0.0  ;;  %v1637_v36 = vadd.f32 %v4166_v40, %v1596_v8  ;;  %v4914_v55 = vld [vmem:[#allocation31_spill] sm:$0xff]  ;;  %2458 = vmatpush.msra.mxu3 %v2326_v4  ;;  %v4298_v8 = vperm.slane %v4072_v62, 2  ;;  %v2132_v62 = vld [vmem:[#allocation10 + $0x1b0] sm:$0xff] }
 0x288   :  { %v4252_v37 = vpop.f32.mrf.mxu0  ;;  %v1674_v45 = vpop.f32.mrf.mxu3  ;;  %2552 = vmatpush.msrb.mxu1 %v2151_v43  ;;  %2430 = vmatpush.msra.mxu2 %v2210_v26 }
 0x289   :  { %v1675_v51 = vadd.f32 %v1674_v45, %v1634_v9  ;;  %v4273_v42 = vadd.f32 %v2042_v16, %v4912_v60  ;;  %v4275_v15 = vpop.f32.mrf.mxu2  ;;  %2459 = vmatpush.msra.mxu3 %v2322_v25  ;;  %v2140_v16 = vld [vmem:[#allocation10 + $0x1f0] sm:$0xff]  ;;  %4915 = vst [vmem:[#allocation52_spill] sm:$0xff] %v4298_v8 }
 0x28a   :  { %2553 = vmatpush.msrb.mxu1 %v2147_v48  ;;  %2431 = vmatpush.msra.mxu2 %v2206_v11  ;;  %v2120_v25 = vld [vmem:[#allocation10 + $0x150] sm:$0xff] }
 0x28b   :  { %2368 = vmatmul.f32.gmra.mxu0 %v4255_v0  ;;  %v2031_v29 = vmax.f32 %v1675_v51, 0.0 }
 0x28c   :  { %2554 = vmatpush.msrb.mxu1 %v2143_v41  ;;  %2662 = vmatpush.msra.mxu0 %v2140_v16  ;;  %v2318_v41 = vld [vmem:[#allocation10 + $0x780] sm:$0xff] }
 0x28d   :  { %v4265_v31 = vadd.f32 %v2031_v29, %v4911_v3  ;;  %2004 = vmatmul.f32.gmra.mxu3 %v3918_v5  ;;  %v1558_v5 = vadd.f32 %v4081_v52, %v4129_v14  ;;  %v1561_v29 = vadd.f32 %v4097_v35, %v4129_v14  ;;  %v4916_v3 = vld [vmem:[#allocation33_spill] sm:$0xff] }
 0x28e   :  { %v2136_v35 = vld [vmem:[#allocation10 + $0x1d0] sm:$0xff]  ;;  %2460 = vmatpush.msra.mxu3 %v2318_v41 }
 0x28f   :  { %2403 = vmatmul.f32.gmra.mxu1 %v4265_v31  ;;  %v4280_v57 = vpop.f32.mrf.mxu1  ;;  %v1599_v18 = vadd.f32 %v4913_v54, %v1558_v5  ;;  %2663 = vmatpush.msra.mxu0 %v2136_v35  ;;  %v2124_v54 = vld [vmem:[#allocation10 + $0x170] sm:$0xff] }
 0x290   :  { %v4270_v2 = vpop.f32.mrf.mxu0  ;;  %v1677_v13 = vpop.f32.mrf.mxu3  ;;  %v2108_v41 = vld [vmem:[#allocation10 + $0xf0] sm:$0xff] }
 0x291   :  { %v1678_v9 = vadd.f32 %v1677_v13, %v1637_v36  ;;  %v1640_v51 = vadd.f32 %v4192_v21, %v1599_v18  ;;  %v4293_v48 = vpop.f32.mrf.mxu2  ;;  %v1602_v21 = vadd.f32 %v4099_v50, %v1561_v29  ;;  %v2314_v50 = vld [vmem:[#allocation10 + $0x760] sm:$0xff]  ;;  %2664 = vmatpush.msra.mxu0 %v2132_v62 }
 0x292   :  { %2461 = vmatpush.msra.mxu3 %v2314_v50  ;;  %v2306_v29 = vld [vmem:[#allocation10 + $0x720] sm:$0xff] }
 0x293   :  { %2371 = vmatmul.f32.gmra.mxu0 %v4273_v42  ;;  %v2035_v40 = vmax.f32 %v1678_v9, 0.0  ;;  %v1643_v27 = vadd.f32 %v4218_v30, %v1602_v21  ;;  %v2128_v9 = vld [vmem:[#allocation10 + $0x190] sm:$0xff]  ;;  %v2302_v62 = vld [vmem:[#allocation10 + $0x700] sm:$0xff] }
 0x294   :  { %2665 = vmatpush.msra.mxu0 %v2128_v9  ;;  %v2298_v9 = vld [vmem:[#allocation10 + $0x6e0] sm:$0xff] }
 0x295   :  { %v4284_v45 = vadd.f32 %v2035_v40, %v4914_v55  ;;  %2007 = vmatmul.f32.gmra.mxu3 %v3927_v6  ;;  %v4917_v55 = vld [vmem:[#allocation35_spill] sm:$0xff] }
 0x296   :  { %2666 = vmatpush.msra.mxu0 %v2124_v54  ;;  %v2100_v54 = vld [vmem:[#allocation10 + $0xb0] sm:$0xff] }
 0x297   :  { %2406 = vmatmul.f32.gmra.mxu1 %v4284_v45  ;;  %v4304_v36 = vpop.f32.mrf.mxu1 }
 0x298   :  { %v4289_v52 = vpop.f32.mrf.mxu0  ;;  %v1680_v43 = vpop.f32.mrf.mxu3  ;;  %2667 = vmatpush.msra.mxu0 %v2120_v25  ;;  %v2200_v25 = vld [vmem:[#allocation10 + $0x3d0] sm:$0xff] }
 0x299   :  { %v1681_v26 = vadd.f32 %v1680_v43, %v1640_v51  ;;  %v4313_v30 = vpop.f32.mrf.mxu2  ;;  %v2310_v51 = vld [vmem:[#allocation10 + $0x740] sm:$0xff] }
 0x29a   :  { %2462 = vmatpush.msra.mxu3 %v2310_v51 }
 0x29b   :  { %2514 = vmatmul.f32.vlgmr.msrb.gmra.mxu0 %v4121_v12  ;;  %v2039_v6 = vmax.f32 %v1681_v26, 0.0  ;;  %v2116_v26 = vld [vmem:[#allocation10 + $0x130] sm:$0xff] }
 0x29c   :  { %2463 = vmatpush.msra.mxu3 %v2306_v29  ;;  %2668 = vmatpush.msra.mxu0 %v2116_v26  ;;  %v2096_v29 = vld [vmem:[#allocation10 + $0x90] sm:$0xff] }
 0x29d   :  { %v4301_v11 = vadd.f32 %v2039_v6, %v4916_v3  ;;  %2010 = vmatmul.f32.gmra.mxu3 %v3940_v46  ;;  %v1704_v46 = vadd.f32 %v4114_v20, %v4298_v8  ;;  %v2112_v3 = vld [vmem:[#allocation10 + $0x110] sm:$0xff] }
 0x29e   :  { %2669 = vmatpush.msra.mxu0 %v2112_v3  ;;  %2464 = vmatpush.msra.mxu3 %v2302_v62  ;;  %v4919_v3 = vld [vmem:[#allocation26_spill] sm:$0xff] }
 0x29f   :  { %2409 = vmatmul.f32.gmra.mxu1 %v4301_v11  ;;  %v1745_v18 = vadd.f32 %v4116_v49, %v1704_v46  ;;  %v4323_v6 = vpop.f32.mrf.mxu1  ;;  %v1707_v49 = vadd.f32 %v4136_v39, %v4298_v8 }
 0x2a0   :  { %v4308_v60 = vpop.f32.mrf.mxu0  ;;  %v1683_v13 = vpop.f32.mrf.mxu3  ;;  %2670 = vmatpush.msra.mxu0 %v2108_v41  ;;  %2465 = vmatpush.msra.mxu3 %v2298_v9  ;;  %v2092_v41 = vld [vmem:[#allocation10 + $0x70] sm:$0xff] }
 0x2a1   :  { %v1684_v5 = vadd.f32 %v1683_v13, %v1643_v27  ;;  %v1786_v20 = vadd.f32 %v4248_v47, %v1745_v18  ;;  %v1748_v35 = vadd.f32 %v4138_v22, %v1707_v49  ;;  %v4918_v27 = vld [vmem:[#allocation24_spill] sm:$0xff]  ;;  %v4332_v46 = vpop.f32.mrf.mxu2 }
 0x2a2   :  { %v2104_v13 = vld [vmem:[#allocation10 + $0xd0] sm:$0xff] }
 0x2a3   :  { %2517 = vmatmul.f32.gmra.mxu0 %v4143_v19  ;;  %v2043_v40 = vmax.f32 %v1684_v5, 0.0  ;;  %v1789_v39 = vadd.f32 %v4275_v15, %v1748_v35  ;;  %v2204_v18 = vld [vmem:[#allocation10 + $0x3f0] sm:$0xff]  ;;  %v2263_v15 = vld [vmem:[#allocation10 + $0x5c8] sm:$0xff] }
 0x2a4   :  { %2671 = vmatpush.msra.mxu0 %v2104_v13  ;;  %2703 = vmatpush.msra.mxu1 %v2204_v18  ;;  %v2196_v49 = vld [vmem:[#allocation10 + $0x3b0] sm:$0xff]  ;;  %v2255_v35 = vld [vmem:[#allocation10 + $0x588] sm:$0xff]  ;;  %v1713_v18 = vadd.f32 %v4180_v34, %v4298_v8 }
 0x2a5   :  { %v4317_v4 = vadd.f32 %v2043_v40, %v4917_v55  ;;  %v2267_v40 = vld [vmem:[#allocation10 + $0x5e8] sm:$0xff]  ;;  %v1710_v55 = vadd.f32 %v4156_v23, %v4298_v8 }
 0x2a6   :  { %2580 = vmatpush.msrb.mxu2 %v2267_v40  ;;  %2672 = vmatpush.msra.mxu0 %v2100_v54  ;;  %v2188_v54 = vld [vmem:[#allocation10 + $0x370] sm:$0xff] }
 0x2a7   :  { %2412 = vmatmul.f32.gmra.mxu1 %v4317_v4 }
 0x2a8   :  { %v4321_v43 = vpop.f32.mrf.mxu0  ;;  %v1826_v16 = vpop.f32.mrf.mxu3  ;;  %2581 = vmatpush.msrb.mxu2 %v2263_v15  ;;  %2704 = vmatpush.msra.mxu1 %v2200_v25  ;;  %v2184_v15 = vld [vmem:[#allocation10 + $0x350] sm:$0xff] }
 0x2a9   :  { %v1827_v21 = vadd.f32 %v1826_v16, %v1786_v20  ;;  %v4341_v20 = vpop.f32.mrf.mxu1  ;;  %v2259_v16 = vld [vmem:[#allocation10 + $0x5a8] sm:$0xff]  ;;  %2673 = vmatpush.msra.mxu0 %v2096_v29  ;;  %v4353_v9 = vpop.f32.mrf.mxu2 }
 0x2aa   :  { %2582 = vmatpush.msrb.mxu2 %v2259_v16  ;;  %2705 = vmatpush.msra.mxu1 %v2196_v49  ;;  %v2243_v29 = vld [vmem:[#allocation10 + $0x528] sm:$0xff]  ;;  %v1754_v16 = vadd.f32 %v4182_v56, %v1713_v18  ;;  %v2176_v56 = vld [vmem:[#allocation10 + $0x310] sm:$0xff] }
 0x2ab   :  { %2520 = vmatmul.f32.gmra.mxu0 %v4163_v24  ;;  %v2016_v47 = vmax.f32 %v1827_v21, 0.0  ;;  %v1751_v21 = vadd.f32 %v4158_v38, %v1710_v55  ;;  %v2290_v38 = vld [vmem:[#allocation10 + $0x6a0] sm:$0xff]  ;;  %v4920_v49 = vld [vmem:[#allocation28_spill] sm:$0xff] }
 0x2ac   :  { %2674 = vmatpush.msra.mxu0 %v2092_v41  ;;  %2583 = vmatpush.msrb.mxu2 %v2255_v35  ;;  %v2239_v41 = vld [vmem:[#allocation10 + $0x508] sm:$0xff]  ;;  %v1795_v35 = vadd.f32 %v4313_v30, %v1754_v16  ;;  %v2164_v16 = vld [vmem:[#allocation10 + $0x2b0] sm:$0xff] }
 0x2ad   :  { %v4330_v50 = vadd.f32 %v2016_v47, %v4918_v27  ;;  %v2294_v47 = vld [vmem:[#allocation10 + $0x6c0] sm:$0xff]  ;;  %v2192_v27 = vld [vmem:[#allocation10 + $0x390] sm:$0xff]  ;;  %v1792_v62 = vadd.f32 %v4293_v48, %v1751_v21  ;;  %v2247_v48 = vld [vmem:[#allocation10 + $0x548] sm:$0xff] }
 0x2ae   :  { %2466 = vmatpush.msra.mxu3 %v2294_v47  ;;  %2706 = vmatpush.msra.mxu1 %v2192_v27  ;;  %v2080_v21 = vld [vmem:[#allocation10 + $0x10] sm:$0xff]  ;;  %v2231_v18 = vld [vmem:[#allocation10 + $0x4c8] sm:$0xff] }
 0x2af   :  { %2432 = vmatmul.f32.vlgmr.msra.gmra.mxu2 %v4330_v50  ;;  %2555 = vmatmul.f32.vlgmr.msrb.gmra.mxu1 %v4174_v58  ;;  %v2180_v47 = vld [vmem:[#allocation10 + $0x330] sm:$0xff] }
 0x2b0   :  { %v4337_v5 = vpop.f32.mrf.mxu0  ;;  %v1829_v22 = vpop.f32.mrf.mxu3  ;;  %2467 = vmatpush.msra.mxu3 %v2290_v38  ;;  %2707 = vmatpush.msra.mxu1 %v2188_v54  ;;  %v2172_v54 = vld [vmem:[#allocation10 + $0x2f0] sm:$0xff] }
 0x2b1   :  { %v1830_v51 = vadd.f32 %v1829_v22, %v1789_v39  ;;  %v2251_v39 = vld [vmem:[#allocation10 + $0x568] sm:$0xff]  ;;  %v2088_v22 = vld [vmem:[#allocation10 + $0x50] sm:$0xff]  ;;  %v4371_v30 = vpop.f32.mrf.mxu2 }
 0x2b2   :  { %2584 = vmatpush.msrb.mxu2 %v2251_v39  ;;  %2675 = vmatpush.msra.mxu0 %v2088_v22  ;;  %v2235_v39 = vld [vmem:[#allocation10 + $0x4e8] sm:$0xff] }
 0x2b3   :  { %2523 = vmatmul.f32.gmra.mxu0 %v4187_v28  ;;  %v2020_v26 = vmax.f32 %v1830_v51, 0.0  ;;  %v2084_v51 = vld [vmem:[#allocation10 + $0x30] sm:$0xff]  ;;  %2708 = vmatpush.msra.mxu1 %v2184_v15  ;;  %v4921_v15 = vld [vmem:[#allocation30_spill] sm:$0xff] }
 0x2b4   :  { %2585 = vmatpush.msrb.mxu2 %v2247_v48  ;;  %2676 = vmatpush.msra.mxu0 %v2084_v51  ;;  %v2168_v48 = vld [vmem:[#allocation10 + $0x2d0] sm:$0xff] }
 0x2b5   :  { %v4346_v23 = vadd.f32 %v2020_v26, %v4919_v3  ;;  %v4358_v26 = vpop.f32.mrf.mxu1  ;;  %v2286_v3 = vld [vmem:[#allocation10 + $0x680] sm:$0xff]  ;;  %2709 = vmatpush.msra.mxu1 %v2180_v47 }
 0x2b6   :  { %2468 = vmatpush.msra.mxu3 %v2286_v3  ;;  %2586 = vmatpush.msrb.mxu2 %v2243_v29  ;;  %v2227_v29 = vld [vmem:[#allocation10 + $0x4a8] sm:$0xff]  ;;  %v2274_v47 = vld [vmem:[#allocation10 + $0x620] sm:$0xff] }
 0x2b7   :  { %2435 = vmatmul.f32.gmra.mxu2 %v4346_v23  ;;  %2558 = vmatmul.f32.gmra.mxu1 %v4198_v17 }
 0x2b8   :  { %v4351_v13 = vpop.f32.mrf.mxu0  ;;  %v1832_v40 = vpop.f32.mrf.mxu3  ;;  %2677 = vmatpush.msra.mxu0 %v2080_v21  ;;  %2587 = vmatpush.msrb.mxu2 %v2239_v41 }
 0x2b9   :  { %v1833_v55 = vadd.f32 %v1832_v40, %v1792_v62  ;;  %v2282_v62 = vld [vmem:[#allocation10 + $0x660] sm:$0xff]  ;;  %v1716_v40 = vadd.f32 %v4204_v61, %v4298_v8  ;;  %2710 = vmatpush.msra.mxu1 %v2176_v56  ;;  %v1719_v56 = vadd.f32 %v4228_v44, %v4298_v8 }
 0x2ba   :  { %2469 = vmatpush.msra.mxu3 %v2282_v62  ;;  %2588 = vmatpush.msrb.mxu2 %v2235_v39  ;;  %v2278_v61 = vld [vmem:[#allocation10 + $0x640] sm:$0xff] }
 0x2bb   :  { %2526 = vmatmul.f32.gmra.mxu0 %v4211_v32  ;;  %v2024_v25 = vmax.f32 %v1833_v55, 0.0  ;;  %2711 = vmatpush.msra.mxu1 %v2172_v54  ;;  %v1757_v51 = vadd.f32 %v4206_v10, %v1716_v40  ;;  %v2223_v10 = vld [vmem:[#allocation10 + $0x488] sm:$0xff]  ;;  %v1760_v54 = vadd.f32 %v4236_v53, %v1719_v56  ;;  %v2270_v44 = vld [vmem:[#allocation10 + $0x600] sm:$0xff] }
 0x2bc   :  { %2589 = vmatpush.msrb.mxu2 %v2231_v18  ;;  %2470 = vmatpush.msra.mxu3 %v2278_v61  ;;  %v2215_v40 = vld [vmem:[#allocation10 + $0x448] sm:$0xff] }
 0x2bd   :  { %v4362_v34 = vadd.f32 %v2024_v25, %v4920_v49  ;;  %v4378_v49 = vpop.f32.mrf.mxu1  ;;  %2712 = vmatpush.msra.mxu1 %v2168_v48  ;;  %v1798_v21 = vadd.f32 %v4332_v46, %v1757_v51  ;;  %v2156_v46 = vld [vmem:[#allocation10 + $0x270] sm:$0xff]  ;;  %v2211_v51 = vld [vmem:[#allocation10 + $0x428] sm:$0xff] }
 0x2be   :  { %2590 = vmatpush.msrb.mxu2 %v2227_v29  ;;  %2471 = vmatpush.msra.mxu3 %v2274_v47  ;;  %v4922_v18 = vld [vmem:[#allocation32_spill] sm:$0xff]  ;;  %v1722_v47 = vadd.f32 %v4252_v37, %v4298_v8 }
 0x2bf   :  { %2438 = vmatmul.f32.gmra.mxu2 %v4362_v34  ;;  %2561 = vmatmul.f32.gmra.mxu1 %v4222_v7  ;;  %v2152_v48 = vld [vmem:[#allocation10 + $0x250] sm:$0xff] }
 0x2c0   :  { %v4367_v27 = vpop.f32.mrf.mxu0  ;;  %v1835_v38 = vpop.f32.mrf.mxu3  ;;  %2713 = vmatpush.msra.mxu1 %v2164_v16  ;;  %2591 = vmatpush.msrb.mxu2 %v2223_v10  ;;  %v2148_v29 = vld [vmem:[#allocation10 + $0x230] sm:$0xff]  ;;  %v2331_v16 = vld [vmem:[#allocation10 + $0x7e8] sm:$0xff]  ;;  %v1763_v56 = vadd.f32 %v4260_v33, %v1722_v47  ;;  %v1725_v33 = vadd.f32 %v4270_v2, %v4298_v8 }
 0x2c1   :  { %v1836_v22 = vadd.f32 %v1835_v38, %v1795_v35  ;;  %v2160_v35 = vld [vmem:[#allocation10 + $0x290] sm:$0xff]  ;;  %v2219_v38 = vld [vmem:[#allocation10 + $0x468] sm:$0xff]  ;;  %2472 = vmatpush.msra.mxu3 %v2270_v44 }
 0x2c2   :  { %2714 = vmatpush.msra.mxu1 %v2160_v35  ;;  %2592 = vmatpush.msrb.mxu2 %v2219_v38  ;;  %v2207_v10 = vld [vmem:[#allocation10 + $0x408] sm:$0xff]  ;;  %v2144_v35 = vld [vmem:[#allocation10 + $0x210] sm:$0xff] }
 0x2c3   :  { %2529 = vmatmul.f32.gmra.mxu0 %v4233_v63  ;;  %v2028_v55 = vmax.f32 %v1836_v22, 0.0  ;;  %v1806_v22 = vpop.f32.mrf.mxu2  ;;  %2621 = vmatpush.msrb.mxu3 %v2331_v16  ;;  %v2319_v47 = vld [vmem:[#allocation10 + $0x788] sm:$0xff] }
 0x2c4   :  { %2715 = vmatpush.msra.mxu1 %v2156_v46  ;;  %2593 = vmatpush.msrb.mxu2 %v2215_v40  ;;  %v2327_v46 = vld [vmem:[#allocation10 + $0x7c8] sm:$0xff]  ;;  %v1804_v40 = vadd.f32 %v4371_v30, %v1763_v56  ;;  %v1766_v30 = vadd.f32 %v4280_v57, %v1725_v33 }
 0x2c5   :  { %v4376_v25 = vadd.f32 %v2028_v55, %v4921_v15  ;;  %v1801_v15 = vadd.f32 %v4353_v9, %v1760_v54  ;;  %v4397_v53 = vpop.f32.mrf.mxu1  ;;  %2622 = vmatpush.msrb.mxu3 %v2327_v46  ;;  %v2323_v54 = vld [vmem:[#allocation10 + $0x7a8] sm:$0xff] }
 0x2c6   :  { %2716 = vmatpush.msra.mxu1 %v2152_v48  ;;  %2594 = vmatpush.msrb.mxu2 %v2211_v51  ;;  %v1807_v2 = vadd.f32 %v1806_v22, %v1766_v30  ;;  %v2125_v30 = vld [vmem:[#allocation10 + $0x178] sm:$0xff]  ;;  %v4928_v8 = vld [vmem:[#allocation40_spill] sm:$0xff] }
 0x2c7   :  { %2441 = vmatmul.f32.gmra.mxu2 %v4376_v25  ;;  %2564 = vmatmul.f32.gmra.mxu1 %v4244_v59 }
 0x2c8   :  { %v4383_v3 = vpop.f32.mrf.mxu0  ;;  %v1838_v41 = vpop.f32.mrf.mxu3  ;;  %2717 = vmatpush.msra.mxu1 %v2148_v29  ;;  %2595 = vmatpush.msrb.mxu2 %v2207_v10  ;;  %v3222_v29 = vld [vmem:[#allocation11] sm:$0xf] }
 0x2c9   :  { %v1839_v62 = vadd.f32 %v1838_v41, %v1798_v21  ;;  %2623 = vmatpush.msrb.mxu3 %v2323_v54  ;;  %v4417_v16 = vperm.slane %v3222_v29, 3  ;;  %v2129_v54 = vld [vmem:[#allocation10 + $0x198] sm:$0xff] }
 0x2ca   :  { %2718 = vmatpush.msra.mxu1 %v2144_v35 }
 0x2cb   :  { %2532 = vmatmul.f32.gmra.mxu0 %v4255_v0  ;;  %v2032_v39 = vmax.f32 %v1839_v62, 0.0  ;;  %v4923_v62 = vld [vmem:[#allocation34_spill] sm:$0xff]  ;;  %2624 = vmatpush.msrb.mxu3 %v2319_v47  ;;  %v1868_v46 = vadd.f32 %v4289_v52, %v4417_v16 }
 0x2cd   :  { %v4390_v55 = vadd.f32 %v2032_v39, %v4922_v18  ;;  %v1949_v39 = vpop.f32.mrf.mxu2  ;;  %v4413_v44 = vpop.f32.mrf.mxu1  ;;  %v1909_v33 = vadd.f32 %v4304_v36, %v1868_v46  ;;  %v1871_v36 = vadd.f32 %v4308_v60, %v4417_v16 }
 0x2cf   :  { %2444 = vmatmul.f32.gmra.mxu2 %v4390_v55  ;;  %2567 = vmatmul.f32.gmra.mxu1 %v4265_v31  ;;  %v1950_v29 = vadd.f32 %v1949_v39, %v1909_v33  ;;  %v1912_v46 = vadd.f32 %v4323_v6, %v1871_v36  ;;  %v2303_v33 = vld [vmem:[#allocation10 + $0x708] sm:$0xff]  ;;  %v2109_v6 = vld [vmem:[#allocation10 + $0xf8] sm:$0xff]  ;;  %v2264_v36 = vld [vmem:[#allocation10 + $0x5d0] sm:$0xff] }
 0x2d0   :  { %v4395_v61 = vpop.f32.mrf.mxu0  ;;  %v1841_v21 = vpop.f32.mrf.mxu3 }
 0x2d1   :  { %v1842_v41 = vadd.f32 %v1841_v21, %v1801_v15  ;;  %v2141_v15 = vld [vmem:[#allocation10 + $0x1f8] sm:$0xff]  ;;  %v4924_v21 = vld [vmem:[#allocation36_spill] sm:$0xff] }
 0x2d2   :  { %2826 = vmatpush.msrb.mxu0 %v2141_v15  ;;  %v2311_v15 = vld [vmem:[#allocation10 + $0x748] sm:$0xff] }
 0x2d3   :  { %2535 = vmatmul.f32.gmra.mxu0 %v4273_v42  ;;  %v2036_v9 = vmax.f32 %v1842_v41, 0.0  ;;  %v2137_v41 = vld [vmem:[#allocation10 + $0x1d8] sm:$0xff] }
 0x2d4   :  { %2827 = vmatpush.msrb.mxu0 %v2137_v41  ;;  %v2121_v41 = vld [vmem:[#allocation10 + $0x158] sm:$0xff] }
 0x2d5   :  { %v4404_v38 = vadd.f32 %v2036_v9, %v4923_v62  ;;  %v2315_v9 = vld [vmem:[#allocation10 + $0x768] sm:$0xff]  ;;  %v1952_v56 = vpop.f32.mrf.mxu2  ;;  %v2133_v62 = vld [vmem:[#allocation10 + $0x1b8] sm:$0xff] }
 0x2d6   :  { %2625 = vmatpush.msrb.mxu3 %v2315_v9  ;;  %2828 = vmatpush.msrb.mxu0 %v2133_v62 }
 0x2d7   :  { %2447 = vmatmul.f32.gmra.mxu2 %v4404_v38  ;;  %2570 = vmatmul.f32.gmra.mxu1 %v4284_v45 }
 0x2d8   :  { %v4409_v37 = vpop.f32.mrf.mxu0  ;;  %v1844_v18 = vpop.f32.mrf.mxu3  ;;  %2829 = vmatpush.msrb.mxu0 %v2129_v54  ;;  %2626 = vmatpush.msrb.mxu3 %v2311_v15  ;;  %v2299_v15 = vld [vmem:[#allocation10 + $0x6e8] sm:$0xff] }
 0x2d9   :  { %v1845_v48 = vadd.f32 %v1844_v18, %v1804_v40  ;;  %v4429_v18 = vpop.f32.mrf.mxu1 }
 0x2da   :  { %2830 = vmatpush.msrb.mxu0 %v2125_v30 }
 0x2db   :  { %2678 = vmatmul.f32.vlgmr.msra.gmra.mxu0 %v4121_v12  ;;  %v2040_v51 = vmax.f32 %v1845_v48, 0.0  ;;  %v4925_v48 = vld [vmem:[#allocation37_spill] sm:$0xff] }
 0x2dc   :  { %2831 = vmatpush.msrb.mxu0 %v2121_v41 }
 0x2dd   :  { %v4420_v10 = vadd.f32 %v2040_v51, %v4924_v21  ;;  %v2307_v21 = vld [vmem:[#allocation10 + $0x728] sm:$0xff]  ;;  %v1955_v9 = vpop.f32.mrf.mxu2 }
 0x2de   :  { %2627 = vmatpush.msrb.mxu3 %v2307_v21  ;;  %v2205_v21 = vld [vmem:[#allocation10 + $0x3f8] sm:$0xff] }
 0x2df   :  { %2450 = vmatmul.f32.gmra.mxu2 %v4420_v10  ;;  %2573 = vmatmul.f32.gmra.mxu1 %v4301_v11 }
 0x2e0   :  { %v4424_v35 = vpop.f32.mrf.mxu0  ;;  %v1847_v57 = vpop.f32.mrf.mxu3  ;;  %2628 = vmatpush.msrb.mxu3 %v2303_v33  ;;  %2867 = vmatpush.msrb.mxu1 %v2205_v21  ;;  %v4927_v33 = vld [vmem:[#allocation39_spill] sm:$0xff] }
 0x2e1   :  { %v1848_v40 = vadd.f32 %v1847_v57, %v1807_v2  ;;  %v2117_v57 = vld [vmem:[#allocation10 + $0x138] sm:$0xff] }
 0x2e2   :  { %2832 = vmatpush.msrb.mxu0 %v2117_v57  ;;  %2629 = vmatpush.msrb.mxu3 %v2299_v15  ;;  %v2101_v15 = vld [vmem:[#allocation10 + $0xb8] sm:$0xff] }
 0x2e3   :  { %2681 = vmatmul.f32.gmra.mxu0 %v4143_v19  ;;  %v2044_v22 = vmax.f32 %v1848_v40, 0.0  ;;  %v4926_v40 = vld [vmem:[#allocation38_spill] sm:$0xff] }
 0x2e5   :  { %v4433_v51 = vadd.f32 %v2044_v22, %v4925_v48  ;;  %v2113_v22 = vld [vmem:[#allocation10 + $0x118] sm:$0xff]  ;;  %v1953_v48 = vadd.f32 %v1952_v56, %v1912_v46 }
 0x2e6   :  { %2833 = vmatpush.msrb.mxu0 %v2113_v22  ;;  %v2105_v56 = vld [vmem:[#allocation10 + $0xd8] sm:$0xff] }
 0x2e7   :  { %2453 = vmatmul.f32.gmra.mxu2 %v4433_v51  ;;  %2576 = vmatmul.f32.gmra.mxu1 %v4317_v4  ;;  %v2197_v22 = vld [vmem:[#allocation10 + $0x3b8] sm:$0xff] }
 0x2e8   :  { %v4437_v52 = vpop.f32.mrf.mxu0  ;;  %v1990_v47 = vpop.f32.mrf.mxu3  ;;  %2834 = vmatpush.msrb.mxu0 %v2109_v6  ;;  %v2193_v6 = vld [vmem:[#allocation10 + $0x398] sm:$0xff] }
 0x2e9   :  { %v1991_v2 = vadd.f32 %v1990_v47, %v1950_v29  ;;  %v2268_v29 = vld [vmem:[#allocation10 + $0x5f0] sm:$0xff]  ;;  %v1874_v47 = vadd.f32 %v4321_v43, %v4417_v16 }
 0x2ea   :  { %2744 = vmatpush.msra.mxu2 %v2268_v29  ;;  %2835 = vmatpush.msrb.mxu0 %v2105_v56  ;;  %v2256_v29 = vld [vmem:[#allocation10 + $0x590] sm:$0xff] }
 0x2eb   :  { %2684 = vmatmul.f32.gmra.mxu0 %v4163_v24  ;;  %v2017_v39 = vmax.f32 %v1991_v2, 0.0  ;;  %v2201_v2 = vld [vmem:[#allocation10 + $0x3d8] sm:$0xff]  ;;  %v1915_v43 = vadd.f32 %v4341_v20, %v1874_v47  ;;  %v2252_v56 = vld [vmem:[#allocation10 + $0x570] sm:$0xff] }
 0x2ec   :  { %v4442_v62 = vpop.f32.mrf.mxu1  ;;  %2745 = vmatpush.msra.mxu2 %v2264_v36  ;;  %2868 = vmatpush.msrb.mxu1 %v2201_v2  ;;  %v2291_v36 = vld [vmem:[#allocation10 + $0x6a8] sm:$0xff]  ;;  %v2097_v47 = vld [vmem:[#allocation10 + $0x98] sm:$0xff]  ;;  %v1877_v2 = vadd.f32 %v4337_v5, %v4417_v16 }
 0x2ed   :  { %v4446_v54 = vadd.f32 %v2017_v39, %v4926_v40  ;;  %v1958_v39 = vpop.f32.mrf.mxu2  ;;  %v2260_v40 = vld [vmem:[#allocation10 + $0x5b0] sm:$0xff]  ;;  %v1956_v21 = vadd.f32 %v1955_v9, %v1915_v43  ;;  %2836 = vmatpush.msrb.mxu0 %v2101_v15  ;;  %v2189_v9 = vld [vmem:[#allocation10 + $0x378] sm:$0xff] }
 0x2ee   :  { %2746 = vmatpush.msra.mxu2 %v2260_v40  ;;  %2869 = vmatpush.msrb.mxu1 %v2197_v22  ;;  %v2093_v40 = vld [vmem:[#allocation10 + $0x78] sm:$0xff]  ;;  %v2248_v22 = vld [vmem:[#allocation10 + $0x550] sm:$0xff]  ;;  %v1918_v15 = vadd.f32 %v4358_v26, %v1877_v2  ;;  %v2283_v26 = vld [vmem:[#allocation10 + $0x668] sm:$0xff] }
 0x2ef   :  { %2473 = vmatmul.f32.vlgmr.msra.gmra.mxu3 %v4446_v54  ;;  %2596 = vmatmul.f32.vlgmr.msrb.gmra.mxu2 %v4330_v50  ;;  %v2085_v2 = vld [vmem:[#allocation10 + $0x38] sm:$0xff] }
 0x2f0   :  { %v4450_v60 = vpop.f32.mrf.mxu0  ;;  %2719 = vmatmul.f32.vlgmr.msra.gmra.mxu1 %v4174_v58  ;;  %v1993_v30 = vpop.f32.mrf.mxu3  ;;  %2747 = vmatpush.msra.mxu2 %v2256_v29  ;;  %v2089_v29 = vld [vmem:[#allocation10 + $0x58] sm:$0xff] }
 0x2f1   :  { %v1994_v41 = vadd.f32 %v1993_v30, %v1953_v48  ;;  %v2295_v30 = vld [vmem:[#allocation10 + $0x6c8] sm:$0xff]  ;;  %2870 = vmatpush.msrb.mxu1 %v2193_v6  ;;  %2837 = vmatpush.msrb.mxu0 %v2097_v47  ;;  %v1959_v47 = vadd.f32 %v1958_v39, %v1918_v15  ;;  %v2177_v39 = vld [vmem:[#allocation10 + $0x318] sm:$0xff] }
 0x2f2   :  { %2630 = vmatpush.msrb.mxu3 %v2295_v30  ;;  %2748 = vmatpush.msra.mxu2 %v2252_v56  ;;  %v2287_v6 = vld [vmem:[#allocation10 + $0x688] sm:$0xff]  ;;  %v2173_v15 = vld [vmem:[#allocation10 + $0x2f8] sm:$0xff] }
 0x2f3   :  { %2687 = vmatmul.f32.gmra.mxu0 %v4187_v28  ;;  %v2021_v57 = vmax.f32 %v1994_v41, 0.0  ;;  %2871 = vmatpush.msrb.mxu1 %v2189_v9  ;;  %v1880_v9 = vadd.f32 %v4351_v13, %v4417_v16 }
 0x2f4   :  { %v4456_v46 = vpop.f32.mrf.mxu1  ;;  %2631 = vmatpush.msrb.mxu3 %v2291_v36  ;;  %2838 = vmatpush.msrb.mxu0 %v2093_v40  ;;  %v2244_v36 = vld [vmem:[#allocation10 + $0x530] sm:$0xff] }
 0x2f5   :  { %v4460_v48 = vadd.f32 %v2021_v57, %v4927_v33  ;;  %v2185_v33 = vld [vmem:[#allocation10 + $0x358] sm:$0xff]  ;;  %2749 = vmatpush.msra.mxu2 %v2248_v22 }
 0x2f6   :  { %2872 = vmatpush.msrb.mxu1 %v2185_v33  ;;  %2632 = vmatpush.msrb.mxu3 %v2287_v6  ;;  %v2081_v22 = vld [vmem:[#allocation10 + $0x18] sm:$0xff] }
 0x2f7   :  { %2476 = vmatmul.f32.gmra.mxu3 %v4460_v48  ;;  %2599 = vmatmul.f32.gmra.mxu2 %v4346_v23 }
 0x2f8   :  { %v4464_v41 = vpop.f32.mrf.mxu0  ;;  %2722 = vmatmul.f32.gmra.mxu1 %v4198_v17  ;;  %v1996_v20 = vpop.f32.mrf.mxu3  ;;  %2839 = vmatpush.msrb.mxu0 %v2089_v29  ;;  %v1921_v29 = vadd.f32 %v4378_v49, %v1880_v9  ;;  %v2165_v9 = vld [vmem:[#allocation10 + $0x2b8] sm:$0xff] }
 0x2f9   :  { %v1997_v57 = vadd.f32 %v1996_v20, %v1956_v21  ;;  %v1961_v21 = vpop.f32.mrf.mxu2  ;;  %v2181_v20 = vld [vmem:[#allocation10 + $0x338] sm:$0xff]  ;;  %2750 = vmatpush.msra.mxu2 %v2244_v36  ;;  %2633 = vmatpush.msrb.mxu3 %v2283_v26  ;;  %v2232_v36 = vld [vmem:[#allocation10 + $0x4d0] sm:$0xff] }
 0x2fa   :  { %2873 = vmatpush.msrb.mxu1 %v2181_v20  ;;  %2840 = vmatpush.msrb.mxu0 %v2085_v2  ;;  %v2279_v20 = vld [vmem:[#allocation10 + $0x648] sm:$0xff]  ;;  %v1962_v26 = vadd.f32 %v1961_v21, %v1921_v29  ;;  %v2228_v2 = vld [vmem:[#allocation10 + $0x4b0] sm:$0xff] }
 0x2fb   :  { %2690 = vmatmul.f32.gmra.mxu0 %v4211_v32  ;;  %v2025_v43 = vmax.f32 %v1997_v57, 0.0  ;;  %v2240_v57 = vld [vmem:[#allocation10 + $0x510] sm:$0xff]  ;;  %2634 = vmatpush.msrb.mxu3 %v2279_v20  ;;  %v4931_v20 = vld [vmem:[#allocation42_spill] sm:$0xff] }
 0x2fc   :  { %v4470_v30 = vpop.f32.mrf.mxu1  ;;  %2751 = vmatpush.msra.mxu2 %v2240_v57  ;;  %2874 = vmatpush.msrb.mxu1 %v2177_v39  ;;  %v2275_v57 = vld [vmem:[#allocation10 + $0x628] sm:$0xff]  ;;  %v2224_v21 = vld [vmem:[#allocation10 + $0x490] sm:$0xff] }
 0x2fd   :  { %v4474_v5 = vadd.f32 %v2025_v43, %v4928_v8  ;;  %v2236_v43 = vld [vmem:[#allocation10 + $0x4f0] sm:$0xff]  ;;  %2841 = vmatpush.msrb.mxu0 %v2081_v22  ;;  %2635 = vmatpush.msrb.mxu3 %v2275_v57  ;;  %v2271_v22 = vld [vmem:[#allocation10 + $0x608] sm:$0xff] }
 0x2fe   :  { %2752 = vmatpush.msra.mxu2 %v2236_v43  ;;  %2875 = vmatpush.msrb.mxu1 %v2173_v15  ;;  %v2161_v43 = vld [vmem:[#allocation10 + $0x298] sm:$0xff]  ;;  %v2220_v15 = vld [vmem:[#allocation10 + $0x470] sm:$0xff] }
 0x2ff   :  { %2479 = vmatmul.f32.gmra.mxu3 %v4474_v5  ;;  %2602 = vmatmul.f32.gmra.mxu2 %v4362_v34 }
 0x300   :  { %v4478_v56 = vpop.f32.mrf.mxu0  ;;  %2725 = vmatmul.f32.gmra.mxu1 %v4222_v7  ;;  %v1999_v8 = vpop.f32.mrf.mxu3  ;;  %2753 = vmatpush.msra.mxu2 %v2232_v36 }
 0x301   :  { %4929 = vst [vmem:[#allocation23_spill] sm:$0xff] %v4478_v56  ;;  %v2000_v40 = vadd.f32 %v1999_v8, %v1959_v47  ;;  %v4930_v56 = vld [vmem:[#allocation41_spill] sm:$0xff]  ;;  %v1964_v49 = vpop.f32.mrf.mxu2  ;;  %2636 = vmatpush.msrb.mxu3 %v2271_v22 }
 0x302   :  { %v2169_v47 = vld [vmem:[#allocation10 + $0x2d8] sm:$0xff]  ;;  %2754 = vmatpush.msra.mxu2 %v2228_v2  ;;  %v2212_v2 = vld [vmem:[#allocation10 + $0x430] sm:$0xff] }
 0x303   :  { %2693 = vmatmul.f32.gmra.mxu0 %v4233_v63  ;;  %v2029_v33 = vmax.f32 %v2000_v40, 0.0  ;;  %v1883_v40 = vadd.f32 %v4367_v27, %v4417_v16  ;;  %2876 = vmatpush.msrb.mxu1 %v2169_v47  ;;  %v2216_v47 = vld [vmem:[#allocation10 + $0x450] sm:$0xff] }
 0x304   :  { %v4484_v6 = vpop.f32.mrf.mxu1  ;;  %2755 = vmatpush.msra.mxu2 %v2224_v21  ;;  %v2208_v22 = vld [vmem:[#allocation10 + $0x410] sm:$0xff] }
 0x305   :  { %v4488_v13 = vadd.f32 %v2029_v33, %v4930_v56  ;;  %2877 = vmatpush.msrb.mxu1 %v2165_v9  ;;  %v1924_v36 = vadd.f32 %v4397_v53, %v1883_v40  ;;  %v2153_v53 = vld [vmem:[#allocation10 + $0x258] sm:$0xff]  ;;  %v1886_v40 = vadd.f32 %v4383_v3, %v4417_v16 }
 0x306   :  { %2756 = vmatpush.msra.mxu2 %v2220_v15  ;;  %v2328_v15 = vld [vmem:[#allocation10 + $0x7d0] sm:$0xff] }
 0x307   :  { %2482 = vmatmul.f32.gmra.mxu3 %v4488_v13  ;;  %2605 = vmatmul.f32.gmra.mxu2 %v4376_v25  ;;  %v1965_v57 = vadd.f32 %v1964_v49, %v1924_v36 }
 0x308   :  { %v4492_v8 = vpop.f32.mrf.mxu0  ;;  %2728 = vmatmul.f32.gmra.mxu1 %v4244_v59  ;;  %v2002_v56 = vpop.f32.mrf.mxu3  ;;  %2757 = vmatpush.msra.mxu2 %v2216_v47  ;;  %v4932_v47 = vld [vmem:[#allocation43_spill] sm:$0xff] }
 0x309   :  { %v2003_v39 = vadd.f32 %v2002_v56, %v1962_v26  ;;  %2878 = vmatpush.msrb.mxu1 %v2161_v43  ;;  %v2157_v26 = vld [vmem:[#allocation10 + $0x278] sm:$0xff]  ;;  %v2332_v56 = vld [vmem:[#allocation10 + $0x7f0] sm:$0xff]  ;;  %v1967_v49 = vpop.f32.mrf.mxu2 }
 0x30a   :  { %2785 = vmatpush.msra.mxu3 %v2332_v56  ;;  %2758 = vmatpush.msra.mxu2 %v2212_v2  ;;  %v2149_v43 = vld [vmem:[#allocation10 + $0x238] sm:$0xff]  ;;  %v2324_v2 = vld [vmem:[#allocation10 + $0x7b0] sm:$0xff] }
 0x30b   :  { %2696 = vmatmul.f32.gmra.mxu0 %v4255_v0  ;;  %v2033_v33 = vmax.f32 %v2003_v39, 0.0  ;;  %2879 = vmatpush.msrb.mxu1 %v2157_v26  ;;  %v2145_v26 = vld [vmem:[#allocation10 + $0x218] sm:$0xff] }
 0x30c   :  { %v4498_v29 = vpop.f32.mrf.mxu1  ;;  %2759 = vmatpush.msra.mxu2 %v2208_v22  ;;  %2786 = vmatpush.msra.mxu3 %v2328_v15 }
 0x30d   :  { %v4502_v27 = vadd.f32 %v2033_v33, %v4931_v20  ;;  %2880 = vmatpush.msrb.mxu1 %v2153_v53  ;;  %v1927_v20 = vadd.f32 %v4413_v44, %v1886_v40 }
 0x30e   :  { %2787 = vmatpush.msra.mxu3 %v2324_v2 }
 0x30f   :  { %2485 = vmatmul.f32.gmra.mxu3 %v4502_v27  ;;  %2608 = vmatmul.f32.gmra.mxu2 %v4390_v55 }
 0x310   :  { %2731 = vmatmul.f32.gmra.mxu1 %v4265_v31  ;;  %v2005_v9 = vpop.f32.mrf.mxu3  ;;  %v4507_v39 = vpop.f32.mrf.mxu0 }
 0x311   :  { %v2006_v21 = vadd.f32 %v2005_v9, %v1965_v57  ;;  %2881 = vmatpush.msrb.mxu1 %v2149_v43  ;;  %v1968_v57 = vadd.f32 %v1967_v49, %v1927_v20  ;;  %v1889_v9 = vadd.f32 %v4395_v61, %v4417_v16  ;;  %v1970_v22 = vpop.f32.mrf.mxu2  ;;  %v2316_v61 = vld [vmem:[#allocation10 + $0x770] sm:$0xff] }
 0x313   :  { %2699 = vmatmul.f32.gmra.mxu0 %v4273_v42  ;;  %v2037_v33 = vmax.f32 %v2006_v21, 0.0  ;;  %2882 = vmatpush.msrb.mxu1 %v2145_v26  ;;  %v2320_v21 = vld [vmem:[#allocation10 + $0x790] sm:$0xff]  ;;  %v1930_v43 = vadd.f32 %v4429_v18, %v1889_v9 }
 0x314   :  { %v4512_v36 = vpop.f32.mrf.mxu1  ;;  %2788 = vmatpush.msra.mxu3 %v2320_v21 }
 0x315   :  { %v4516_v3 = vadd.f32 %v2037_v33, %v4932_v47  ;;  %v4933_v33 = vld [vmem:[#allocation44_spill] sm:$0xff]  ;;  %v1971_v20 = vadd.f32 %v1970_v22, %v1930_v43 }
 0x316   :  { %2789 = vmatpush.msra.mxu3 %v2316_v61 }
 0x317   :  { %2488 = vmatmul.f32.gmra.mxu3 %v4516_v3  ;;  %2611 = vmatmul.f32.gmra.mxu2 %v4404_v38 }
 0x318   :  { %2734 = vmatmul.f32.gmra.mxu1 %v4284_v45  ;;  %v2008_v56 = vpop.f32.mrf.mxu3  ;;  %v2515_v44 = vpop.f32.mrf.mxu0 }
 0x319   :  { %v2009_v53 = vadd.f32 %v2008_v56, %v1968_v57  ;;  %v2312_v57 = vld [vmem:[#allocation10 + $0x750] sm:$0xff] }
 0x31a   :  { %2790 = vmatpush.msra.mxu3 %v2312_v57  ;;  %v4934_v56 = vld [vmem:[#allocation45_spill] sm:$0xff] }
 0x31b   :  { %2842 = vmatmul.f32.vlgmr.msrb.gmra.mxu0 %v4121_v12  ;;  %v2041_v40 = vmax.f32 %v2009_v53, 0.0  ;;  %v2308_v53 = vld [vmem:[#allocation10 + $0x730] sm:$0xff] }
 0x31c   :  { %v4524_v49 = vpop.f32.mrf.mxu1  ;;  %2791 = vmatpush.msra.mxu3 %v2308_v53 }
 0x31d   :  { %v4528_v15 = vadd.f32 %v2041_v40, %v4933_v33  ;;  %v2304_v40 = vld [vmem:[#allocation10 + $0x710] sm:$0xff] }
 0x31e   :  { %2792 = vmatpush.msra.mxu3 %v2304_v40  ;;  %v2300_v33 = vld [vmem:[#allocation10 + $0x6f0] sm:$0xff] }
 0x31f   :  { %2491 = vmatmul.f32.gmra.mxu3 %v4528_v15  ;;  %2614 = vmatmul.f32.gmra.mxu2 %v4420_v10 }
 0x320   :  { %2737 = vmatmul.f32.gmra.mxu1 %v4301_v11  ;;  %v2011_v12 = vpop.f32.mrf.mxu3  ;;  %v2518_v2 = vpop.f32.mrf.mxu0  ;;  %2793 = vmatpush.msra.mxu3 %v2300_v33 }
 0x321   :  { %v2012_v47 = vadd.f32 %v2011_v12, %v1971_v20  ;;  %v2269_v20 = vld [vmem:[#allocation10 + $0x5f8] sm:$0xff]  ;;  %v2296_v12 = vld [vmem:[#allocation10 + $0x6d0] sm:$0xff] }
 0x322   :  { %2908 = vmatpush.msrb.mxu2 %v2269_v20  ;;  %2794 = vmatpush.msra.mxu3 %v2296_v12  ;;  %v2245_v20 = vld [vmem:[#allocation10 + $0x538] sm:$0xff] }
 0x323   :  { %2845 = vmatmul.f32.gmra.mxu0 %v4143_v19  ;;  %v2045_v26 = vmax.f32 %v2012_v47, 0.0  ;;  %v2516_v19 = vadd.f32 %v2515_v44, %v4129_v14  ;;  %v2519_v44 = vadd.f32 %v2518_v2, %v4129_v14 }
 0x324   :  { %v4534_v18 = vpop.f32.mrf.mxu1 }
 0x325   :  { %v4537_v9 = vadd.f32 %v2045_v26, %v4934_v56  ;;  %v2261_v26 = vld [vmem:[#allocation10 + $0x5b8] sm:$0xff] }
 0x326   :  { %v2257_v56 = vld [vmem:[#allocation10 + $0x598] sm:$0xff] }
 0x327   :  { %2494 = vmatmul.f32.gmra.mxu3 %v4537_v9  ;;  %2617 = vmatmul.f32.gmra.mxu2 %v4433_v51 }
 0x328   :  { %2740 = vmatmul.f32.gmra.mxu1 %v4317_v4  ;;  %v2521_v43 = vpop.f32.mrf.mxu0 }
 0x329   :  { %v2522_v40 = vadd.f32 %v2521_v43, %v4129_v14 }
 0x32b   :  { %2848 = vmatmul.f32.gmra.mxu0 %v4163_v24  ;;  %v2265_v24 = vld [vmem:[#allocation10 + $0x5d8] sm:$0xff] }
 0x32c   :  { %v2556_v21 = vpop.f32.mrf.mxu1  ;;  %2909 = vmatpush.msrb.mxu2 %v2265_v24 }
 0x32d   :  { %v4544_v22 = vadd.f32 %v2556_v21, %v2516_v19  ;;  %v2249_v19 = vld [vmem:[#allocation10 + $0x558] sm:$0xff]  ;;  %v2288_v21 = vld [vmem:[#allocation10 + $0x690] sm:$0xff] }
 0x32e   :  { %2910 = vmatpush.msrb.mxu2 %v2261_v26 }
 0x32f   :  { %2637 = vmatmul.f32.vlgmr.msrb.gmra.mxu3 %v4446_v54  ;;  %2760 = vmatmul.f32.vlgmr.msra.gmra.mxu2 %v4330_v50 }
 0x330   :  { %2883 = vmatmul.f32.vlgmr.msrb.gmra.mxu1 %v4174_v58  ;;  %v2292_v58 = vld [vmem:[#allocation10 + $0x6b0] sm:$0xff]  ;;  %v2524_v53 = vpop.f32.mrf.mxu0  ;;  %2911 = vmatpush.msrb.mxu2 %v2257_v56 }
 0x331   :  { %2795 = vmatpush.msra.mxu3 %v2292_v58  ;;  %v2525_v26 = vadd.f32 %v2524_v53, %v4129_v14  ;;  %v2280_v56 = vld [vmem:[#allocation10 + $0x650] sm:$0xff] }
 0x332   :  { %v4549_v61 = vpop.f32.mrf.mxu2 }
 0x333   :  { %2851 = vmatmul.f32.gmra.mxu0 %v4187_v28  ;;  %v2253_v28 = vld [vmem:[#allocation10 + $0x578] sm:$0xff]  ;;  %2796 = vmatpush.msra.mxu3 %v2288_v21 }
 0x334   :  { %v2559_v47 = vpop.f32.mrf.mxu1  ;;  %2912 = vmatpush.msrb.mxu2 %v2253_v28  ;;  %v2229_v28 = vld [vmem:[#allocation10 + $0x4b8] sm:$0xff] }
 0x335   :  { %v4553_v57 = vadd.f32 %v2559_v47, %v2519_v44  ;;  %v2241_v44 = vld [vmem:[#allocation10 + $0x518] sm:$0xff] }
 0x336   :  { %2913 = vmatpush.msrb.mxu2 %v2249_v19  ;;  %v2233_v47 = vld [vmem:[#allocation10 + $0x4d8] sm:$0xff] }
 0x337   :  { %2640 = vmatmul.f32.gmra.mxu3 %v4460_v48  ;;  %2763 = vmatmul.f32.gmra.mxu2 %v4346_v23  ;;  %v2217_v21 = vld [vmem:[#allocation10 + $0x458] sm:$0xff] }
 0x338   :  { %2886 = vmatmul.f32.gmra.mxu1 %v4198_v17  ;;  %2914 = vmatpush.msrb.mxu2 %v2245_v20  ;;  %v2284_v17 = vld [vmem:[#allocation10 + $0x670] sm:$0xff]  ;;  %v2527_v43 = vpop.f32.mrf.mxu0 }
 0x339   :  { %2797 = vmatpush.msra.mxu3 %v2284_v17  ;;  %v2272_v20 = vld [vmem:[#allocation10 + $0x610] sm:$0xff] }
 0x33a   :  { %v4558_v2 = vpop.f32.mrf.mxu2  ;;  %2915 = vmatpush.msrb.mxu2 %v2241_v44 }
 0x33b   :  { %2854 = vmatmul.f32.gmra.mxu0 %v4211_v32  ;;  %v2237_v32 = vld [vmem:[#allocation10 + $0x4f8] sm:$0xff]  ;;  %2798 = vmatpush.msra.mxu3 %v2280_v56 }
 0x33c   :  { %v2562_v33 = vpop.f32.mrf.mxu1  ;;  %2916 = vmatpush.msrb.mxu2 %v2237_v32  ;;  %v2213_v32 = vld [vmem:[#allocation10 + $0x438] sm:$0xff] }
 0x33d   :  { %v4562_v24 = vadd.f32 %v2562_v33, %v2522_v40  ;;  %v2276_v40 = vld [vmem:[#allocation10 + $0x630] sm:$0xff]  ;;  %v2528_v33 = vadd.f32 %v2527_v43, %v4129_v14 }
 0x33e   :  { %2917 = vmatpush.msrb.mxu2 %v2233_v47  ;;  %2799 = vmatpush.msra.mxu3 %v2276_v40 }
 0x33f   :  { %2643 = vmatmul.f32.gmra.mxu3 %v4474_v5  ;;  %2766 = vmatmul.f32.gmra.mxu2 %v4362_v34 }
 0x340   :  { %2889 = vmatmul.f32.gmra.mxu1 %v4222_v7  ;;  %v2225_v7 = vld [vmem:[#allocation10 + $0x498] sm:$0xff]  ;;  %2918 = vmatpush.msrb.mxu2 %v2229_v28  ;;  %v2530_v44 = vpop.f32.mrf.mxu0 }
 0x341   :  { %2800 = vmatpush.msra.mxu3 %v2272_v20  ;;  %v2531_v43 = vadd.f32 %v2530_v44, %v4129_v14  ;;  %v2321_v20 = vld [vmem:[#allocation10 + $0x798] sm:$0xff] }
 0x342   :  { %v4567_v12 = vpop.f32.mrf.mxu2  ;;  %2919 = vmatpush.msrb.mxu2 %v2225_v7  ;;  %v2329_v7 = vld [vmem:[#allocation10 + $0x7d8] sm:$0xff] }
 0x343   :  { %2857 = vmatmul.f32.gmra.mxu0 %v4233_v63  ;;  %v2221_v63 = vld [vmem:[#allocation10 + $0x478] sm:$0xff] }
 0x344   :  { %v2565_v58 = vpop.f32.mrf.mxu1  ;;  %2920 = vmatpush.msrb.mxu2 %v2221_v63 }
 0x345   :  { %v4571_v19 = vadd.f32 %v2565_v58, %v2525_v26  ;;  %v2333_v26 = vld [vmem:[#allocation10 + $0x7f8] sm:$0xff] }
 0x346   :  { %2921 = vmatpush.msrb.mxu2 %v2217_v21  ;;  %2949 = vmatpush.msrb.mxu3 %v2333_v26  ;;  %v2313_v26 = vld [vmem:[#allocation10 + $0x758] sm:$0xff] }
 0x347   :  { %2646 = vmatmul.f32.gmra.mxu3 %v4488_v13  ;;  %2769 = vmatmul.f32.gmra.mxu2 %v4376_v25 }
 0x348   :  { %2892 = vmatmul.f32.gmra.mxu1 %v4244_v59  ;;  %2922 = vmatpush.msrb.mxu2 %v2213_v32  ;;  %v2209_v59 = vld [vmem:[#allocation10 + $0x418] sm:$0xff]  ;;  %v2533_v28 = vpop.f32.mrf.mxu0 }
 0x349   :  { %2950 = vmatpush.msrb.mxu3 %v2329_v7  ;;  %v2534_v63 = vadd.f32 %v2533_v28, %v4129_v14  ;;  %v2305_v7 = vld [vmem:[#allocation10 + $0x718] sm:$0xff] }
 0x34a   :  { %v4576_v53 = vpop.f32.mrf.mxu2  ;;  %2923 = vmatpush.msrb.mxu2 %v2209_v59 }
 0x34b   :  { %2860 = vmatmul.f32.gmra.mxu0 %v4255_v0 }
 0x34c   :  { %v2568_v17 = vpop.f32.mrf.mxu1 }
 0x34d   :  { %v4580_v47 = vadd.f32 %v2568_v17, %v2528_v33 }
 0x34f   :  { %2649 = vmatmul.f32.gmra.mxu3 %v4502_v27  ;;  %2772 = vmatmul.f32.gmra.mxu2 %v4390_v55 }
 0x350   :  { %2895 = vmatmul.f32.gmra.mxu1 %v4265_v31  ;;  %v2325_v31 = vld [vmem:[#allocation10 + $0x7b8] sm:$0xff]  ;;  %v2536_v33 = vpop.f32.mrf.mxu0 }
 0x351   :  { %2951 = vmatpush.msrb.mxu3 %v2325_v31  ;;  %v2537_v17 = vadd.f32 %v2536_v33, %v4129_v14  ;;  %v2301_v31 = vld [vmem:[#allocation10 + $0x6f8] sm:$0xff] }
 0x352   :  { %v4585_v0 = vpop.f32.mrf.mxu2 }
 0x353   :  { %2863 = vmatmul.f32.gmra.mxu0 %v4273_v42  ;;  %2952 = vmatpush.msrb.mxu3 %v2321_v20  ;;  %v2293_v20 = vld [vmem:[#allocation10 + $0x6b8] sm:$0xff] }
 0x354   :  { %v2571_v56 = vpop.f32.mrf.mxu1 }
 0x355   :  { %v4589_v58 = vadd.f32 %v2571_v56, %v2531_v43  ;;  %v2309_v43 = vld [vmem:[#allocation10 + $0x738] sm:$0xff]  ;;  %v2352_v56 = vadd.f32 %v4409_v37, %v4077_v1  ;;  %v2355_v37 = vadd.f32 %v4424_v35, %v4077_v1  ;;  %v2358_v35 = vadd.f32 %v4437_v52, %v4077_v1 }
 0x356   :  { %v2361_v52 = vadd.f32 %v4450_v60, %v4077_v1  ;;  %v2364_v60 = vadd.f32 %v4464_v41, %v4077_v1 }
 0x357   :  { %2652 = vmatmul.f32.gmra.mxu3 %v4516_v3  ;;  %2775 = vmatmul.f32.gmra.mxu2 %v4404_v38  ;;  %v2393_v14 = vadd.f32 %v4442_v62, %v2352_v56  ;;  %v2396_v62 = vadd.f32 %v4456_v46, %v2355_v37  ;;  %v2399_v46 = vadd.f32 %v4470_v30, %v2358_v35 }
 0x358   :  { %2898 = vmatmul.f32.gmra.mxu1 %v4284_v45  ;;  %v2317_v45 = vld [vmem:[#allocation10 + $0x778] sm:$0xff]  ;;  %v2402_v30 = vadd.f32 %v4484_v6, %v2361_v52 }
 0x359   :  { %2953 = vmatpush.msrb.mxu3 %v2317_v45  ;;  %v2434_v28 = vadd.f32 %v4549_v61, %v2393_v14  ;;  %v2297_v61 = vld [vmem:[#allocation10 + $0x6d8] sm:$0xff] }
 0x35a   :  { %v4594_v40 = vpop.f32.mrf.mxu2  ;;  %v2273_v6 = vld [vmem:[#allocation10 + $0x618] sm:$0xff] }
 0x35b   :  { %2954 = vmatpush.msrb.mxu3 %v2313_v26  ;;  %v2285_v26 = vld [vmem:[#allocation10 + $0x678] sm:$0xff] }
 0x35c   :  { %v2574_v42 = vpop.f32.mrf.mxu1 }
 0x35d   :  { %v4597_v21 = vadd.f32 %v2574_v42, %v2534_v63  ;;  %2955 = vmatpush.msrb.mxu3 %v2309_v43 }
 0x35f   :  { %2655 = vmatmul.f32.gmra.mxu3 %v4528_v15  ;;  %2778 = vmatmul.f32.gmra.mxu2 %v4420_v10 }
 0x360   :  { %2901 = vmatmul.f32.gmra.mxu1 %v4301_v11  ;;  %2956 = vmatpush.msrb.mxu3 %v2305_v7 }
 0x362   :  { %v4602_v44 = vpop.f32.mrf.mxu2  ;;  %2957 = vmatpush.msrb.mxu3 %v2301_v31 }
 0x364   :  { %v2577_v32 = vpop.f32.mrf.mxu1  ;;  %2958 = vmatpush.msrb.mxu3 %v2297_v61 }
 0x365   :  { %v4605_v59 = vadd.f32 %v2577_v32, %v2537_v17 }
 0x366   :  { %2959 = vmatpush.msrb.mxu3 %v2293_v20 }
 0x367   :  { %2658 = vmatmul.f32.gmra.mxu3 %v4537_v9  ;;  %2781 = vmatmul.f32.gmra.mxu2 %v4433_v51 }
 0x368   :  { %2904 = vmatmul.f32.gmra.mxu1 %v4317_v4 }
 0x36a   :  { %v4610_v11 = vpop.f32.mrf.mxu2 }
 0x36f   :  { %2801 = vmatmul.f32.vlgmr.msra.gmra.mxu3 %v4446_v54  ;;  %2924 = vmatmul.f32.vlgmr.msrb.gmra.mxu2 %v4330_v50  ;;  %v2437_v50 = vadd.f32 %v4558_v2, %v2396_v62  ;;  %v2289_v2 = vld [vmem:[#allocation10 + $0x698] sm:$0xff] }
 0x370   :  { %2960 = vmatpush.msrb.mxu3 %v2289_v2 }
 0x372   :  { %v2474_v4 = vpop.f32.mrf.mxu3  ;;  %v2597_v63 = vpop.f32.mrf.mxu2  ;;  %2961 = vmatpush.msrb.mxu3 %v2285_v26  ;;  %v3022_v26 = vld [vmem:[#allocation5] sm:$0xff] }
 0x373   :  { %v4618_v42 = vadd.f32 %v2474_v4, %v2434_v28  ;;  %v4621_v33 = vadd.f32 %v2597_v63, %v4544_v22  ;;  %v2277_v28 = vld [vmem:[#allocation10 + $0x638] sm:$0xff]  ;;  %v2405_v63 = vadd.f32 %v4498_v29, %v2364_v60 }
 0x377   :  { %2804 = vmatmul.f32.gmra.mxu3 %v4460_v48  ;;  %2927 = vmatmul.f32.gmra.mxu2 %v4346_v23  ;;  %v2440_v23 = vadd.f32 %v4567_v12, %v2399_v46  ;;  %v2281_v12 = vld [vmem:[#allocation10 + $0x658] sm:$0xff] }
 0x378   :  { %2962 = vmatpush.msrb.mxu3 %v2281_v12  ;;  %v2679_v12 = vpop.f32.mrf.mxu0 }
 0x37a   :  { %v2477_v45 = vpop.f32.mrf.mxu3  ;;  %v2600_v17 = vpop.f32.mrf.mxu2  ;;  %2963 = vmatpush.msrb.mxu3 %v2277_v28 }
 0x37b   :  { %v4629_v32 = vadd.f32 %v2477_v45, %v2437_v50  ;;  %v4632_v22 = vadd.f32 %v2600_v17, %v4553_v57  ;;  %v4935_v50 = vld [vmem:[#allocation23_spill] sm:$0xff] }
 0x37c   :  { %2964 = vmatpush.msrb.mxu3 %v2273_v6  ;;  %v2367_v61 = vadd.f32 %v4935_v50, %v4077_v1 }
 0x37e   :  { %v2408_v41 = vadd.f32 %v4512_v36, %v2367_v61 }
 0x37f   :  { %2807 = vmatmul.f32.gmra.mxu3 %v4474_v5  ;;  %2930 = vmatmul.f32.gmra.mxu2 %v4362_v34  ;;  %v2443_v34 = vadd.f32 %v4576_v53, %v2402_v30 }
 0x382   :  { %v2480_v43 = vpop.f32.mrf.mxu3  ;;  %v2603_v56 = vpop.f32.mrf.mxu2 }
 0x383   :  { %v4640_v14 = vadd.f32 %v2480_v43, %v2440_v23  ;;  %v4643_v57 = vadd.f32 %v2603_v56, %v4562_v24 }
 0x387   :  { %2810 = vmatmul.f32.gmra.mxu3 %v4488_v13  ;;  %2933 = vmatmul.f32.gmra.mxu2 %v4376_v25  ;;  %v2446_v25 = vadd.f32 %v4585_v0, %v2405_v63 }
 0x38a   :  { %v2483_v7 = vpop.f32.mrf.mxu3  ;;  %v2606_v31 = vpop.f32.mrf.mxu2 }
 0x38b   :  { %v4651_v4 = vadd.f32 %v2483_v7, %v2443_v34  ;;  %v2607_v24 = vadd.f32 %v2606_v31, %v4571_v19 }
 0x38f   :  { %2813 = vmatmul.f32.gmra.mxu3 %v4502_v27  ;;  %2936 = vmatmul.f32.gmra.mxu2 %v4390_v55  ;;  %v2449_v55 = vadd.f32 %v4594_v40, %v2408_v41 }
 0x392   :  { %v2486_v53 = vpop.f32.mrf.mxu3  ;;  %v2609_v37 = vpop.f32.mrf.mxu2 }
 0x393   :  { %v4660_v62 = vadd.f32 %v2486_v53, %v2446_v25  ;;  %v2610_v19 = vadd.f32 %v2609_v37, %v4580_v47  ;;  %v2370_v47 = vadd.f32 %v4492_v8, %v4077_v1 }
 0x395   :  { %v2411_v17 = vadd.f32 %v4524_v49, %v2370_v47 }
 0x397   :  { %2816 = vmatmul.f32.gmra.mxu3 %v4516_v3  ;;  %2939 = vmatmul.f32.gmra.mxu2 %v4404_v38  ;;  %v2452_v36 = vadd.f32 %v4602_v44, %v2411_v17 }
 0x39a   :  { %v2489_v29 = vpop.f32.mrf.mxu3  ;;  %v2612_v20 = vpop.f32.mrf.mxu2 }
 0x39b   :  { %v4669_v0 = vadd.f32 %v2489_v29, %v2449_v55  ;;  %v2613_v45 = vadd.f32 %v2612_v20, %v4589_v58  ;;  %v2373_v58 = vadd.f32 %v4507_v39, %v4077_v1 }
 0x39d   :  { %v2414_v23 = vadd.f32 %v4534_v18, %v2373_v58  ;;  %v3023_v18 = vld [vmem:[#allocation5 + $0x8] sm:$0xff] }
 0x39f   :  { %2819 = vmatmul.f32.gmra.mxu3 %v4528_v15  ;;  %2942 = vmatmul.f32.gmra.mxu2 %v4420_v10  ;;  %v2455_v8 = vadd.f32 %v4610_v11, %v2414_v23 }
 0x3a2   :  { %v2492_v38 = vpop.f32.mrf.mxu3  ;;  %v2615_v35 = vpop.f32.mrf.mxu2 }
 0x3a3   :  { %v4678_v40 = vadd.f32 %v2492_v38, %v2452_v36  ;;  %v2616_v46 = vadd.f32 %v2615_v35, %v4597_v21  ;;  %v2990_v21 = vmax.f32 %v4618_v42, 0.0 }
 0x3a5   :  { %v3054_v43 = vsub.f32 %v2990_v21, %v3022_v26 }
 0x3a7   :  { %2822 = vmatmul.f32.gmra.mxu3 %v4537_v9  ;;  %2945 = vmatmul.f32.gmra.mxu2 %v4433_v51  ;;  %v3086_v11 = vmul.f32 %v3054_v43, %v3054_v43 }
 0x3aa   :  { %v2495_v10 = vpop.f32.mrf.mxu3  ;;  %v2618_v49 = vpop.f32.mrf.mxu2 }
 0x3ab   :  { %v4687_v44 = vadd.f32 %v2495_v10, %v2455_v8  ;;  %v2619_v2 = vadd.f32 %v2618_v49, %v4605_v59 }
 0x3ad   :  { %4936 = vst [vmem:[#allocation50_spill] sm:$0xff] %v4687_v44 }
 0x3af   :  { %2965 = vmatmul.f32.vlgmr.msrb.gmra.mxu3 %v4446_v54 }
 0x3b2   :  { %v2638_v1 = vpop.f32.mrf.mxu3  ;;  %v2761_v7 = vpop.f32.mrf.mxu2 }
 0x3b3   :  { %v2639_v39 = vadd.f32 %v2638_v1, %v4621_v33 }
 0x3b5   :  { %v2991_v56 = vmax.f32 %v2639_v39, 0.0  ;;  %v4941_v39 = vld [vmem:[#allocation52_spill] sm:$0xff] }
 0x3b7   :  { %v3055_v51 = vsub.f32 %v2991_v56, %v3023_v18  ;;  %2968 = vmatmul.f32.gmra.mxu3 %v4460_v48  ;;  %v2720_v48 = vpop.f32.mrf.mxu1  ;;  %v2680_v18 = vadd.f32 %v2679_v12, %v4941_v39 }
 0x3b9   :  { %v3087_v52 = vmul.f32 %v3055_v51, %v3055_v51  ;;  %v2721_v43 = vadd.f32 %v2720_v48, %v2680_v18 }
 0x3ba   :  { %v2641_v30 = vpop.f32.mrf.mxu3 }
 0x3bb   :  { %v4694_v34 = vadd.f32 %v3087_v52, %v3086_v11  ;;  %v4697_v59 = vadd.f32 %v2641_v30, %v4632_v22  ;;  %v2682_v22 = vpop.f32.mrf.mxu0  ;;  %v2762_v51 = vadd.f32 %v2761_v7, %v2721_v43  ;;  %v2994_v7 = vmax.f32 %v4629_v32, 0.0 }
 0x3bf   :  { %2971 = vmatmul.f32.gmra.mxu3 %v4474_v5  ;;  %v2723_v6 = vpop.f32.mrf.mxu1  ;;  %v2764_v5 = vpop.f32.mrf.mxu2 }
 0x3c2   :  { %v2644_v54 = vpop.f32.mrf.mxu3 }
 0x3c3   :  { %v4701_v42 = vadd.f32 %v2644_v54, %v4643_v57 }
 0x3c7   :  { %2974 = vmatmul.f32.gmra.mxu3 %v4488_v13  ;;  %v2685_v13 = vpop.f32.mrf.mxu0 }
 0x3ca   :  { %v2647_v33 = vpop.f32.mrf.mxu3 }
 0x3cb   :  { %v4704_v28 = vadd.f32 %v2647_v33, %v2607_v24  ;;  %v4713_v24 = vpop.f32.mrf.mxu1  ;;  %v2683_v33 = vadd.f32 %v2682_v22, %v4941_v39 }
 0x3cf   :  { %2977 = vmatmul.f32.gmra.mxu3 %v4502_v27  ;;  %v4717_v27 = vpop.f32.mrf.mxu2  ;;  %v4720_v37 = vpop.f32.mrf.mxu0 }
 0x3d2   :  { %v2650_v31 = vpop.f32.mrf.mxu3 }
 0x3d3   :  { %v4707_v60 = vadd.f32 %v2650_v31, %v2610_v19 }
 0x3d7   :  { %2980 = vmatmul.f32.gmra.mxu3 %v4516_v3  ;;  %v4722_v3 = vpop.f32.mrf.mxu1  ;;  %v4726_v61 = vpop.f32.mrf.mxu2 }
 0x3da   :  { %v2653_v57 = vpop.f32.mrf.mxu3 }
 0x3db   :  { %v4710_v63 = vadd.f32 %v2653_v57, %v2613_v45 }
 0x3df   :  { %2983 = vmatmul.f32.gmra.mxu3 %v4528_v15  ;;  %v4728_v15 = vpop.f32.mrf.mxu0  ;;  %v4730_v55 = vpop.f32.mrf.mxu1 }
 0x3e0   :  { %v4732_v29 = vpop.f32.mrf.mxu2 }
 0x3e2   :  { %v2656_v25 = vpop.f32.mrf.mxu3 }
 0x3e3   :  { %v4715_v53 = vadd.f32 %v2656_v25, %v2616_v46  ;;  %v3024_v25 = vld [vmem:[#allocation5 + $0x10] sm:$0xff] }
 0x3e5   :  { %4937 = vst [vmem:[#allocation46_spill] sm:$0xff] %v4715_v53  ;;  %v3025_v53 = vld [vmem:[#allocation5 + $0x18] sm:$0xff] }
 0x3e7   :  { %2986 = vmatmul.f32.gmra.mxu3 %v4537_v9  ;;  %v4734_v45 = vpop.f32.mrf.mxu0  ;;  %v4736_v9 = vpop.f32.mrf.mxu1 }
 0x3e8   :  { %v4738_v47 = vpop.f32.mrf.mxu2 }
 0x3ea   :  { %v2659_v19 = vpop.f32.mrf.mxu3 }
 0x3eb   :  { %v4724_v50 = vadd.f32 %v2659_v19, %v2619_v2  ;;  %v2724_v19 = vadd.f32 %v2723_v6, %v2683_v33 }
 0x3ed   :  { %4938 = vst [vmem:[#allocation19_spill] sm:$0xff] %v4724_v50 }
 0x3ef   :  { %v4742_v36 = vpop.f32.mrf.mxu0  ;;  %v4744_v38 = vpop.f32.mrf.mxu1 }
 0x3f0   :  { %v4748_v46 = vpop.f32.mrf.mxu2 }
 0x3f2   :  { %v2802_v41 = vpop.f32.mrf.mxu3 }
 0x3f3   :  { %v2803_v52 = vadd.f32 %v2802_v41, %v2762_v51  ;;  %v3026_v41 = vld [vmem:[#allocation5 + $0x20] sm:$0xff] }
 0x3f4   :  { %v3058_v33 = vsub.f32 %v2994_v7, %v3026_v41 }
 0x3f5   :  { %v2992_v57 = vmax.f32 %v2803_v52, 0.0  ;;  %v3027_v52 = vld [vmem:[#allocation5 + $0x28] sm:$0xff] }
 0x3f7   :  { %v4750_v58 = vpop.f32.mrf.mxu0  ;;  %v4754_v8 = vpop.f32.mrf.mxu1  ;;  %v3056_v12 = vsub.f32 %v2992_v57, %v3024_v25 }
 0x3f8   :  { %4939 = vst [vmem:[#allocation47_spill] sm:$0xff] %v4754_v8  ;;  %v4756_v10 = vpop.f32.mrf.mxu2 }
 0x3f9   :  { %4940 = vst [vmem:[#allocation54_spill] sm:$0xff] %v4756_v10  ;;  %v2765_v10 = vadd.f32 %v2764_v5, %v2724_v19 }
 0x3fa   :  { %v2805_v20 = vpop.f32.mrf.mxu3 }
 0x3fb   :  { %v2806_v43 = vadd.f32 %v2805_v20, %v2765_v10  ;;  %v3028_v20 = vld [vmem:[#allocation5 + $0x30] sm:$0xff] }
 0x3fd   :  { %v2996_v32 = vmax.f32 %v2806_v43, 0.0 }
 0x3ff   :  { %v2843_v2 = vpop.f32.mrf.mxu0  ;;  %v2884_v21 = vpop.f32.mrf.mxu1  ;;  %v3060_v41 = vsub.f32 %v2996_v32, %v3028_v20 }
 0x400   :  { %v2925_v26 = vpop.f32.mrf.mxu2  ;;  %v2844_v31 = vadd.f32 %v2843_v2, %v4417_v16  ;;  %v2686_v2 = vadd.f32 %v2685_v13, %v4941_v39 }
 0x402   :  { %v4740_v17 = vpop.f32.mrf.mxu3  ;;  %v2885_v44 = vadd.f32 %v2884_v21, %v2844_v31  ;;  %v3088_v21 = vmul.f32 %v3056_v12, %v3056_v12 }
 0x404   :  { %v2926_v48 = vadd.f32 %v2925_v26, %v2885_v44  ;;  %v2727_v44 = vadd.f32 %v4713_v24, %v2686_v2  ;;  %v3119_v25 = vadd.f32 %v4694_v34, %v3088_v21  ;;  %v2999_v34 = vmax.f32 %v4701_v42, 0.0 }
 0x407   :  { %v2846_v56 = vpop.f32.mrf.mxu0  ;;  %v2887_v11 = vpop.f32.mrf.mxu1 }
 0x408   :  { %v2928_v30 = vpop.f32.mrf.mxu2  ;;  %v2847_v6 = vadd.f32 %v2846_v56, %v4417_v16  ;;  %v2998_v56 = vmax.f32 %v4640_v14, 0.0 }
 0x40a   :  { %v4746_v35 = vpop.f32.mrf.mxu3  ;;  %v2888_v26 = vadd.f32 %v2887_v11, %v2847_v6 }
 0x40c   :  { %v2929_v19 = vadd.f32 %v2928_v30, %v2888_v26  ;;  %v3029_v30 = vld [vmem:[#allocation5 + $0x38] sm:$0xff] }
 0x40f   :  { %v2849_v50 = vpop.f32.mrf.mxu0  ;;  %v2890_v8 = vpop.f32.mrf.mxu1 }
 0x410   :  { %v2931_v22 = vpop.f32.mrf.mxu2 }
 0x412   :  { %v4752_v23 = vpop.f32.mrf.mxu3 }
 0x417   :  { %v2852_v10 = vpop.f32.mrf.mxu0  ;;  %v2893_v7 = vpop.f32.mrf.mxu1 }
 0x41a   :  { %v4758_v49 = vpop.f32.mrf.mxu3 }
 0x422   :  { %v4760_v1 = vpop.f32.mrf.mxu3 }
 0x42a   :  { %v4763_v54 = vpop.f32.mrf.mxu3 }
 0x42b   :  { %4942 = vst [vmem:[#allocation25_spill] sm:$0xff] %v4763_v54  ;;  %v2995_v54 = vmax.f32 %v4697_v59, 0.0  ;;  %v2768_v59 = vadd.f32 %v4717_v27, %v2727_v44  ;;  %v2850_v27 = vadd.f32 %v2849_v50, %v4417_v16 }
 0x42d   :  { %v3059_v57 = vsub.f32 %v2995_v54, %v3027_v52  ;;  %v2809_v24 = vadd.f32 %v4740_v17, %v2768_v59  ;;  %v2689_v54 = vadd.f32 %v4720_v37, %v4941_v39  ;;  %v2891_v21 = vadd.f32 %v2890_v8, %v2850_v27  ;;  %v3032_v37 = vld [vmem:[#allocation5 + $0x50] sm:$0xff] }
 0x42e   :  { %v3092_v17 = vmul.f32 %v3060_v41, %v3060_v41  ;;  %v3002_v59 = vmax.f32 %v4651_v4, 0.0 }
 0x42f   :  { %v3091_v43 = vmul.f32 %v3059_v57, %v3059_v57  ;;  %v2730_v52 = vadd.f32 %v4722_v3, %v2689_v54 }
 0x431   :  { %v2771_v50 = vadd.f32 %v4726_v61, %v2730_v52  ;;  %v3003_v61 = vmax.f32 %v4704_v28, 0.0 }
 0x432   :  { %v2966_v18 = vpop.f32.mrf.mxu3 }
 0x433   :  { %v2967_v51 = vadd.f32 %v2966_v18, %v2926_v48  ;;  %v3090_v48 = vmul.f32 %v3058_v33, %v3058_v33  ;;  %v3030_v18 = vld [vmem:[#allocation5 + $0x40] sm:$0xff]  ;;  %v3000_v33 = vmax.f32 %v2809_v24, 0.0  ;;  %v2812_v8 = vadd.f32 %v4746_v35, %v2771_v50  ;;  %v3035_v24 = vld [vmem:[#allocation5 + $0x68] sm:$0xff] }
 0x434   :  { %v3062_v6 = vsub.f32 %v2998_v56, %v3030_v18  ;;  %v2853_v18 = vadd.f32 %v2852_v10, %v4417_v16 }
 0x435   :  { %v2993_v5 = vmax.f32 %v2967_v51, 0.0  ;;  %v3031_v51 = vld [vmem:[#allocation5 + $0x48] sm:$0xff]  ;;  %v3064_v3 = vsub.f32 %v3000_v33, %v3032_v37  ;;  %v2695_v37 = vadd.f32 %v4734_v45, %v4941_v39 }
 0x436   :  { %v3063_v32 = vsub.f32 %v2999_v34, %v3031_v51  ;;  %v3094_v57 = vmul.f32 %v3062_v6, %v3062_v6  ;;  %v2894_v34 = vadd.f32 %v2893_v7, %v2853_v18 }
 0x437   :  { %v3057_v31 = vsub.f32 %v2993_v5, %v3025_v53  ;;  %v2934_v5 = vpop.f32.mrf.mxu2  ;;  %v3096_v35 = vmul.f32 %v3064_v3, %v3064_v3 }
 0x438   :  { %v3095_v41 = vmul.f32 %v3063_v32, %v3063_v32  ;;  %v2935_v28 = vadd.f32 %v2934_v5, %v2894_v34  ;;  %v3037_v5 = vld [vmem:[#allocation5 + $0x78] sm:$0xff]  ;;  %v2698_v34 = vadd.f32 %v4742_v36, %v4941_v39  ;;  %v3044_v36 = vld [vmem:[#allocation5 + $0xb0] sm:$0xff] }
 0x439   :  { %v3089_v13 = vmul.f32 %v3057_v31, %v3057_v31  ;;  %v2932_v31 = vadd.f32 %v2931_v22, %v2891_v21  ;;  %v3033_v22 = vld [vmem:[#allocation5 + $0x58] sm:$0xff] }
 0x43a   :  { %v2969_v12 = vpop.f32.mrf.mxu3 }
 0x43b   :  { %v3120_v11 = vadd.f32 %v3119_v25, %v3089_v13  ;;  %v2970_v53 = vadd.f32 %v2969_v12, %v2929_v19  ;;  %v3034_v19 = vld [vmem:[#allocation5 + $0x60] sm:$0xff]  ;;  %v2855_v13 = vpop.f32.mrf.mxu0  ;;  %v2692_v12 = vadd.f32 %v4728_v15, %v4941_v39  ;;  %v3036_v15 = vld [vmem:[#allocation5 + $0x70] sm:$0xff] }
 0x43c   :  { %v3066_v54 = vsub.f32 %v3002_v59, %v3034_v19  ;;  %v2856_v50 = vadd.f32 %v2855_v13, %v4417_v16 }
 0x43d   :  { %v3121_v2 = vadd.f32 %v3120_v11, %v3090_v48  ;;  %v2997_v14 = vmax.f32 %v2970_v53, 0.0  ;;  %v2896_v11 = vpop.f32.mrf.mxu1  ;;  %v2733_v27 = vadd.f32 %v4730_v55, %v2692_v12  ;;  %v3040_v12 = vld [vmem:[#allocation5 + $0x90] sm:$0xff] }
 0x43e   :  { %v3098_v21 = vmul.f32 %v3066_v54, %v3066_v54  ;;  %v2897_v19 = vadd.f32 %v2896_v11, %v2856_v50  ;;  %v3046_v50 = vld [vmem:[#allocation5 + $0xc0] sm:$0xff] }
 0x43f   :  { %v3061_v44 = vsub.f32 %v2997_v14, %v3029_v30  ;;  %v3122_v26 = vadd.f32 %v3121_v2, %v3091_v43  ;;  %v3004_v30 = vmax.f32 %v2812_v8, 0.0  ;;  %v3067_v2 = vsub.f32 %v3003_v61, %v3035_v24  ;;  %v2937_v14 = vpop.f32.mrf.mxu2 }
 0x440   :  { %v2774_v10 = vadd.f32 %v4732_v29, %v2733_v27  ;;  %v3007_v29 = vmax.f32 %v4707_v60, 0.0  ;;  %v2938_v60 = vadd.f32 %v2937_v14, %v2897_v19  ;;  %v2739_v14 = vadd.f32 %v4744_v38, %v2698_v34  ;;  %v3047_v19 = vld [vmem:[#allocation5 + $0xc8] sm:$0xff] }
 0x441   :  { %v3093_v42 = vmul.f32 %v3061_v44, %v3061_v44  ;;  %v3123_v20 = vadd.f32 %v3122_v26, %v3092_v17  ;;  %v3006_v17 = vmax.f32 %v4660_v62, 0.0  ;;  %v3038_v44 = vld [vmem:[#allocation5 + $0x80] sm:$0xff]  ;;  %v3068_v26 = vsub.f32 %v3004_v30, %v3036_v15  ;;  %v3041_v30 = vld [vmem:[#allocation5 + $0x98] sm:$0xff] }
 0x442   :  { %v2972_v25 = vpop.f32.mrf.mxu3  ;;  %v2815_v55 = vadd.f32 %v4752_v23, %v2774_v10 }
 0x443   :  { %v3124_v48 = vadd.f32 %v3123_v20, %v3093_v42  ;;  %v2973_v56 = vadd.f32 %v2972_v25, %v2932_v31  ;;  %v2858_v31 = vpop.f32.mrf.mxu0  ;;  %v3099_v42 = vmul.f32 %v3067_v2, %v3067_v2  ;;  %v3039_v20 = vld [vmem:[#allocation5 + $0x88] sm:$0xff]  ;;  %v3070_v59 = vsub.f32 %v3006_v17, %v3038_v44 }
 0x444   :  { %v2736_v25 = vadd.f32 %v4736_v9, %v2695_v37  ;;  %v3100_v3 = vmul.f32 %v3068_v26, %v3068_v26  ;;  %v3008_v8 = vmax.f32 %v2815_v55, 0.0  ;;  %v3071_v45 = vsub.f32 %v3007_v29, %v3039_v20 }
 0x445   :  { %v3125_v4 = vadd.f32 %v3124_v48, %v3094_v57  ;;  %v3001_v53 = vmax.f32 %v2973_v56, 0.0  ;;  %v2899_v23 = vpop.f32.mrf.mxu1  ;;  %v2780_v44 = vadd.f32 %v4748_v46, %v2739_v14 }
 0x446   :  { %v2777_v13 = vadd.f32 %v4738_v47, %v2736_v25  ;;  %v3072_v9 = vsub.f32 %v3008_v8, %v3040_v12  ;;  %v3011_v47 = vmax.f32 %v4710_v63, 0.0  ;;  %v4944_v8 = vld [vmem:[#allocation47_spill] sm:$0xff] }
 0x447   :  { %v3065_v43 = vsub.f32 %v3001_v53, %v3033_v22  ;;  %v3126_v51 = vadd.f32 %v3125_v4, %v3095_v41  ;;  %v3102_v22 = vmul.f32 %v3070_v59, %v3070_v59  ;;  %v3010_v41 = vmax.f32 %v4669_v0, 0.0  ;;  %v2940_v24 = vpop.f32.mrf.mxu2  ;;  %v3042_v53 = vld [vmem:[#allocation5 + $0xa0] sm:$0xff]  ;;  %v3045_v59 = vld [vmem:[#allocation5 + $0xb8] sm:$0xff] }
 0x448   :  { %v2818_v11 = vadd.f32 %v4758_v49, %v2777_v13  ;;  %v3104_v49 = vmul.f32 %v3072_v9, %v3072_v9  ;;  %v2821_v29 = vadd.f32 %v4760_v1, %v2780_v44 }
 0x449   :  { %v3097_v6 = vmul.f32 %v3065_v43, %v3065_v43  ;;  %v3127_v52 = vadd.f32 %v3126_v51, %v3096_v35  ;;  %v2859_v35 = vadd.f32 %v2858_v31, %v4417_v16  ;;  %v3103_v43 = vmul.f32 %v3071_v45, %v3071_v45  ;;  %v3043_v51 = vld [vmem:[#allocation5 + $0xa8] sm:$0xff] }
 0x44a   :  { %v2975_v33 = vpop.f32.mrf.mxu3  ;;  %v3074_v15 = vsub.f32 %v3010_v41, %v3042_v53  ;;  %v3075_v17 = vsub.f32 %v3011_v47, %v3043_v51  ;;  %v3016_v45 = vmax.f32 %v2821_v29, 0.0  ;;  %v4946_v53 = vld [vmem:[#allocation50_spill] sm:$0xff] }
 0x44b   :  { %v3128_v7 = vadd.f32 %v3127_v52, %v3097_v6  ;;  %v2976_v32 = vadd.f32 %v2975_v33, %v2935_v28  ;;  %v2900_v10 = vadd.f32 %v2899_v23, %v2859_v35  ;;  %v2861_v28 = vpop.f32.mrf.mxu0  ;;  %v3012_v6 = vmax.f32 %v2818_v11, 0.0  ;;  %v4947_v35 = vld [vmem:[#allocation25_spill] sm:$0xff] }
 0x44c   :  { %v2862_v20 = vadd.f32 %v2861_v28, %v4417_v16  ;;  %v3107_v25 = vmul.f32 %v3075_v17, %v3075_v17  ;;  %v3018_v9 = vmax.f32 %v4946_v53, 0.0 }
 0x44d   :  { %v3129_v57 = vadd.f32 %v3128_v7, %v3098_v21  ;;  %v3005_v62 = vmax.f32 %v2976_v32, 0.0  ;;  %v2902_v33 = vpop.f32.mrf.mxu1  ;;  %v2941_v63 = vadd.f32 %v2940_v24, %v2900_v10  ;;  %v3106_v7 = vmul.f32 %v3074_v15, %v3074_v15  ;;  %v4948_v15 = vld [vmem:[#allocation19_spill] sm:$0xff] }
 0x44e   :  { %v3014_v32 = vmax.f32 %v4678_v40, 0.0  ;;  %v3076_v38 = vsub.f32 %v3012_v6, %v3044_v36  ;;  %v3019_v14 = vmax.f32 %v4948_v15, 0.0 }
 0x44f   :  { %v3069_v48 = vsub.f32 %v3005_v62, %v3037_v5  ;;  %v3130_v56 = vadd.f32 %v3129_v57, %v3099_v42  ;;  %v2701_v42 = vadd.f32 %v4750_v58, %v4941_v39  ;;  %v4943_v57 = vld [vmem:[#allocation46_spill] sm:$0xff]  ;;  %v2943_v62 = vpop.f32.mrf.mxu2  ;;  %v3048_v58 = vld [vmem:[#allocation5 + $0xd0] sm:$0xff] }
 0x450   :  { %v3015_v46 = vmax.f32 %v4943_v57, 0.0  ;;  %v3108_v1 = vmul.f32 %v3076_v38, %v3076_v38  ;;  %v3080_v34 = vsub.f32 %v3016_v45, %v3048_v58 }
 0x451   :  { %v3101_v18 = vmul.f32 %v3069_v48, %v3069_v48  ;;  %v3131_v61 = vadd.f32 %v3130_v56, %v3100_v3  ;;  %v3078_v3 = vsub.f32 %v3014_v32, %v3046_v50  ;;  %v2742_v48 = vadd.f32 %v4944_v8, %v2701_v42 }
 0x452   :  { %v2978_v4 = vpop.f32.mrf.mxu3  ;;  %v2903_v56 = vadd.f32 %v2902_v33, %v2862_v20  ;;  %v3112_v17 = vmul.f32 %v3080_v34, %v3080_v34 }
 0x453   :  { %v3132_v54 = vadd.f32 %v3131_v61, %v3101_v18  ;;  %v2979_v27 = vadd.f32 %v2978_v4, %v2938_v60  ;;  %v3079_v60 = vsub.f32 %v3015_v46, %v3047_v19  ;;  %v2864_v39 = vpop.f32.mrf.mxu0  ;;  %v4945_v18 = vld [vmem:[#allocation54_spill] sm:$0xff]  ;;  %v3110_v4 = vmul.f32 %v3078_v3, %v3078_v3 }
 0x454   :  { %v2783_v61 = vadd.f32 %v4945_v18, %v2742_v48  ;;  %v2865_v51 = vadd.f32 %v2864_v39, %v4417_v16 }
 0x455   :  { %v3133_v2 = vadd.f32 %v3132_v54, %v3102_v22  ;;  %v3009_v0 = vmax.f32 %v2979_v27, 0.0  ;;  %v2944_v22 = vadd.f32 %v2943_v62, %v2903_v56  ;;  %v3050_v54 = vld [vmem:[#allocation5 + $0xe0] sm:$0xff]  ;;  %v2905_v27 = vpop.f32.mrf.mxu1 }
 0x456   :  { %v2824_v47 = vadd.f32 %v4947_v35, %v2783_v61  ;;  %v2906_v6 = vadd.f32 %v2905_v27, %v2865_v51 }
 0x457   :  { %v3073_v52 = vsub.f32 %v3009_v0, %v3041_v30  ;;  %v3134_v21 = vadd.f32 %v3133_v2, %v3103_v43  ;;  %v3049_v2 = vld [vmem:[#allocation5 + $0xd8] sm:$0xff]  ;;  %v3111_v0 = vmul.f32 %v3079_v60, %v3079_v60 }
 0x458   :  { %v3020_v36 = vmax.f32 %v2824_v47, 0.0 }
 0x459   :  { %v3105_v26 = vmul.f32 %v3073_v52, %v3073_v52  ;;  %v3135_v55 = vadd.f32 %v3134_v21, %v3104_v49  ;;  %v3082_v49 = vsub.f32 %v3018_v9, %v3050_v54  ;;  %v3051_v52 = vld [vmem:[#allocation5 + $0xe8] sm:$0xff]  ;;  %v2946_v21 = vpop.f32.mrf.mxu2 }
 0x45a   :  { %v2981_v37 = vpop.f32.mrf.mxu3 }
 0x45b   :  { %v3136_v5 = vadd.f32 %v3135_v55, %v3105_v26  ;;  %v2982_v31 = vadd.f32 %v2981_v37, %v2941_v63  ;;  %v3052_v63 = vld [vmem:[#allocation5 + $0xf0] sm:$0xff]  ;;  %v3083_v26 = vsub.f32 %v3019_v14, %v3051_v52  ;;  %v2947_v55 = vadd.f32 %v2946_v21, %v2906_v6 }
 0x45c   :  { %v3114_v37 = vmul.f32 %v3082_v49, %v3082_v49  ;;  %v3084_v50 = vsub.f32 %v3020_v36, %v3052_v63 }
 0x45d   :  { %v3137_v23 = vadd.f32 %v3136_v5, %v3106_v7  ;;  %v3013_v40 = vmax.f32 %v2982_v31, 0.0  ;;  %v3053_v5 = vld [vmem:[#allocation5 + $0xf8] sm:$0xff]  ;;  %v3115_v31 = vmul.f32 %v3083_v26, %v3083_v26 }
 0x45e   :  { %v3116_v57 = vmul.f32 %v3084_v50, %v3084_v50 }
 0x45f   :  { %v3077_v12 = vsub.f32 %v3013_v40, %v3045_v59  ;;  %v3138_v13 = vadd.f32 %v3137_v23, %v3107_v25 }
 0x461   :  { %v3109_v41 = vmul.f32 %v3077_v12, %v3077_v12  ;;  %v3139_v24 = vadd.f32 %v3138_v13, %v3108_v1 }
 0x462   :  { %v2984_v11 = vpop.f32.mrf.mxu3 }
 0x463   :  { %v3140_v30 = vadd.f32 %v3139_v24, %v3109_v41  ;;  %v2985_v43 = vadd.f32 %v2984_v11, %v2944_v22 }
 0x465   :  { %v3141_v10 = vadd.f32 %v3140_v30, %v3110_v4  ;;  %v3017_v28 = vmax.f32 %v2985_v43, 0.0 }
 0x467   :  { %v3081_v33 = vsub.f32 %v3017_v28, %v3049_v2  ;;  %v3142_v44 = vadd.f32 %v3141_v10, %v3111_v0 }
 0x469   :  { %v3113_v7 = vmul.f32 %v3081_v33, %v3081_v33  ;;  %v3143_v32 = vadd.f32 %v3142_v44, %v3112_v17 }
 0x46a   :  { %v2987_v16 = vpop.f32.mrf.mxu3 }
 0x46b   :  { %v3144_v38 = vadd.f32 %v3143_v32, %v3113_v7  ;;  %v2988_v29 = vadd.f32 %v2987_v16, %v2947_v55 }
 0x46d   :  { %v3021_v42 = vmax.f32 %v2988_v29, 0.0  ;;  %v3145_v20 = vadd.f32 %v3144_v38, %v3114_v37 }
 0x46f   :  { %v3085_v46 = vsub.f32 %v3021_v42, %v3053_v5  ;;  %v3146_v62 = vadd.f32 %v3145_v20, %v3115_v31 }
 0x471   :  { %v3117_v59 = vmul.f32 %v3085_v46, %v3085_v46  ;;  %v3147_v25 = vadd.f32 %v3146_v62, %v3116_v57 }
 0x473   :  { %v3148_v19 = vadd.f32 %v3147_v25, %v3117_v59 }
 0x475   :  { %3149 = vadd.xlane.f32.xlu0 %v3148_v19 }
 0x4e8   :  { %v3150_v23 = vpop.xlane.xlu0 %3149 }
 0x4e9   :  { %v3151_v40 = vrot.slane %v3150_v23, 4 }
 0x4eb   :  { %v3152_v3 = vadd.f32 %v3151_v40, %v3150_v23 }
 0x4ed   :  { %v3153_v8 = vrot.slane %v3152_v3, 2 }
 0x4ef   :  { %v3154_v48 = vadd.f32 %v3153_v8, %v3152_v3 }
 0x4f1   :  { %v3155_v56 = vrot.slane %v3154_v48, 1 }
 0x4f3   :  { %v3156_v1 = vadd.f32 %v3155_v56, %v3154_v48 }
 0x4f5   :  { %3179 = vpush %v3156_v1 }
 0x526   :  { %s3180_s26 = spop %3179 }
 0x527   :  { %3159 = sst [smem:[#allocation13]] %s3180_s26 }
 0x528   :  { %3168 = dma.smem_to_hbm %s3397_s27, 16, %s3166_s25, [#allocation4]  }
 0x529   :  { %3387 = dma.done.wait [#allocation4], 16  }
 0x52a   :  { %3388 = vsyncadd [#allocation4], 4294967280 }
 0x52b   :  { %3173 = sfence }
 0x52c   :  { %3174 = vsyncpa [#allocation3], 1 }
 0x52d   :  { %3175 = vsyncpa [#allocation6], 1 }
 0x52e   :  { %3176 = vsyncpa [#allocation9], 1 }
 0x52f   :  { %3177 = vsyncpa [#allocation12], 1 }
 0x530   :  { %3178 = vsyncpa [#allocation4], 1 }

</bundles_post_ra>
